<compile_context>
chip_gen: v7x
topology: tpu7x:2x2x1
jax: 0.10.0
libtpu: 0.0.40
codegen_flags: <defaults>
</compile_context>

<pallas_src>
import functools

import numpy as np
import jax
import jax.numpy as jnp
from jax.experimental import pallas as pl
from jax.experimental.pallas import tpu as pltpu


# ----------------------------------------------------------------------------
# In-kernel helpers (pure Python, unrolled at trace time; all indices static)
# ----------------------------------------------------------------------------
def _conv3x3_from_halo(fp_ref, w_ref, s_ref, t_ref, H, W):
    """3x3 SAME conv + folded BN + ReLU from a flattened halo buffer.

    fp_ref : (2 + (H+2)*W, Cin) VMEM; rows [1+W, 1+W+H*W) hold the activation
             (row-major flattened), everything else is zero.
    w_ref  : (9, Cin, Cout) taps, index 3*dy + dx.
    s_ref, t_ref : (1, Cout) folded BN scale / shift.
    Returns a (H*W, Cout) f32 value.
    """
    M = H * W
    cout = w_ref.shape[-1]
    col = jax.lax.broadcasted_iota(jnp.int32, (M, 1), 0) % W
    not_left = (col != 0).astype(jnp.float32)        # valid rows for dx == 0 taps
    not_right = (col != W - 1).astype(jnp.float32)   # valid rows for dx == 2 taps

    acc = jnp.zeros((M, cout), jnp.float32)
    for dx in range(3):
        part = jnp.zeros((M, cout), jnp.float32)
        for dy in range(3):
            start = 1 + W + (dy - 1) * W + (dx - 1)   # static; vertical OOB hits zeros
            patch = fp_ref[pl.ds(start, M), :]        # (M, Cin) contiguous slice
            part = part + jnp.dot(patch, w_ref[3 * dy + dx],
                                  preferred_element_type=jnp.float32)
        if dx == 0:
            part = part * not_left
        elif dx == 2:
            part = part * not_right
        acc = acc + part
    return jnp.maximum(acc * s_ref[...] + t_ref[...], 0.0)


def _pooled_rows(src_ref, H, W):
    """Yield (ho, pooled_row) for a 2x2 / stride-2 max pool of a flattened (H*W, C)
    activation held in VMEM.  Each pooled row is a lane-dense (W//2, C) value built
    from four strided sublane reads."""
    Wo = W // 2
    for ho in range(H // 2):
        base = 2 * ho * W

        def rd(off, _base=base, _wo=Wo):
            if _wo == 1:
                return src_ref[pl.ds(_base + off, 1), :]
            return src_ref[pl.ds(_base + off, _wo, stride=2), :]

        yield ho, jnp.maximum(jnp.maximum(rd(0), rd(1)),
                              jnp.maximum(rd(W), rd(W + 1)))


def _pool_into_halo(src_ref, H, W, dst_ref):
    """2x2 max pool (H, W, C) -> (H/2, W/2, C); write each pooled row into the
    interior of the next layer's halo buffer (rows [1+Wo, 1+Wo+Ho*Wo))."""
    Wo = W // 2
    for ho, row in _pooled_rows(src_ref, H, W):
        dst_ref[pl.ds(1 + Wo + ho * Wo, Wo), :] = row


def _pool_then_gap(src_ref, H, W):
    """2x2 max pool followed by global average pool -> (1, C)."""
    Ho, Wo = H // 2, W // 2
    acc = None
    for _, row in _pooled_rows(src_ref, H, W):
        s = jnp.sum(row, axis=0, keepdims=True)
        acc = s if acc is None else acc + s
    return acc * (1.0 / (Ho * Wo))


# ----------------------------------------------------------------------------
# Fused kernel: one sample per grid step, everything resident in VMEM.
# ----------------------------------------------------------------------------
def _arcanum_kernel(x1_ref,
                    w1, s1, t1, w2, s2, t2, w3, s3, t3, w4, s4, t4,
                    fw1, fb1, fw2, fb2, fw3, fb3, fw4, fb4,
                    o_ref,
                    co1, hb2, co2, hb3, co3, hb4, co4,
                    *, H, W):
    # Zero halo buffers once; their interiors are fully overwritten by pooling.
    hb2[...] = jnp.zeros_like(hb2)
    hb3[...] = jnp.zeros_like(hb3)
    hb4[...] = jnp.zeros_like(hb4)

    # Block 1: conv1 as a single im2col matmul (K = 9*3 = 27) + BN + ReLU.
    y = jnp.dot(x1_ref[0], w1[...], preferred_element_type=jnp.float32)   # (H*W, 32)
    co1[...] = jnp.maximum(y * s1[...] + t1[...], 0.0)
    _pool_into_halo(co1, H, W, hb2)

    # Blocks 2-4: 9 shifted full-image matmuls per layer, pooling into next halo.
    co2[...] = _conv3x3_from_halo(hb2, w2, s2, t2, H // 2, W // 2)
    _pool_into_halo(co2, H // 2, W // 2, hb3)
    co3[...] = _conv3x3_from_halo(hb3, w3, s3, t3, H // 4, W // 4)
    _pool_into_halo(co3, H // 4, W // 4, hb4)
    co4[...] = _conv3x3_from_halo(hb4, w4, s4, t4, H // 8, W // 8)

    # Final 2x2 max pool + global average pool (spatial is 1x1 here).
    g = _pool_then_gap(co4, H // 8, W // 8)                               # (1, 256)

    # MLP head; Dropout(p=0.5) is identity in eval mode.
    h = jnp.maximum(jnp.dot(g, fw1[...], preferred_element_type=jnp.float32) + fb1[...], 0.0)
    h = jnp.maximum(jnp.dot(h, fw2[...], preferred_element_type=jnp.float32) + fb2[...], 0.0)
    h = jnp.maximum(jnp.dot(h, fw3[...], preferred_element_type=jnp.float32) + fb3[...], 0.0)
    o_ref[0] = jnp.dot(h, fw4[...], preferred_element_type=jnp.float32) + fb4[...]


# ----------------------------------------------------------------------------
# Wrapper: im2col of the network input for layer 1, weight repacking, pallas_call.
# ----------------------------------------------------------------------------
def arcanum_forward_pallas(x_nchw, params):
    x = jnp.transpose(x_nchw, (0, 2, 3, 1)).astype(jnp.float32)           # NCHW -> NHWC
    N, H, W, Cin = x.shape
    if H % 16 != 0 or W % 16 != 0:
        raise ValueError("spatial dims must be divisible by 16 (four 2x2 pools)")

    # im2col for conv1 (network input only): (N, H*W, 9*Cin), tap order (dy, dx, cin).
    xp = jnp.pad(x, ((0, 0), (1, 1), (1, 1), (0, 0)))
    cols = [xp[:, dy:dy + H, dx:dx + W, :] for dy in range(3) for dx in range(3)]
    x1 = jnp.concatenate(cols, axis=-1).reshape(N, H * W, 9 * Cin)

    (w1, s1, t1), (w2, s2, t2), (w3, s3, t3), (w4, s4, t4) = params["convs"]
    c1, c2, c3, c4 = w1.shape[-1], w2.shape[-1], w3.shape[-1], w4.shape[-1]

    def taps(w):                       # (3, 3, Cin, Cout) -> (9, Cin, Cout)
        return w.reshape(9, w.shape[2], w.shape[3])

    def vec(v):                        # (C,) -> (1, C)
        return v.reshape(1, -1).astype(jnp.float32)

    inputs = [
        x1,
        w1.reshape(9 * Cin, c1), vec(s1), vec(t1),
        taps(w2), vec(s2), vec(t2),
        taps(w3), vec(s3), vec(t3),
        taps(w4), vec(s4), vec(t4),
        params["fc1"][0], vec(params["fc1"][1]),
        params["fc2"][0], vec(params["fc2"][1]),
        params["fc3"][0], vec(params["fc3"][1]),
        params["fc4"][0], vec(params["fc4"][1]),
    ]

    def full_spec(a):
        return pl.BlockSpec(a.shape, lambda n, _z=(0,) * a.ndim: _z)

    in_specs = [pl.BlockSpec((1, H * W, 9 * Cin), lambda n: (n, 0, 0))]
    in_specs += [full_spec(a) for a in inputs[1:]]

    H2, W2 = H // 2, W // 2
    H3, W3 = H // 4, W // 4
    H4, W4 = H // 8, W // 8
    scratch = [
        pltpu.VMEM((H * W, c1), jnp.float32),                  # conv1 out
        pltpu.VMEM((2 + (H2 + 2) * W2, c1), jnp.float32),      # halo buf -> conv2 in
        pltpu.VMEM((H2 * W2, c2), jnp.float32),                # conv2 out
        pltpu.VMEM((2 + (H3 + 2) * W3, c2), jnp.float32),      # halo buf -> conv3 in
        pltpu.VMEM((H3 * W3, c3), jnp.float32),                # conv3 out
        pltpu.VMEM((2 + (H4 + 2) * W4, c3), jnp.float32),      # halo buf -> conv4 in
        pltpu.VMEM((H4 * W4, c4), jnp.float32),                # conv4 out
    ]

    kernel = functools.partial(_arcanum_kernel, H=H, W=W)
    out = pl.pallas_call(
        kernel,
        out_shape=jax.ShapeDtypeStruct((N, 1, 10), jnp.float32),
        grid=(N,),
        in_specs=in_specs,
        out_specs=pl.BlockSpec((1, 1, 10), lambda n: (n, 0, 0)),
        scratch_shapes=scratch,
        compiler_params=pltpu.CompilerParams(dimension_semantics=("parallel",)),
    )(*inputs)
    return out[:, 0, :]


arcanum_forward = jax.jit(arcanum_forward_pallas)


# ----------------------------------------------------------------------------
# Deterministic parameter construction (BN folded to scale/shift, eval mode)
# ----------------------------------------------------------------------------
def make_conv_params(key, cin, cout, eps=1e-5):
    kw, kb, kg, kbe, km, kv = jax.random.split(key, 6)
    w = jax.random.normal(kw, (3, 3, cin, cout), jnp.float32) * np.sqrt(2.0 / (9 * cin))
    b = 0.01 * jax.random.normal(kb, (cout,), jnp.float32)
    gamma = 1.0 + 0.1 * jax.random.normal(kg, (cout,), jnp.float32)
    beta = 0.1 * jax.random.normal(kbe, (cout,), jnp.float32)
    rmean = 0.05 * jax.random.normal(km, (cout,), jnp.float32)
    rvar = jax.random.uniform(kv, (cout,), jnp.float32, minval=0.5, maxval=1.5)
    scale = gamma / jnp.sqrt(rvar + eps)
    shift = (b - rmean) * scale + beta
    return w, scale, shift


def make_fc_params(key, fin, fout):
    kw, kb = jax.random.split(key)
    w = jax.random.normal(kw, (fin, fout), jnp.float32) * np.sqrt(2.0 / fin)
    b = 0.01 * jax.random.normal(kb, (fout,), jnp.float32)
    return w, b


# ----------------------------------------------------------------------------
# Pure-JAX reference (same math) for a correctness check
# ----------------------------------------------------------------------------
def ref_forward(x_nchw, params):
    x = jnp.transpose(x_nchw, (0, 2, 3, 1))
    for (w, s, t) in params["convs"]:
        y = jax.lax.conv_general_dilated(
            x, w, window_strides=(1, 1), padding="SAME",
            dimension_numbers=("NHWC", "HWIO", "NHWC"))
        y = jnp.maximum(y * s + t, 0.0)
        x = jax.lax.reduce_window(y, -jnp.inf, jax.lax.max,
                                  (1, 2, 2, 1), (1, 2, 2, 1), "VALID")
    g = jnp.mean(x, axis=(1, 2))
    h = jnp.maximum(g @ params["fc1"][0] + params["fc1"][1], 0.0)
    h = jnp.maximum(h @ params["fc2"][0] + params["fc2"][1], 0.0)
    h = jnp.maximum(h @ params["fc3"][0] + params["fc3"][1], 0.0)
    return h @ params["fc4"][0] + params["fc4"][1]


if __name__ == "__main__":
    root = jax.random.PRNGKey(0)
    kx, k1, k2, k3, k4, k5, k6, k7, k8 = jax.random.split(root, 9)

    params = {
        "convs": [
            make_conv_params(k1, 3, 32),
            make_conv_params(k2, 32, 64),
            make_conv_params(k3, 64, 128),
            make_conv_params(k4, 128, 256),
        ],
        "fc1": make_fc_params(k5, 256, 512),
        "fc2": make_fc_params(k6, 512, 256),
        "fc3": make_fc_params(k7, 256, 128),
        "fc4": make_fc_params(k8, 128, 10),
    }

    # PyTorch-style NCHW input: batch=2, channels=3, spatial=16x16
    x = jax.random.normal(kx, (2, 3, 16, 16), jnp.float32)

    out = jax.block_until_ready(arcanum_forward(x, params))
    ref = ref_forward(x, params)
    np.testing.assert_allclose(np.asarray(out), np.asarray(ref), rtol=2e-3, atol=2e-3)
    assert out.shape == (2, 10)
    print("KERNEL_OK")
</pallas_src>

<mosaic_0001>
module attributes {stable_mosaic.version = 11 : i64} {
  func.func @_arcanum_kernel(%arg0: i32, %arg1: memref<1x256x27xf32, #tpu.memory_space<vmem>>, %arg2: memref<27x32xf32, #tpu.memory_space<vmem>>, %arg3: memref<1x32xf32, #tpu.memory_space<vmem>>, %arg4: memref<1x32xf32, #tpu.memory_space<vmem>>, %arg5: memref<9x32x64xf32, #tpu.memory_space<vmem>>, %arg6: memref<1x64xf32, #tpu.memory_space<vmem>>, %arg7: memref<1x64xf32, #tpu.memory_space<vmem>>, %arg8: memref<9x64x128xf32, #tpu.memory_space<vmem>>, %arg9: memref<1x128xf32, #tpu.memory_space<vmem>>, %arg10: memref<1x128xf32, #tpu.memory_space<vmem>>, %arg11: memref<9x128x256xf32, #tpu.memory_space<vmem>>, %arg12: memref<1x256xf32, #tpu.memory_space<vmem>>, %arg13: memref<1x256xf32, #tpu.memory_space<vmem>>, %arg14: memref<256x512xf32, #tpu.memory_space<vmem>>, %arg15: memref<1x512xf32, #tpu.memory_space<vmem>>, %arg16: memref<512x256xf32, #tpu.memory_space<vmem>>, %arg17: memref<1x256xf32, #tpu.memory_space<vmem>>, %arg18: memref<256x128xf32, #tpu.memory_space<vmem>>, %arg19: memref<1x128xf32, #tpu.memory_space<vmem>>, %arg20: memref<128x10xf32, #tpu.memory_space<vmem>>, %arg21: memref<1x10xf32, #tpu.memory_space<vmem>>, %arg22: memref<1x1x10xf32, #tpu.memory_space<vmem>>, %arg23: memref<256x32xf32, #tpu.memory_space<vmem>>, %arg24: memref<82x32xf32, #tpu.memory_space<vmem>>, %arg25: memref<64x64xf32, #tpu.memory_space<vmem>>, %arg26: memref<26x64xf32, #tpu.memory_space<vmem>>, %arg27: memref<16x128xf32, #tpu.memory_space<vmem>>, %arg28: memref<10x128xf32, #tpu.memory_space<vmem>>, %arg29: memref<4x256xf32, #tpu.memory_space<vmem>>) attributes {dimension_semantics = [#tpu.dimension_semantics<parallel>], iteration_bounds = array<i64: 2>, scalar_prefetch = 0 : i64, scratch_operands = 7 : i64, tpu.core_type = #tpu.core_type<tc>, window_params = [{transform_indices = @transform_0, window_bounds = array<i64: 1, 256, 27>}, {pipeline_mode = #tpu.pipeline_mode<synchronous>, transform_indices = @transform_1, window_bounds = array<i64: 27, 32>}, {pipeline_mode = #tpu.pipeline_mode<synchronous>, transform_indices = @transform_2, window_bounds = array<i64: 1, 32>}, {pipeline_mode = #tpu.pipeline_mode<synchronous>, transform_indices = @transform_3, window_bounds = array<i64: 1, 32>}, {pipeline_mode = #tpu.pipeline_mode<synchronous>, transform_indices = @transform_4, window_bounds = array<i64: 9, 32, 64>}, {pipeline_mode = #tpu.pipeline_mode<synchronous>, transform_indices = @transform_5, window_bounds = array<i64: 1, 64>}, {pipeline_mode = #tpu.pipeline_mode<synchronous>, transform_indices = @transform_6, window_bounds = array<i64: 1, 64>}, {pipeline_mode = #tpu.pipeline_mode<synchronous>, transform_indices = @transform_7, window_bounds = array<i64: 9, 64, 128>}, {pipeline_mode = #tpu.pipeline_mode<synchronous>, transform_indices = @transform_8, window_bounds = array<i64: 1, 128>}, {pipeline_mode = #tpu.pipeline_mode<synchronous>, transform_indices = @transform_9, window_bounds = array<i64: 1, 128>}, {pipeline_mode = #tpu.pipeline_mode<synchronous>, transform_indices = @transform_10, window_bounds = array<i64: 9, 128, 256>}, {pipeline_mode = #tpu.pipeline_mode<synchronous>, transform_indices = @transform_11, window_bounds = array<i64: 1, 256>}, {pipeline_mode = #tpu.pipeline_mode<synchronous>, transform_indices = @transform_12, window_bounds = array<i64: 1, 256>}, {pipeline_mode = #tpu.pipeline_mode<synchronous>, transform_indices = @transform_13, window_bounds = array<i64: 256, 512>}, {pipeline_mode = #tpu.pipeline_mode<synchronous>, transform_indices = @transform_14, window_bounds = array<i64: 1, 512>}, {pipeline_mode = #tpu.pipeline_mode<synchronous>, transform_indices = @transform_15, window_bounds = array<i64: 512, 256>}, {pipeline_mode = #tpu.pipeline_mode<synchronous>, transform_indices = @transform_16, window_bounds = array<i64: 1, 256>}, {pipeline_mode = #tpu.pipeline_mode<synchronous>, transform_indices = @transform_17, window_bounds = array<i64: 256, 128>}, {pipeline_mode = #tpu.pipeline_mode<synchronous>, transform_indices = @transform_18, window_bounds = array<i64: 1, 128>}, {pipeline_mode = #tpu.pipeline_mode<synchronous>, transform_indices = @transform_19, window_bounds = array<i64: 128, 10>}, {pipeline_mode = #tpu.pipeline_mode<synchronous>, transform_indices = @transform_20, window_bounds = array<i64: 1, 10>}, {transform_indices = @transform_21, window_bounds = array<i64: 1, 1, 10>}]} {
    %cst = arith.constant 0.000000e+00 : f32
    %0 = vector.broadcast %cst : f32 to vector<82x32xf32>
    %c0 = arith.constant 0 : index
    %c0_0 = arith.constant 0 : index
    %1 = vector.load %arg24[%c0, %c0_0] : memref<82x32xf32, #tpu.memory_space<vmem>>, vector<82x32xf32>
    tpu.vector_store %arg24[%c0, %c0_0], %0 {strides = array<i32>} : memref<82x32xf32, #tpu.memory_space<vmem>>, vector<82x32xf32>,
    %cst_1 = arith.constant 0.000000e+00 : f32
    %2 = vector.broadcast %cst_1 : f32 to vector<26x64xf32>
    %c0_2 = arith.constant 0 : index
    %c0_3 = arith.constant 0 : index
    %3 = vector.load %arg26[%c0_2, %c0_3] : memref<26x64xf32, #tpu.memory_space<vmem>>, vector<26x64xf32>
    tpu.vector_store %arg26[%c0_2, %c0_3], %2 {strides = array<i32>} : memref<26x64xf32, #tpu.memory_space<vmem>>, vector<26x64xf32>,
    %cst_4 = arith.constant 0.000000e+00 : f32
    %4 = vector.broadcast %cst_4 : f32 to vector<10x128xf32>
    %c0_5 = arith.constant 0 : index
    %c0_6 = arith.constant 0 : index
    %5 = vector.load %arg28[%c0_5, %c0_6] : memref<10x128xf32, #tpu.memory_space<vmem>>, vector<10x128xf32>
    tpu.vector_store %arg28[%c0_5, %c0_6], %4 {strides = array<i32>} : memref<10x128xf32, #tpu.memory_space<vmem>>, vector<10x128xf32>,
    %c0_7 = arith.constant 0 : index
    %c0_8 = arith.constant 0 : index
    %c0_9 = arith.constant 0 : index
    %6 = vector.load %arg1[%c0_7, %c0_8, %c0_9] : memref<1x256x27xf32, #tpu.memory_space<vmem>>, vector<1x256x27xf32>
    %7 = vector.shape_cast %6 : vector<1x256x27xf32> to vector<256x27xf32>
    %c0_10 = arith.constant 0 : index
    %c0_11 = arith.constant 0 : index
    %8 = vector.load %arg2[%c0_10, %c0_11] : memref<27x32xf32, #tpu.memory_space<vmem>>, vector<27x32xf32>
    %cst_12 = arith.constant dense<0.000000e+00> : vector<256x32xf32>
    %9 = tpu.matmul %7, %8, %cst_12 {dimension_numbers = #tpu.dot_dimension_numbers<[1], [0], [0], [1], [0, 0, 1, 1], [], []>} : vector<256x27xf32>, vector<27x32xf32>, vector<256x32xf32> -> vector<256x32xf32>
    %c0_13 = arith.constant 0 : index
    %c0_14 = arith.constant 0 : index
    %10 = vector.load %arg3[%c0_13, %c0_14] : memref<1x32xf32, #tpu.memory_space<vmem>>, vector<1x32xf32>
    %11 = vector.broadcast %10 : vector<1x32xf32> to vector<256x32xf32>
    %12 = arith.mulf %9, %11 : vector<256x32xf32>
    %c0_15 = arith.constant 0 : index
    %c0_16 = arith.constant 0 : index
    %13 = vector.load %arg4[%c0_15, %c0_16] : memref<1x32xf32, #tpu.memory_space<vmem>>, vector<1x32xf32>
    %14 = vector.broadcast %13 : vector<1x32xf32> to vector<256x32xf32>
    %15 = arith.addf %12, %14 : vector<256x32xf32>
    %cst_17 = arith.constant 0.000000e+00 : f32
    %16 = vector.broadcast %cst_17 : f32 to vector<256x32xf32>
    %17 = arith.maximumf %15, %16 : vector<256x32xf32>
    %c0_18 = arith.constant 0 : index
    %c0_19 = arith.constant 0 : index
    %18 = vector.load %arg23[%c0_18, %c0_19] : memref<256x32xf32, #tpu.memory_space<vmem>>, vector<256x32xf32>
    tpu.vector_store %arg23[%c0_18, %c0_19], %17 {strides = array<i32>} : memref<256x32xf32, #tpu.memory_space<vmem>>, vector<256x32xf32>,
    %c0_20 = arith.constant 0 : index
    %c0_21 = arith.constant 0 : index
    %19 = tpu.strided_load %arg23[%c0_20, %c0_21] {strides = array<i32: 2, 1>} : memref<256x32xf32, #tpu.memory_space<vmem>>, vector<8x32xf32>
    %c1 = arith.constant 1 : index
    %c0_22 = arith.constant 0 : index
    %20 = tpu.strided_load %arg23[%c1, %c0_22] {strides = array<i32: 2, 1>} : memref<256x32xf32, #tpu.memory_space<vmem>>, vector<8x32xf32>
    %21 = arith.maximumf %19, %20 : vector<8x32xf32>
    %c16 = arith.constant 16 : index
    %c0_23 = arith.constant 0 : index
    %22 = tpu.strided_load %arg23[%c16, %c0_23] {strides = array<i32: 2, 1>} : memref<256x32xf32, #tpu.memory_space<vmem>>, vector<8x32xf32>
    %c17 = arith.constant 17 : index
    %c0_24 = arith.constant 0 : index
    %23 = tpu.strided_load %arg23[%c17, %c0_24] {strides = array<i32: 2, 1>} : memref<256x32xf32, #tpu.memory_space<vmem>>, vector<8x32xf32>
    %24 = arith.maximumf %22, %23 : vector<8x32xf32>
    %25 = arith.maximumf %21, %24 : vector<8x32xf32>
    %c9 = arith.constant 9 : index
    %c0_25 = arith.constant 0 : index
    %26 = vector.load %arg24[%c9, %c0_25] : memref<82x32xf32, #tpu.memory_space<vmem>>, vector<8x32xf32>
    tpu.vector_store %arg24[%c9, %c0_25], %25 {strides = array<i32>} : memref<82x32xf32, #tpu.memory_space<vmem>>, vector<8x32xf32>,
    %c32 = arith.constant 32 : index
    %c0_26 = arith.constant 0 : index
    %27 = tpu.strided_load %arg23[%c32, %c0_26] {strides = array<i32: 2, 1>} : memref<256x32xf32, #tpu.memory_space<vmem>>, vector<8x32xf32>
    %c33 = arith.constant 33 : index
    %c0_27 = arith.constant 0 : index
    %28 = tpu.strided_load %arg23[%c33, %c0_27] {strides = array<i32: 2, 1>} : memref<256x32xf32, #tpu.memory_space<vmem>>, vector<8x32xf32>
    %29 = arith.maximumf %27, %28 : vector<8x32xf32>
    %c48 = arith.constant 48 : index
    %c0_28 = arith.constant 0 : index
    %30 = tpu.strided_load %arg23[%c48, %c0_28] {strides = array<i32: 2, 1>} : memref<256x32xf32, #tpu.memory_space<vmem>>, vector<8x32xf32>
    %c49 = arith.constant 49 : index
    %c0_29 = arith.constant 0 : index
    %31 = tpu.strided_load %arg23[%c49, %c0_29] {strides = array<i32: 2, 1>} : memref<256x32xf32, #tpu.memory_space<vmem>>, vector<8x32xf32>
    %32 = arith.maximumf %30, %31 : vector<8x32xf32>
    %33 = arith.maximumf %29, %32 : vector<8x32xf32>
    %c17_30 = arith.constant 17 : index
    %c0_31 = arith.constant 0 : index
    %34 = vector.load %arg24[%c17_30, %c0_31] : memref<82x32xf32, #tpu.memory_space<vmem>>, vector<8x32xf32>
    tpu.vector_store %arg24[%c17_30, %c0_31], %33 {strides = array<i32>} : memref<82x32xf32, #tpu.memory_space<vmem>>, vector<8x32xf32>,
    %c64 = arith.constant 64 : index
    %c0_32 = arith.constant 0 : index
    %35 = tpu.strided_load %arg23[%c64, %c0_32] {strides = array<i32: 2, 1>} : memref<256x32xf32, #tpu.memory_space<vmem>>, vector<8x32xf32>
    %c65 = arith.constant 65 : index
    %c0_33 = arith.constant 0 : index
    %36 = tpu.strided_load %arg23[%c65, %c0_33] {strides = array<i32: 2, 1>} : memref<256x32xf32, #tpu.memory_space<vmem>>, vector<8x32xf32>
    %37 = arith.maximumf %35, %36 : vector<8x32xf32>
    %c80 = arith.constant 80 : index
    %c0_34 = arith.constant 0 : index
    %38 = tpu.strided_load %arg23[%c80, %c0_34] {strides = array<i32: 2, 1>} : memref<256x32xf32, #tpu.memory_space<vmem>>, vector<8x32xf32>
    %c81 = arith.constant 81 : index
    %c0_35 = arith.constant 0 : index
    %39 = tpu.strided_load %arg23[%c81, %c0_35] {strides = array<i32: 2, 1>} : memref<256x32xf32, #tpu.memory_space<vmem>>, vector<8x32xf32>
    %40 = arith.maximumf %38, %39 : vector<8x32xf32>
    %41 = arith.maximumf %37, %40 : vector<8x32xf32>
    %c25 = arith.constant 25 : index
    %c0_36 = arith.constant 0 : index
    %42 = vector.load %arg24[%c25, %c0_36] : memref<82x32xf32, #tpu.memory_space<vmem>>, vector<8x32xf32>
    tpu.vector_store %arg24[%c25, %c0_36], %41 {strides = array<i32>} : memref<82x32xf32, #tpu.memory_space<vmem>>, vector<8x32xf32>,
    %c96 = arith.constant 96 : index
    %c0_37 = arith.constant 0 : index
    %43 = tpu.strided_load %arg23[%c96, %c0_37] {strides = array<i32: 2, 1>} : memref<256x32xf32, #tpu.memory_space<vmem>>, vector<8x32xf32>
    %c97 = arith.constant 97 : index
    %c0_38 = arith.constant 0 : index
    %44 = tpu.strided_load %arg23[%c97, %c0_38] {strides = array<i32: 2, 1>} : memref<256x32xf32, #tpu.memory_space<vmem>>, vector<8x32xf32>
    %45 = arith.maximumf %43, %44 : vector<8x32xf32>
    %c112 = arith.constant 112 : index
    %c0_39 = arith.constant 0 : index
    %46 = tpu.strided_load %arg23[%c112, %c0_39] {strides = array<i32: 2, 1>} : memref<256x32xf32, #tpu.memory_space<vmem>>, vector<8x32xf32>
    %c113 = arith.constant 113 : index
    %c0_40 = arith.constant 0 : index
    %47 = tpu.strided_load %arg23[%c113, %c0_40] {strides = array<i32: 2, 1>} : memref<256x32xf32, #tpu.memory_space<vmem>>, vector<8x32xf32>
    %48 = arith.maximumf %46, %47 : vector<8x32xf32>
    %49 = arith.maximumf %45, %48 : vector<8x32xf32>
    %c33_41 = arith.constant 33 : index
    %c0_42 = arith.constant 0 : index
    %50 = vector.load %arg24[%c33_41, %c0_42] : memref<82x32xf32, #tpu.memory_space<vmem>>, vector<8x32xf32>
    tpu.vector_store %arg24[%c33_41, %c0_42], %49 {strides = array<i32>} : memref<82x32xf32, #tpu.memory_space<vmem>>, vector<8x32xf32>,
    %c128 = arith.constant 128 : index
    %c0_43 = arith.constant 0 : index
    %51 = tpu.strided_load %arg23[%c128, %c0_43] {strides = array<i32: 2, 1>} : memref<256x32xf32, #tpu.memory_space<vmem>>, vector<8x32xf32>
    %c129 = arith.constant 129 : index
    %c0_44 = arith.constant 0 : index
    %52 = tpu.strided_load %arg23[%c129, %c0_44] {strides = array<i32: 2, 1>} : memref<256x32xf32, #tpu.memory_space<vmem>>, vector<8x32xf32>
    %53 = arith.maximumf %51, %52 : vector<8x32xf32>
    %c144 = arith.constant 144 : index
    %c0_45 = arith.constant 0 : index
    %54 = tpu.strided_load %arg23[%c144, %c0_45] {strides = array<i32: 2, 1>} : memref<256x32xf32, #tpu.memory_space<vmem>>, vector<8x32xf32>
    %c145 = arith.constant 145 : index
    %c0_46 = arith.constant 0 : index
    %55 = tpu.strided_load %arg23[%c145, %c0_46] {strides = array<i32: 2, 1>} : memref<256x32xf32, #tpu.memory_space<vmem>>, vector<8x32xf32>
    %56 = arith.maximumf %54, %55 : vector<8x32xf32>
    %57 = arith.maximumf %53, %56 : vector<8x32xf32>
    %c41 = arith.constant 41 : index
    %c0_47 = arith.constant 0 : index
    %58 = vector.load %arg24[%c41, %c0_47] : memref<82x32xf32, #tpu.memory_space<vmem>>, vector<8x32xf32>
    tpu.vector_store %arg24[%c41, %c0_47], %57 {strides = array<i32>} : memref<82x32xf32, #tpu.memory_space<vmem>>, vector<8x32xf32>,
    %c160 = arith.constant 160 : index
    %c0_48 = arith.constant 0 : index
    %59 = tpu.strided_load %arg23[%c160, %c0_48] {strides = array<i32: 2, 1>} : memref<256x32xf32, #tpu.memory_space<vmem>>, vector<8x32xf32>
    %c161 = arith.constant 161 : index
    %c0_49 = arith.constant 0 : index
    %60 = tpu.strided_load %arg23[%c161, %c0_49] {strides = array<i32: 2, 1>} : memref<256x32xf32, #tpu.memory_space<vmem>>, vector<8x32xf32>
    %61 = arith.maximumf %59, %60 : vector<8x32xf32>
    %c176 = arith.constant 176 : index
    %c0_50 = arith.constant 0 : index
    %62 = tpu.strided_load %arg23[%c176, %c0_50] {strides = array<i32: 2, 1>} : memref<256x32xf32, #tpu.memory_space<vmem>>, vector<8x32xf32>
    %c177 = arith.constant 177 : index
    %c0_51 = arith.constant 0 : index
    %63 = tpu.strided_load %arg23[%c177, %c0_51] {strides = array<i32: 2, 1>} : memref<256x32xf32, #tpu.memory_space<vmem>>, vector<8x32xf32>
    %64 = arith.maximumf %62, %63 : vector<8x32xf32>
    %65 = arith.maximumf %61, %64 : vector<8x32xf32>
    %c49_52 = arith.constant 49 : index
    %c0_53 = arith.constant 0 : index
    %66 = vector.load %arg24[%c49_52, %c0_53] : memref<82x32xf32, #tpu.memory_space<vmem>>, vector<8x32xf32>
    tpu.vector_store %arg24[%c49_52, %c0_53], %65 {strides = array<i32>} : memref<82x32xf32, #tpu.memory_space<vmem>>, vector<8x32xf32>,
    %c192 = arith.constant 192 : index
    %c0_54 = arith.constant 0 : index
    %67 = tpu.strided_load %arg23[%c192, %c0_54] {strides = array<i32: 2, 1>} : memref<256x32xf32, #tpu.memory_space<vmem>>, vector<8x32xf32>
    %c193 = arith.constant 193 : index
    %c0_55 = arith.constant 0 : index
    %68 = tpu.strided_load %arg23[%c193, %c0_55] {strides = array<i32: 2, 1>} : memref<256x32xf32, #tpu.memory_space<vmem>>, vector<8x32xf32>
    %69 = arith.maximumf %67, %68 : vector<8x32xf32>
    %c208 = arith.constant 208 : index
    %c0_56 = arith.constant 0 : index
    %70 = tpu.strided_load %arg23[%c208, %c0_56] {strides = array<i32: 2, 1>} : memref<256x32xf32, #tpu.memory_space<vmem>>, vector<8x32xf32>
    %c209 = arith.constant 209 : index
    %c0_57 = arith.constant 0 : index
    %71 = tpu.strided_load %arg23[%c209, %c0_57] {strides = array<i32: 2, 1>} : memref<256x32xf32, #tpu.memory_space<vmem>>, vector<8x32xf32>
    %72 = arith.maximumf %70, %71 : vector<8x32xf32>
    %73 = arith.maximumf %69, %72 : vector<8x32xf32>
    %c57 = arith.constant 57 : index
    %c0_58 = arith.constant 0 : index
    %74 = vector.load %arg24[%c57, %c0_58] : memref<82x32xf32, #tpu.memory_space<vmem>>, vector<8x32xf32>
    tpu.vector_store %arg24[%c57, %c0_58], %73 {strides = array<i32>} : memref<82x32xf32, #tpu.memory_space<vmem>>, vector<8x32xf32>,
    %c224 = arith.constant 224 : index
    %c0_59 = arith.constant 0 : index
    %75 = tpu.strided_load %arg23[%c224, %c0_59] {strides = array<i32: 2, 1>} : memref<256x32xf32, #tpu.memory_space<vmem>>, vector<8x32xf32>
    %c225 = arith.constant 225 : index
    %c0_60 = arith.constant 0 : index
    %76 = tpu.strided_load %arg23[%c225, %c0_60] {strides = array<i32: 2, 1>} : memref<256x32xf32, #tpu.memory_space<vmem>>, vector<8x32xf32>
    %77 = arith.maximumf %75, %76 : vector<8x32xf32>
    %c240 = arith.constant 240 : index
    %c0_61 = arith.constant 0 : index
    %78 = tpu.strided_load %arg23[%c240, %c0_61] {strides = array<i32: 2, 1>} : memref<256x32xf32, #tpu.memory_space<vmem>>, vector<8x32xf32>
    %c241 = arith.constant 241 : index
    %c0_62 = arith.constant 0 : index
    %79 = tpu.strided_load %arg23[%c241, %c0_62] {strides = array<i32: 2, 1>} : memref<256x32xf32, #tpu.memory_space<vmem>>, vector<8x32xf32>
    %80 = arith.maximumf %78, %79 : vector<8x32xf32>
    %81 = arith.maximumf %77, %80 : vector<8x32xf32>
    %c65_63 = arith.constant 65 : index
    %c0_64 = arith.constant 0 : index
    %82 = vector.load %arg24[%c65_63, %c0_64] : memref<82x32xf32, #tpu.memory_space<vmem>>, vector<8x32xf32>
    tpu.vector_store %arg24[%c65_63, %c0_64], %81 {strides = array<i32>} : memref<82x32xf32, #tpu.memory_space<vmem>>, vector<8x32xf32>,
    %83 = tpu.iota {dimensions = array<i32: 0>} : vector<64x1xi32>
    %c8_i32 = arith.constant 8 : i32
    %c0_i32 = arith.constant 0 : i32
    %84 = arith.cmpi eq, %c8_i32, %c0_i32 : i32
    %c1_i32 = arith.constant 1 : i32
    %85 = arith.select %84, %c1_i32, %c8_i32 : i32
    %86 = vector.broadcast %85 : i32 to vector<64x1xi32>
    %87 = arith.remsi %83, %86 : vector<64x1xi32>
    %c0_i32_65 = arith.constant 0 : i32
    %88 = vector.broadcast %c0_i32_65 : i32 to vector<64x1xi32>
    %89 = arith.cmpi ne, %87, %88 : vector<64x1xi32>
    %c0_i32_66 = arith.constant 0 : i32
    %90 = vector.broadcast %c0_i32_66 : i32 to vector<64x1xi32>
    %91 = arith.cmpi slt, %87, %90 : vector<64x1xi32>
    %c0_i32_67 = arith.constant 0 : i32
    %92 = arith.cmpi slt, %85, %c0_i32_67 : i32
    %93 = vector.broadcast %92 : i1 to vector<64x1xi1>
    %94 = vector.broadcast %93 : vector<64x1xi1> to vector<64x1xi1>
    %95 = arith.xori %91, %94 : vector<64x1xi1>
    %96 = arith.andi %95, %89 : vector<64x1xi1>
    %97 = vector.broadcast %85 : i32 to vector<64x1xi32>
    %98 = arith.addi %87, %97 : vector<64x1xi32>
    %99 = arith.select %96, %98, %87 : vector<64x1xi1>, vector<64x1xi32>
    %c0_i32_68 = arith.constant 0 : i32
    %100 = vector.broadcast %c0_i32_68 : i32 to vector<64x1xi32>
    %101 = arith.cmpi ne, %99, %100 : vector<64x1xi32>
    %102 = arith.extui %101 : vector<64x1xi1> to vector<64x1xi32>
    %103 = arith.sitofp %102 : vector<64x1xi32> to vector<64x1xf32>
    %c7_i32 = arith.constant 7 : i32
    %104 = vector.broadcast %c7_i32 : i32 to vector<64x1xi32>
    %105 = arith.cmpi ne, %99, %104 : vector<64x1xi32>
    %106 = arith.extui %105 : vector<64x1xi1> to vector<64x1xi32>
    %107 = arith.sitofp %106 : vector<64x1xi32> to vector<64x1xf32>
    %cst_69 = arith.constant 0.000000e+00 : f32
    %108 = vector.broadcast %cst_69 : f32 to vector<64x64xf32>
    %cst_70 = arith.constant 0.000000e+00 : f32
    %109 = vector.broadcast %cst_70 : f32 to vector<64x64xf32>
    %c0_71 = arith.constant 0 : index
    %c0_72 = arith.constant 0 : index
    %110 = vector.load %arg24[%c0_71, %c0_72] : memref<82x32xf32, #tpu.memory_space<vmem>>, vector<64x32xf32>
    %c0_73 = arith.constant 0 : index
    %c0_74 = arith.constant 0 : index
    %c0_75 = arith.constant 0 : index
    %111 = vector.load %arg5[%c0_73, %c0_74, %c0_75] : memref<9x32x64xf32, #tpu.memory_space<vmem>>, vector<1x32x64xf32>
    %112 = vector.shape_cast %111 : vector<1x32x64xf32> to vector<32x64xf32>
    %cst_76 = arith.constant dense<0.000000e+00> : vector<64x64xf32>
    %113 = tpu.matmul %110, %112, %cst_76 {dimension_numbers = #tpu.dot_dimension_numbers<[1], [0], [0], [1], [0, 0, 1, 1], [], []>} : vector<64x32xf32>, vector<32x64xf32>, vector<64x64xf32> -> vector<64x64xf32>
    %114 = arith.addf %109, %113 : vector<64x64xf32>
    %c8 = arith.constant 8 : index
    %c0_77 = arith.constant 0 : index
    %115 = vector.load %arg24[%c8, %c0_77] : memref<82x32xf32, #tpu.memory_space<vmem>>, vector<64x32xf32>
    %c3 = arith.constant 3 : index
    %c0_78 = arith.constant 0 : index
    %c0_79 = arith.constant 0 : index
    %116 = vector.load %arg5[%c3, %c0_78, %c0_79] : memref<9x32x64xf32, #tpu.memory_space<vmem>>, vector<1x32x64xf32>
    %117 = vector.shape_cast %116 : vector<1x32x64xf32> to vector<32x64xf32>
    %cst_80 = arith.constant dense<0.000000e+00> : vector<64x64xf32>
    %118 = tpu.matmul %115, %117, %cst_80 {dimension_numbers = #tpu.dot_dimension_numbers<[1], [0], [0], [1], [0, 0, 1, 1], [], []>} : vector<64x32xf32>, vector<32x64xf32>, vector<64x64xf32> -> vector<64x64xf32>
    %119 = arith.addf %114, %118 : vector<64x64xf32>
    %c16_81 = arith.constant 16 : index
    %c0_82 = arith.constant 0 : index
    %120 = vector.load %arg24[%c16_81, %c0_82] : memref<82x32xf32, #tpu.memory_space<vmem>>, vector<64x32xf32>
    %c6 = arith.constant 6 : index
    %c0_83 = arith.constant 0 : index
    %c0_84 = arith.constant 0 : index
    %121 = vector.load %arg5[%c6, %c0_83, %c0_84] : memref<9x32x64xf32, #tpu.memory_space<vmem>>, vector<1x32x64xf32>
    %122 = vector.shape_cast %121 : vector<1x32x64xf32> to vector<32x64xf32>
    %cst_85 = arith.constant dense<0.000000e+00> : vector<64x64xf32>
    %123 = tpu.matmul %120, %122, %cst_85 {dimension_numbers = #tpu.dot_dimension_numbers<[1], [0], [0], [1], [0, 0, 1, 1], [], []>} : vector<64x32xf32>, vector<32x64xf32>, vector<64x64xf32> -> vector<64x64xf32>
    %124 = arith.addf %119, %123 : vector<64x64xf32>
    %125 = vector.broadcast %103 : vector<64x1xf32> to vector<64x64xf32>
    %126 = arith.mulf %124, %125 : vector<64x64xf32>
    %127 = arith.addf %108, %126 : vector<64x64xf32>
    %cst_86 = arith.constant 0.000000e+00 : f32
    %128 = vector.broadcast %cst_86 : f32 to vector<64x64xf32>
    %c1_87 = arith.constant 1 : index
    %c0_88 = arith.constant 0 : index
    %129 = vector.load %arg24[%c1_87, %c0_88] : memref<82x32xf32, #tpu.memory_space<vmem>>, vector<64x32xf32>
    %c1_89 = arith.constant 1 : index
    %c0_90 = arith.constant 0 : index
    %c0_91 = arith.constant 0 : index
    %130 = vector.load %arg5[%c1_89, %c0_90, %c0_91] : memref<9x32x64xf32, #tpu.memory_space<vmem>>, vector<1x32x64xf32>
    %131 = vector.shape_cast %130 : vector<1x32x64xf32> to vector<32x64xf32>
    %cst_92 = arith.constant dense<0.000000e+00> : vector<64x64xf32>
    %132 = tpu.matmul %129, %131, %cst_92 {dimension_numbers = #tpu.dot_dimension_numbers<[1], [0], [0], [1], [0, 0, 1, 1], [], []>} : vector<64x32xf32>, vector<32x64xf32>, vector<64x64xf32> -> vector<64x64xf32>
    %133 = arith.addf %128, %132 : vector<64x64xf32>
    %c9_93 = arith.constant 9 : index
    %c0_94 = arith.constant 0 : index
    %134 = vector.load %arg24[%c9_93, %c0_94] : memref<82x32xf32, #tpu.memory_space<vmem>>, vector<64x32xf32>
    %c4 = arith.constant 4 : index
    %c0_95 = arith.constant 0 : index
    %c0_96 = arith.constant 0 : index
    %135 = vector.load %arg5[%c4, %c0_95, %c0_96] : memref<9x32x64xf32, #tpu.memory_space<vmem>>, vector<1x32x64xf32>
    %136 = vector.shape_cast %135 : vector<1x32x64xf32> to vector<32x64xf32>
    %cst_97 = arith.constant dense<0.000000e+00> : vector<64x64xf32>
    %137 = tpu.matmul %134, %136, %cst_97 {dimension_numbers = #tpu.dot_dimension_numbers<[1], [0], [0], [1], [0, 0, 1, 1], [], []>} : vector<64x32xf32>, vector<32x64xf32>, vector<64x64xf32> -> vector<64x64xf32>
    %138 = arith.addf %133, %137 : vector<64x64xf32>
    %c17_98 = arith.constant 17 : index
    %c0_99 = arith.constant 0 : index
    %139 = vector.load %arg24[%c17_98, %c0_99] : memref<82x32xf32, #tpu.memory_space<vmem>>, vector<64x32xf32>
    %c7 = arith.constant 7 : index
    %c0_100 = arith.constant 0 : index
    %c0_101 = arith.constant 0 : index
    %140 = vector.load %arg5[%c7, %c0_100, %c0_101] : memref<9x32x64xf32, #tpu.memory_space<vmem>>, vector<1x32x64xf32>
    %141 = vector.shape_cast %140 : vector<1x32x64xf32> to vector<32x64xf32>
    %cst_102 = arith.constant dense<0.000000e+00> : vector<64x64xf32>
    %142 = tpu.matmul %139, %141, %cst_102 {dimension_numbers = #tpu.dot_dimension_numbers<[1], [0], [0], [1], [0, 0, 1, 1], [], []>} : vector<64x32xf32>, vector<32x64xf32>, vector<64x64xf32> -> vector<64x64xf32>
    %143 = arith.addf %138, %142 : vector<64x64xf32>
    %144 = arith.addf %127, %143 : vector<64x64xf32>
    %cst_103 = arith.constant 0.000000e+00 : f32
    %145 = vector.broadcast %cst_103 : f32 to vector<64x64xf32>
    %c2 = arith.constant 2 : index
    %c0_104 = arith.constant 0 : index
    %146 = vector.load %arg24[%c2, %c0_104] : memref<82x32xf32, #tpu.memory_space<vmem>>, vector<64x32xf32>
    %c2_105 = arith.constant 2 : index
    %c0_106 = arith.constant 0 : index
    %c0_107 = arith.constant 0 : index
    %147 = vector.load %arg5[%c2_105, %c0_106, %c0_107] : memref<9x32x64xf32, #tpu.memory_space<vmem>>, vector<1x32x64xf32>
    %148 = vector.shape_cast %147 : vector<1x32x64xf32> to vector<32x64xf32>
    %cst_108 = arith.constant dense<0.000000e+00> : vector<64x64xf32>
    %149 = tpu.matmul %146, %148, %cst_108 {dimension_numbers = #tpu.dot_dimension_numbers<[1], [0], [0], [1], [0, 0, 1, 1], [], []>} : vector<64x32xf32>, vector<32x64xf32>, vector<64x64xf32> -> vector<64x64xf32>
    %150 = arith.addf %145, %149 : vector<64x64xf32>
    %c10 = arith.constant 10 : index
    %c0_109 = arith.constant 0 : index
    %151 = vector.load %arg24[%c10, %c0_109] : memref<82x32xf32, #tpu.memory_space<vmem>>, vector<64x32xf32>
    %c5 = arith.constant 5 : index
    %c0_110 = arith.constant 0 : index
    %c0_111 = arith.constant 0 : index
    %152 = vector.load %arg5[%c5, %c0_110, %c0_111] : memref<9x32x64xf32, #tpu.memory_space<vmem>>, vector<1x32x64xf32>
    %153 = vector.shape_cast %152 : vector<1x32x64xf32> to vector<32x64xf32>
    %cst_112 = arith.constant dense<0.000000e+00> : vector<64x64xf32>
    %154 = tpu.matmul %151, %153, %cst_112 {dimension_numbers = #tpu.dot_dimension_numbers<[1], [0], [0], [1], [0, 0, 1, 1], [], []>} : vector<64x32xf32>, vector<32x64xf32>, vector<64x64xf32> -> vector<64x64xf32>
    %155 = arith.addf %150, %154 : vector<64x64xf32>
    %c18 = arith.constant 18 : index
    %c0_113 = arith.constant 0 : index
    %156 = vector.load %arg24[%c18, %c0_113] : memref<82x32xf32, #tpu.memory_space<vmem>>, vector<64x32xf32>
    %c8_114 = arith.constant 8 : index
    %c0_115 = arith.constant 0 : index
    %c0_116 = arith.constant 0 : index
    %157 = vector.load %arg5[%c8_114, %c0_115, %c0_116] : memref<9x32x64xf32, #tpu.memory_space<vmem>>, vector<1x32x64xf32>
    %158 = vector.shape_cast %157 : vector<1x32x64xf32> to vector<32x64xf32>
    %cst_117 = arith.constant dense<0.000000e+00> : vector<64x64xf32>
    %159 = tpu.matmul %156, %158, %cst_117 {dimension_numbers = #tpu.dot_dimension_numbers<[1], [0], [0], [1], [0, 0, 1, 1], [], []>} : vector<64x32xf32>, vector<32x64xf32>, vector<64x64xf32> -> vector<64x64xf32>
    %160 = arith.addf %155, %159 : vector<64x64xf32>
    %161 = vector.broadcast %107 : vector<64x1xf32> to vector<64x64xf32>
    %162 = arith.mulf %160, %161 : vector<64x64xf32>
    %163 = arith.addf %144, %162 : vector<64x64xf32>
    %c0_118 = arith.constant 0 : index
    %c0_119 = arith.constant 0 : index
    %164 = vector.load %arg6[%c0_118, %c0_119] : memref<1x64xf32, #tpu.memory_space<vmem>>, vector<1x64xf32>
    %165 = vector.broadcast %164 : vector<1x64xf32> to vector<64x64xf32>
    %166 = arith.mulf %163, %165 : vector<64x64xf32>
    %c0_120 = arith.constant 0 : index
    %c0_121 = arith.constant 0 : index
    %167 = vector.load %arg7[%c0_120, %c0_121] : memref<1x64xf32, #tpu.memory_space<vmem>>, vector<1x64xf32>
    %168 = vector.broadcast %167 : vector<1x64xf32> to vector<64x64xf32>
    %169 = arith.addf %166, %168 : vector<64x64xf32>
    %cst_122 = arith.constant 0.000000e+00 : f32
    %170 = vector.broadcast %cst_122 : f32 to vector<64x64xf32>
    %171 = arith.maximumf %169, %170 : vector<64x64xf32>
    %c0_123 = arith.constant 0 : index
    %c0_124 = arith.constant 0 : index
    %172 = vector.load %arg25[%c0_123, %c0_124] : memref<64x64xf32, #tpu.memory_space<vmem>>, vector<64x64xf32>
    tpu.vector_store %arg25[%c0_123, %c0_124], %171 {strides = array<i32>} : memref<64x64xf32, #tpu.memory_space<vmem>>, vector<64x64xf32>,
    %c0_125 = arith.constant 0 : index
    %c0_126 = arith.constant 0 : index
    %173 = tpu.strided_load %arg25[%c0_125, %c0_126] {strides = array<i32: 2, 1>} : memref<64x64xf32, #tpu.memory_space<vmem>>, vector<4x64xf32>
    %c1_127 = arith.constant 1 : index
    %c0_128 = arith.constant 0 : index
    %174 = tpu.strided_load %arg25[%c1_127, %c0_128] {strides = array<i32: 2, 1>} : memref<64x64xf32, #tpu.memory_space<vmem>>, vector<4x64xf32>
    %175 = arith.maximumf %173, %174 : vector<4x64xf32>
    %c8_129 = arith.constant 8 : index
    %c0_130 = arith.constant 0 : index
    %176 = tpu.strided_load %arg25[%c8_129, %c0_130] {strides = array<i32: 2, 1>} : memref<64x64xf32, #tpu.memory_space<vmem>>, vector<4x64xf32>
    %c9_131 = arith.constant 9 : index
    %c0_132 = arith.constant 0 : index
    %177 = tpu.strided_load %arg25[%c9_131, %c0_132] {strides = array<i32: 2, 1>} : memref<64x64xf32, #tpu.memory_space<vmem>>, vector<4x64xf32>
    %178 = arith.maximumf %176, %177 : vector<4x64xf32>
    %179 = arith.maximumf %175, %178 : vector<4x64xf32>
    %c5_133 = arith.constant 5 : index
    %c0_134 = arith.constant 0 : index
    %180 = vector.load %arg26[%c5_133, %c0_134] : memref<26x64xf32, #tpu.memory_space<vmem>>, vector<4x64xf32>
    tpu.vector_store %arg26[%c5_133, %c0_134], %179 {strides = array<i32>} : memref<26x64xf32, #tpu.memory_space<vmem>>, vector<4x64xf32>,
    %c16_135 = arith.constant 16 : index
    %c0_136 = arith.constant 0 : index
    %181 = tpu.strided_load %arg25[%c16_135, %c0_136] {strides = array<i32: 2, 1>} : memref<64x64xf32, #tpu.memory_space<vmem>>, vector<4x64xf32>
    %c17_137 = arith.constant 17 : index
    %c0_138 = arith.constant 0 : index
    %182 = tpu.strided_load %arg25[%c17_137, %c0_138] {strides = array<i32: 2, 1>} : memref<64x64xf32, #tpu.memory_space<vmem>>, vector<4x64xf32>
    %183 = arith.maximumf %181, %182 : vector<4x64xf32>
    %c24 = arith.constant 24 : index
    %c0_139 = arith.constant 0 : index
    %184 = tpu.strided_load %arg25[%c24, %c0_139] {strides = array<i32: 2, 1>} : memref<64x64xf32, #tpu.memory_space<vmem>>, vector<4x64xf32>
    %c25_140 = arith.constant 25 : index
    %c0_141 = arith.constant 0 : index
    %185 = tpu.strided_load %arg25[%c25_140, %c0_141] {strides = array<i32: 2, 1>} : memref<64x64xf32, #tpu.memory_space<vmem>>, vector<4x64xf32>
    %186 = arith.maximumf %184, %185 : vector<4x64xf32>
    %187 = arith.maximumf %183, %186 : vector<4x64xf32>
    %c9_142 = arith.constant 9 : index
    %c0_143 = arith.constant 0 : index
    %188 = vector.load %arg26[%c9_142, %c0_143] : memref<26x64xf32, #tpu.memory_space<vmem>>, vector<4x64xf32>
    tpu.vector_store %arg26[%c9_142, %c0_143], %187 {strides = array<i32>} : memref<26x64xf32, #tpu.memory_space<vmem>>, vector<4x64xf32>,
    %c32_144 = arith.constant 32 : index
    %c0_145 = arith.constant 0 : index
    %189 = tpu.strided_load %arg25[%c32_144, %c0_145] {strides = array<i32: 2, 1>} : memref<64x64xf32, #tpu.memory_space<vmem>>, vector<4x64xf32>
    %c33_146 = arith.constant 33 : index
    %c0_147 = arith.constant 0 : index
    %190 = tpu.strided_load %arg25[%c33_146, %c0_147] {strides = array<i32: 2, 1>} : memref<64x64xf32, #tpu.memory_space<vmem>>, vector<4x64xf32>
    %191 = arith.maximumf %189, %190 : vector<4x64xf32>
    %c40 = arith.constant 40 : index
    %c0_148 = arith.constant 0 : index
    %192 = tpu.strided_load %arg25[%c40, %c0_148] {strides = array<i32: 2, 1>} : memref<64x64xf32, #tpu.memory_space<vmem>>, vector<4x64xf32>
    %c41_149 = arith.constant 41 : index
    %c0_150 = arith.constant 0 : index
    %193 = tpu.strided_load %arg25[%c41_149, %c0_150] {strides = array<i32: 2, 1>} : memref<64x64xf32, #tpu.memory_space<vmem>>, vector<4x64xf32>
    %194 = arith.maximumf %192, %193 : vector<4x64xf32>
    %195 = arith.maximumf %191, %194 : vector<4x64xf32>
    %c13 = arith.constant 13 : index
    %c0_151 = arith.constant 0 : index
    %196 = vector.load %arg26[%c13, %c0_151] : memref<26x64xf32, #tpu.memory_space<vmem>>, vector<4x64xf32>
    tpu.vector_store %arg26[%c13, %c0_151], %195 {strides = array<i32>} : memref<26x64xf32, #tpu.memory_space<vmem>>, vector<4x64xf32>,
    %c48_152 = arith.constant 48 : index
    %c0_153 = arith.constant 0 : index
    %197 = tpu.strided_load %arg25[%c48_152, %c0_153] {strides = array<i32: 2, 1>} : memref<64x64xf32, #tpu.memory_space<vmem>>, vector<4x64xf32>
    %c49_154 = arith.constant 49 : index
    %c0_155 = arith.constant 0 : index
    %198 = tpu.strided_load %arg25[%c49_154, %c0_155] {strides = array<i32: 2, 1>} : memref<64x64xf32, #tpu.memory_space<vmem>>, vector<4x64xf32>
    %199 = arith.maximumf %197, %198 : vector<4x64xf32>
    %c56 = arith.constant 56 : index
    %c0_156 = arith.constant 0 : index
    %200 = tpu.strided_load %arg25[%c56, %c0_156] {strides = array<i32: 2, 1>} : memref<64x64xf32, #tpu.memory_space<vmem>>, vector<4x64xf32>
    %c57_157 = arith.constant 57 : index
    %c0_158 = arith.constant 0 : index
    %201 = tpu.strided_load %arg25[%c57_157, %c0_158] {strides = array<i32: 2, 1>} : memref<64x64xf32, #tpu.memory_space<vmem>>, vector<4x64xf32>
    %202 = arith.maximumf %200, %201 : vector<4x64xf32>
    %203 = arith.maximumf %199, %202 : vector<4x64xf32>
    %c17_159 = arith.constant 17 : index
    %c0_160 = arith.constant 0 : index
    %204 = vector.load %arg26[%c17_159, %c0_160] : memref<26x64xf32, #tpu.memory_space<vmem>>, vector<4x64xf32>
    tpu.vector_store %arg26[%c17_159, %c0_160], %203 {strides = array<i32>} : memref<26x64xf32, #tpu.memory_space<vmem>>, vector<4x64xf32>,
    %205 = tpu.iota {dimensions = array<i32: 0>} : vector<16x1xi32>
    %c4_i32 = arith.constant 4 : i32
    %c0_i32_161 = arith.constant 0 : i32
    %206 = arith.cmpi eq, %c4_i32, %c0_i32_161 : i32
    %c1_i32_162 = arith.constant 1 : i32
    %207 = arith.select %206, %c1_i32_162, %c4_i32 : i32
    %208 = vector.broadcast %207 : i32 to vector<16x1xi32>
    %209 = arith.remsi %205, %208 : vector<16x1xi32>
    %c0_i32_163 = arith.constant 0 : i32
    %210 = vector.broadcast %c0_i32_163 : i32 to vector<16x1xi32>
    %211 = arith.cmpi ne, %209, %210 : vector<16x1xi32>
    %c0_i32_164 = arith.constant 0 : i32
    %212 = vector.broadcast %c0_i32_164 : i32 to vector<16x1xi32>
    %213 = arith.cmpi slt, %209, %212 : vector<16x1xi32>
    %c0_i32_165 = arith.constant 0 : i32
    %214 = arith.cmpi slt, %207, %c0_i32_165 : i32
    %215 = vector.broadcast %214 : i1 to vector<16x1xi1>
    %216 = vector.broadcast %215 : vector<16x1xi1> to vector<16x1xi1>
    %217 = arith.xori %213, %216 : vector<16x1xi1>
    %218 = arith.andi %217, %211 : vector<16x1xi1>
    %219 = vector.broadcast %207 : i32 to vector<16x1xi32>
    %220 = arith.addi %209, %219 : vector<16x1xi32>
    %221 = arith.select %218, %220, %209 : vector<16x1xi1>, vector<16x1xi32>
    %c0_i32_166 = arith.constant 0 : i32
    %222 = vector.broadcast %c0_i32_166 : i32 to vector<16x1xi32>
    %223 = arith.cmpi ne, %221, %222 : vector<16x1xi32>
    %224 = arith.extui %223 : vector<16x1xi1> to vector<16x1xi32>
    %225 = arith.sitofp %224 : vector<16x1xi32> to vector<16x1xf32>
    %c3_i32 = arith.constant 3 : i32
    %226 = vector.broadcast %c3_i32 : i32 to vector<16x1xi32>
    %227 = arith.cmpi ne, %221, %226 : vector<16x1xi32>
    %228 = arith.extui %227 : vector<16x1xi1> to vector<16x1xi32>
    %229 = arith.sitofp %228 : vector<16x1xi32> to vector<16x1xf32>
    %cst_167 = arith.constant 0.000000e+00 : f32
    %230 = vector.broadcast %cst_167 : f32 to vector<16x128xf32>
    %cst_168 = arith.constant 0.000000e+00 : f32
    %231 = vector.broadcast %cst_168 : f32 to vector<16x128xf32>
    %c0_169 = arith.constant 0 : index
    %c0_170 = arith.constant 0 : index
    %232 = vector.load %arg26[%c0_169, %c0_170] : memref<26x64xf32, #tpu.memory_space<vmem>>, vector<16x64xf32>
    %c0_171 = arith.constant 0 : index
    %c0_172 = arith.constant 0 : index
    %c0_173 = arith.constant 0 : index
    %233 = vector.load %arg8[%c0_171, %c0_172, %c0_173] : memref<9x64x128xf32, #tpu.memory_space<vmem>>, vector<1x64x128xf32>
    %234 = vector.shape_cast %233 : vector<1x64x128xf32> to vector<64x128xf32>
    %cst_174 = arith.constant dense<0.000000e+00> : vector<16x128xf32>
    %235 = tpu.matmul %232, %234, %cst_174 {dimension_numbers = #tpu.dot_dimension_numbers<[1], [0], [0], [1], [0, 0, 1, 1], [], []>} : vector<16x64xf32>, vector<64x128xf32>, vector<16x128xf32> -> vector<16x128xf32>
    %236 = arith.addf %231, %235 : vector<16x128xf32>
    %c4_175 = arith.constant 4 : index
    %c0_176 = arith.constant 0 : index
    %237 = vector.load %arg26[%c4_175, %c0_176] : memref<26x64xf32, #tpu.memory_space<vmem>>, vector<16x64xf32>
    %c3_177 = arith.constant 3 : index
    %c0_178 = arith.constant 0 : index
    %c0_179 = arith.constant 0 : index
    %238 = vector.load %arg8[%c3_177, %c0_178, %c0_179] : memref<9x64x128xf32, #tpu.memory_space<vmem>>, vector<1x64x128xf32>
    %239 = vector.shape_cast %238 : vector<1x64x128xf32> to vector<64x128xf32>
    %cst_180 = arith.constant dense<0.000000e+00> : vector<16x128xf32>
    %240 = tpu.matmul %237, %239, %cst_180 {dimension_numbers = #tpu.dot_dimension_numbers<[1], [0], [0], [1], [0, 0, 1, 1], [], []>} : vector<16x64xf32>, vector<64x128xf32>, vector<16x128xf32> -> vector<16x128xf32>
    %241 = arith.addf %236, %240 : vector<16x128xf32>
    %c8_181 = arith.constant 8 : index
    %c0_182 = arith.constant 0 : index
    %242 = vector.load %arg26[%c8_181, %c0_182] : memref<26x64xf32, #tpu.memory_space<vmem>>, vector<16x64xf32>
    %c6_183 = arith.constant 6 : index
    %c0_184 = arith.constant 0 : index
    %c0_185 = arith.constant 0 : index
    %243 = vector.load %arg8[%c6_183, %c0_184, %c0_185] : memref<9x64x128xf32, #tpu.memory_space<vmem>>, vector<1x64x128xf32>
    %244 = vector.shape_cast %243 : vector<1x64x128xf32> to vector<64x128xf32>
    %cst_186 = arith.constant dense<0.000000e+00> : vector<16x128xf32>
    %245 = tpu.matmul %242, %244, %cst_186 {dimension_numbers = #tpu.dot_dimension_numbers<[1], [0], [0], [1], [0, 0, 1, 1], [], []>} : vector<16x64xf32>, vector<64x128xf32>, vector<16x128xf32> -> vector<16x128xf32>
    %246 = arith.addf %241, %245 : vector<16x128xf32>
    %247 = vector.broadcast %225 : vector<16x1xf32> to vector<16x128xf32>
    %248 = arith.mulf %246, %247 : vector<16x128xf32>
    %249 = arith.addf %230, %248 : vector<16x128xf32>
    %cst_187 = arith.constant 0.000000e+00 : f32
    %250 = vector.broadcast %cst_187 : f32 to vector<16x128xf32>
    %c1_188 = arith.constant 1 : index
    %c0_189 = arith.constant 0 : index
    %251 = vector.load %arg26[%c1_188, %c0_189] : memref<26x64xf32, #tpu.memory_space<vmem>>, vector<16x64xf32>
    %c1_190 = arith.constant 1 : index
    %c0_191 = arith.constant 0 : index
    %c0_192 = arith.constant 0 : index
    %252 = vector.load %arg8[%c1_190, %c0_191, %c0_192] : memref<9x64x128xf32, #tpu.memory_space<vmem>>, vector<1x64x128xf32>
    %253 = vector.shape_cast %252 : vector<1x64x128xf32> to vector<64x128xf32>
    %cst_193 = arith.constant dense<0.000000e+00> : vector<16x128xf32>
    %254 = tpu.matmul %251, %253, %cst_193 {dimension_numbers = #tpu.dot_dimension_numbers<[1], [0], [0], [1], [0, 0, 1, 1], [], []>} : vector<16x64xf32>, vector<64x128xf32>, vector<16x128xf32> -> vector<16x128xf32>
    %255 = arith.addf %250, %254 : vector<16x128xf32>
    %c5_194 = arith.constant 5 : index
    %c0_195 = arith.constant 0 : index
    %256 = vector.load %arg26[%c5_194, %c0_195] : memref<26x64xf32, #tpu.memory_space<vmem>>, vector<16x64xf32>
    %c4_196 = arith.constant 4 : index
    %c0_197 = arith.constant 0 : index
    %c0_198 = arith.constant 0 : index
    %257 = vector.load %arg8[%c4_196, %c0_197, %c0_198] : memref<9x64x128xf32, #tpu.memory_space<vmem>>, vector<1x64x128xf32>
    %258 = vector.shape_cast %257 : vector<1x64x128xf32> to vector<64x128xf32>
    %cst_199 = arith.constant dense<0.000000e+00> : vector<16x128xf32>
    %259 = tpu.matmul %256, %258, %cst_199 {dimension_numbers = #tpu.dot_dimension_numbers<[1], [0], [0], [1], [0, 0, 1, 1], [], []>} : vector<16x64xf32>, vector<64x128xf32>, vector<16x128xf32> -> vector<16x128xf32>
    %260 = arith.addf %255, %259 : vector<16x128xf32>
    %c9_200 = arith.constant 9 : index
    %c0_201 = arith.constant 0 : index
    %261 = vector.load %arg26[%c9_200, %c0_201] : memref<26x64xf32, #tpu.memory_space<vmem>>, vector<16x64xf32>
    %c7_202 = arith.constant 7 : index
    %c0_203 = arith.constant 0 : index
    %c0_204 = arith.constant 0 : index
    %262 = vector.load %arg8[%c7_202, %c0_203, %c0_204] : memref<9x64x128xf32, #tpu.memory_space<vmem>>, vector<1x64x128xf32>
    %263 = vector.shape_cast %262 : vector<1x64x128xf32> to vector<64x128xf32>
    %cst_205 = arith.constant dense<0.000000e+00> : vector<16x128xf32>
    %264 = tpu.matmul %261, %263, %cst_205 {dimension_numbers = #tpu.dot_dimension_numbers<[1], [0], [0], [1], [0, 0, 1, 1], [], []>} : vector<16x64xf32>, vector<64x128xf32>, vector<16x128xf32> -> vector<16x128xf32>
    %265 = arith.addf %260, %264 : vector<16x128xf32>
    %266 = arith.addf %249, %265 : vector<16x128xf32>
    %cst_206 = arith.constant 0.000000e+00 : f32
    %267 = vector.broadcast %cst_206 : f32 to vector<16x128xf32>
    %c2_207 = arith.constant 2 : index
    %c0_208 = arith.constant 0 : index
    %268 = vector.load %arg26[%c2_207, %c0_208] : memref<26x64xf32, #tpu.memory_space<vmem>>, vector<16x64xf32>
    %c2_209 = arith.constant 2 : index
    %c0_210 = arith.constant 0 : index
    %c0_211 = arith.constant 0 : index
    %269 = vector.load %arg8[%c2_209, %c0_210, %c0_211] : memref<9x64x128xf32, #tpu.memory_space<vmem>>, vector<1x64x128xf32>
    %270 = vector.shape_cast %269 : vector<1x64x128xf32> to vector<64x128xf32>
    %cst_212 = arith.constant dense<0.000000e+00> : vector<16x128xf32>
    %271 = tpu.matmul %268, %270, %cst_212 {dimension_numbers = #tpu.dot_dimension_numbers<[1], [0], [0], [1], [0, 0, 1, 1], [], []>} : vector<16x64xf32>, vector<64x128xf32>, vector<16x128xf32> -> vector<16x128xf32>
    %272 = arith.addf %267, %271 : vector<16x128xf32>
    %c6_213 = arith.constant 6 : index
    %c0_214 = arith.constant 0 : index
    %273 = vector.load %arg26[%c6_213, %c0_214] : memref<26x64xf32, #tpu.memory_space<vmem>>, vector<16x64xf32>
    %c5_215 = arith.constant 5 : index
    %c0_216 = arith.constant 0 : index
    %c0_217 = arith.constant 0 : index
    %274 = vector.load %arg8[%c5_215, %c0_216, %c0_217] : memref<9x64x128xf32, #tpu.memory_space<vmem>>, vector<1x64x128xf32>
    %275 = vector.shape_cast %274 : vector<1x64x128xf32> to vector<64x128xf32>
    %cst_218 = arith.constant dense<0.000000e+00> : vector<16x128xf32>
    %276 = tpu.matmul %273, %275, %cst_218 {dimension_numbers = #tpu.dot_dimension_numbers<[1], [0], [0], [1], [0, 0, 1, 1], [], []>} : vector<16x64xf32>, vector<64x128xf32>, vector<16x128xf32> -> vector<16x128xf32>
    %277 = arith.addf %272, %276 : vector<16x128xf32>
    %c10_219 = arith.constant 10 : index
    %c0_220 = arith.constant 0 : index
    %278 = vector.load %arg26[%c10_219, %c0_220] : memref<26x64xf32, #tpu.memory_space<vmem>>, vector<16x64xf32>
    %c8_221 = arith.constant 8 : index
    %c0_222 = arith.constant 0 : index
    %c0_223 = arith.constant 0 : index
    %279 = vector.load %arg8[%c8_221, %c0_222, %c0_223] : memref<9x64x128xf32, #tpu.memory_space<vmem>>, vector<1x64x128xf32>
    %280 = vector.shape_cast %279 : vector<1x64x128xf32> to vector<64x128xf32>
    %cst_224 = arith.constant dense<0.000000e+00> : vector<16x128xf32>
    %281 = tpu.matmul %278, %280, %cst_224 {dimension_numbers = #tpu.dot_dimension_numbers<[1], [0], [0], [1], [0, 0, 1, 1], [], []>} : vector<16x64xf32>, vector<64x128xf32>, vector<16x128xf32> -> vector<16x128xf32>
    %282 = arith.addf %277, %281 : vector<16x128xf32>
    %283 = vector.broadcast %229 : vector<16x1xf32> to vector<16x128xf32>
    %284 = arith.mulf %282, %283 : vector<16x128xf32>
    %285 = arith.addf %266, %284 : vector<16x128xf32>
    %c0_225 = arith.constant 0 : index
    %c0_226 = arith.constant 0 : index
    %286 = vector.load %arg9[%c0_225, %c0_226] : memref<1x128xf32, #tpu.memory_space<vmem>>, vector<1x128xf32>
    %287 = vector.broadcast %286 : vector<1x128xf32> to vector<16x128xf32>
    %288 = arith.mulf %285, %287 : vector<16x128xf32>
    %c0_227 = arith.constant 0 : index
    %c0_228 = arith.constant 0 : index
    %289 = vector.load %arg10[%c0_227, %c0_228] : memref<1x128xf32, #tpu.memory_space<vmem>>, vector<1x128xf32>
    %290 = vector.broadcast %289 : vector<1x128xf32> to vector<16x128xf32>
    %291 = arith.addf %288, %290 : vector<16x128xf32>
    %cst_229 = arith.constant 0.000000e+00 : f32
    %292 = vector.broadcast %cst_229 : f32 to vector<16x128xf32>
    %293 = arith.maximumf %291, %292 : vector<16x128xf32>
    %c0_230 = arith.constant 0 : index
    %c0_231 = arith.constant 0 : index
    %294 = vector.load %arg27[%c0_230, %c0_231] : memref<16x128xf32, #tpu.memory_space<vmem>>, vector<16x128xf32>
    tpu.vector_store %arg27[%c0_230, %c0_231], %293 {strides = array<i32>} : memref<16x128xf32, #tpu.memory_space<vmem>>, vector<16x128xf32>,
    %c0_232 = arith.constant 0 : index
    %c0_233 = arith.constant 0 : index
    %295 = tpu.strided_load %arg27[%c0_232, %c0_233] {strides = array<i32: 2, 1>} : memref<16x128xf32, #tpu.memory_space<vmem>>, vector<2x128xf32>
    %c1_234 = arith.constant 1 : index
    %c0_235 = arith.constant 0 : index
    %296 = tpu.strided_load %arg27[%c1_234, %c0_235] {strides = array<i32: 2, 1>} : memref<16x128xf32, #tpu.memory_space<vmem>>, vector<2x128xf32>
    %297 = arith.maximumf %295, %296 : vector<2x128xf32>
    %c4_236 = arith.constant 4 : index
    %c0_237 = arith.constant 0 : index
    %298 = tpu.strided_load %arg27[%c4_236, %c0_237] {strides = array<i32: 2, 1>} : memref<16x128xf32, #tpu.memory_space<vmem>>, vector<2x128xf32>
    %c5_238 = arith.constant 5 : index
    %c0_239 = arith.constant 0 : index
    %299 = tpu.strided_load %arg27[%c5_238, %c0_239] {strides = array<i32: 2, 1>} : memref<16x128xf32, #tpu.memory_space<vmem>>, vector<2x128xf32>
    %300 = arith.maximumf %298, %299 : vector<2x128xf32>
    %301 = arith.maximumf %297, %300 : vector<2x128xf32>
    %c3_240 = arith.constant 3 : index
    %c0_241 = arith.constant 0 : index
    %302 = vector.load %arg28[%c3_240, %c0_241] : memref<10x128xf32, #tpu.memory_space<vmem>>, vector<2x128xf32>
    tpu.vector_store %arg28[%c3_240, %c0_241], %301 {strides = array<i32>} : memref<10x128xf32, #tpu.memory_space<vmem>>, vector<2x128xf32>,
    %c8_242 = arith.constant 8 : index
    %c0_243 = arith.constant 0 : index
    %303 = tpu.strided_load %arg27[%c8_242, %c0_243] {strides = array<i32: 2, 1>} : memref<16x128xf32, #tpu.memory_space<vmem>>, vector<2x128xf32>
    %c9_244 = arith.constant 9 : index
    %c0_245 = arith.constant 0 : index
    %304 = tpu.strided_load %arg27[%c9_244, %c0_245] {strides = array<i32: 2, 1>} : memref<16x128xf32, #tpu.memory_space<vmem>>, vector<2x128xf32>
    %305 = arith.maximumf %303, %304 : vector<2x128xf32>
    %c12 = arith.constant 12 : index
    %c0_246 = arith.constant 0 : index
    %306 = tpu.strided_load %arg27[%c12, %c0_246] {strides = array<i32: 2, 1>} : memref<16x128xf32, #tpu.memory_space<vmem>>, vector<2x128xf32>
    %c13_247 = arith.constant 13 : index
    %c0_248 = arith.constant 0 : index
    %307 = tpu.strided_load %arg27[%c13_247, %c0_248] {strides = array<i32: 2, 1>} : memref<16x128xf32, #tpu.memory_space<vmem>>, vector<2x128xf32>
    %308 = arith.maximumf %306, %307 : vector<2x128xf32>
    %309 = arith.maximumf %305, %308 : vector<2x128xf32>
    %c5_249 = arith.constant 5 : index
    %c0_250 = arith.constant 0 : index
    %310 = vector.load %arg28[%c5_249, %c0_250] : memref<10x128xf32, #tpu.memory_space<vmem>>, vector<2x128xf32>
    tpu.vector_store %arg28[%c5_249, %c0_250], %309 {strides = array<i32>} : memref<10x128xf32, #tpu.memory_space<vmem>>, vector<2x128xf32>,
    %311 = tpu.iota {dimensions = array<i32: 0>} : vector<4x1xi32>
    %c2_i32 = arith.constant 2 : i32
    %c0_i32_251 = arith.constant 0 : i32
    %312 = arith.cmpi eq, %c2_i32, %c0_i32_251 : i32
    %c1_i32_252 = arith.constant 1 : i32
    %313 = arith.select %312, %c1_i32_252, %c2_i32 : i32
    %314 = vector.broadcast %313 : i32 to vector<4x1xi32>
    %315 = arith.remsi %311, %314 : vector<4x1xi32>
    %c0_i32_253 = arith.constant 0 : i32
    %316 = vector.broadcast %c0_i32_253 : i32 to vector<4x1xi32>
    %317 = arith.cmpi ne, %315, %316 : vector<4x1xi32>
    %c0_i32_254 = arith.constant 0 : i32
    %318 = vector.broadcast %c0_i32_254 : i32 to vector<4x1xi32>
    %319 = arith.cmpi slt, %315, %318 : vector<4x1xi32>
    %c0_i32_255 = arith.constant 0 : i32
    %320 = arith.cmpi slt, %313, %c0_i32_255 : i32
    %321 = vector.broadcast %320 : i1 to vector<4x1xi1>
    %322 = vector.broadcast %321 : vector<4x1xi1> to vector<4x1xi1>
    %323 = arith.xori %319, %322 : vector<4x1xi1>
    %324 = arith.andi %323, %317 : vector<4x1xi1>
    %325 = vector.broadcast %313 : i32 to vector<4x1xi32>
    %326 = arith.addi %315, %325 : vector<4x1xi32>
    %327 = arith.select %324, %326, %315 : vector<4x1xi1>, vector<4x1xi32>
    %c0_i32_256 = arith.constant 0 : i32
    %328 = vector.broadcast %c0_i32_256 : i32 to vector<4x1xi32>
    %329 = arith.cmpi ne, %327, %328 : vector<4x1xi32>
    %330 = arith.extui %329 : vector<4x1xi1> to vector<4x1xi32>
    %331 = arith.sitofp %330 : vector<4x1xi32> to vector<4x1xf32>
    %c1_i32_257 = arith.constant 1 : i32
    %332 = vector.broadcast %c1_i32_257 : i32 to vector<4x1xi32>
    %333 = arith.cmpi ne, %327, %332 : vector<4x1xi32>
    %334 = arith.extui %333 : vector<4x1xi1> to vector<4x1xi32>
    %335 = arith.sitofp %334 : vector<4x1xi32> to vector<4x1xf32>
    %cst_258 = arith.constant 0.000000e+00 : f32
    %336 = vector.broadcast %cst_258 : f32 to vector<4x256xf32>
    %cst_259 = arith.constant 0.000000e+00 : f32
    %337 = vector.broadcast %cst_259 : f32 to vector<4x256xf32>
    %c0_260 = arith.constant 0 : index
    %c0_261 = arith.constant 0 : index
    %338 = vector.load %arg28[%c0_260, %c0_261] : memref<10x128xf32, #tpu.memory_space<vmem>>, vector<4x128xf32>
    %c0_262 = arith.constant 0 : index
    %c0_263 = arith.constant 0 : index
    %c0_264 = arith.constant 0 : index
    %339 = vector.load %arg11[%c0_262, %c0_263, %c0_264] : memref<9x128x256xf32, #tpu.memory_space<vmem>>, vector<1x128x256xf32>
    %340 = vector.shape_cast %339 : vector<1x128x256xf32> to vector<128x256xf32>
    %cst_265 = arith.constant dense<0.000000e+00> : vector<4x256xf32>
    %341 = tpu.matmul %338, %340, %cst_265 {dimension_numbers = #tpu.dot_dimension_numbers<[1], [0], [0], [1], [0, 0, 1, 1], [], []>} : vector<4x128xf32>, vector<128x256xf32>, vector<4x256xf32> -> vector<4x256xf32>
    %342 = arith.addf %337, %341 : vector<4x256xf32>
    %c2_266 = arith.constant 2 : index
    %c0_267 = arith.constant 0 : index
    %343 = vector.load %arg28[%c2_266, %c0_267] : memref<10x128xf32, #tpu.memory_space<vmem>>, vector<4x128xf32>
    %c3_268 = arith.constant 3 : index
    %c0_269 = arith.constant 0 : index
    %c0_270 = arith.constant 0 : index
    %344 = vector.load %arg11[%c3_268, %c0_269, %c0_270] : memref<9x128x256xf32, #tpu.memory_space<vmem>>, vector<1x128x256xf32>
    %345 = vector.shape_cast %344 : vector<1x128x256xf32> to vector<128x256xf32>
    %cst_271 = arith.constant dense<0.000000e+00> : vector<4x256xf32>
    %346 = tpu.matmul %343, %345, %cst_271 {dimension_numbers = #tpu.dot_dimension_numbers<[1], [0], [0], [1], [0, 0, 1, 1], [], []>} : vector<4x128xf32>, vector<128x256xf32>, vector<4x256xf32> -> vector<4x256xf32>
    %347 = arith.addf %342, %346 : vector<4x256xf32>
    %c4_272 = arith.constant 4 : index
    %c0_273 = arith.constant 0 : index
    %348 = vector.load %arg28[%c4_272, %c0_273] : memref<10x128xf32, #tpu.memory_space<vmem>>, vector<4x128xf32>
    %c6_274 = arith.constant 6 : index
    %c0_275 = arith.constant 0 : index
    %c0_276 = arith.constant 0 : index
    %349 = vector.load %arg11[%c6_274, %c0_275, %c0_276] : memref<9x128x256xf32, #tpu.memory_space<vmem>>, vector<1x128x256xf32>
    %350 = vector.shape_cast %349 : vector<1x128x256xf32> to vector<128x256xf32>
    %cst_277 = arith.constant dense<0.000000e+00> : vector<4x256xf32>
    %351 = tpu.matmul %348, %350, %cst_277 {dimension_numbers = #tpu.dot_dimension_numbers<[1], [0], [0], [1], [0, 0, 1, 1], [], []>} : vector<4x128xf32>, vector<128x256xf32>, vector<4x256xf32> -> vector<4x256xf32>
    %352 = arith.addf %347, %351 : vector<4x256xf32>
    %353 = vector.broadcast %331 : vector<4x1xf32> to vector<4x256xf32>
    %354 = arith.mulf %352, %353 : vector<4x256xf32>
    %355 = arith.addf %336, %354 : vector<4x256xf32>
    %cst_278 = arith.constant 0.000000e+00 : f32
    %356 = vector.broadcast %cst_278 : f32 to vector<4x256xf32>
    %c1_279 = arith.constant 1 : index
    %c0_280 = arith.constant 0 : index
    %357 = vector.load %arg28[%c1_279, %c0_280] : memref<10x128xf32, #tpu.memory_space<vmem>>, vector<4x128xf32>
    %c1_281 = arith.constant 1 : index
    %c0_282 = arith.constant 0 : index
    %c0_283 = arith.constant 0 : index
    %358 = vector.load %arg11[%c1_281, %c0_282, %c0_283] : memref<9x128x256xf32, #tpu.memory_space<vmem>>, vector<1x128x256xf32>
    %359 = vector.shape_cast %358 : vector<1x128x256xf32> to vector<128x256xf32>
    %cst_284 = arith.constant dense<0.000000e+00> : vector<4x256xf32>
    %360 = tpu.matmul %357, %359, %cst_284 {dimension_numbers = #tpu.dot_dimension_numbers<[1], [0], [0], [1], [0, 0, 1, 1], [], []>} : vector<4x128xf32>, vector<128x256xf32>, vector<4x256xf32> -> vector<4x256xf32>
    %361 = arith.addf %356, %360 : vector<4x256xf32>
    %c3_285 = arith.constant 3 : index
    %c0_286 = arith.constant 0 : index
    %362 = vector.load %arg28[%c3_285, %c0_286] : memref<10x128xf32, #tpu.memory_space<vmem>>, vector<4x128xf32>
    %c4_287 = arith.constant 4 : index
    %c0_288 = arith.constant 0 : index
    %c0_289 = arith.constant 0 : index
    %363 = vector.load %arg11[%c4_287, %c0_288, %c0_289] : memref<9x128x256xf32, #tpu.memory_space<vmem>>, vector<1x128x256xf32>
    %364 = vector.shape_cast %363 : vector<1x128x256xf32> to vector<128x256xf32>
    %cst_290 = arith.constant dense<0.000000e+00> : vector<4x256xf32>
    %365 = tpu.matmul %362, %364, %cst_290 {dimension_numbers = #tpu.dot_dimension_numbers<[1], [0], [0], [1], [0, 0, 1, 1], [], []>} : vector<4x128xf32>, vector<128x256xf32>, vector<4x256xf32> -> vector<4x256xf32>
    %366 = arith.addf %361, %365 : vector<4x256xf32>
    %c5_291 = arith.constant 5 : index
    %c0_292 = arith.constant 0 : index
    %367 = vector.load %arg28[%c5_291, %c0_292] : memref<10x128xf32, #tpu.memory_space<vmem>>, vector<4x128xf32>
    %c7_293 = arith.constant 7 : index
    %c0_294 = arith.constant 0 : index
    %c0_295 = arith.constant 0 : index
    %368 = vector.load %arg11[%c7_293, %c0_294, %c0_295] : memref<9x128x256xf32, #tpu.memory_space<vmem>>, vector<1x128x256xf32>
    %369 = vector.shape_cast %368 : vector<1x128x256xf32> to vector<128x256xf32>
    %cst_296 = arith.constant dense<0.000000e+00> : vector<4x256xf32>
    %370 = tpu.matmul %367, %369, %cst_296 {dimension_numbers = #tpu.dot_dimension_numbers<[1], [0], [0], [1], [0, 0, 1, 1], [], []>} : vector<4x128xf32>, vector<128x256xf32>, vector<4x256xf32> -> vector<4x256xf32>
    %371 = arith.addf %366, %370 : vector<4x256xf32>
    %372 = arith.addf %355, %371 : vector<4x256xf32>
    %cst_297 = arith.constant 0.000000e+00 : f32
    %373 = vector.broadcast %cst_297 : f32 to vector<4x256xf32>
    %c2_298 = arith.constant 2 : index
    %c0_299 = arith.constant 0 : index
    %374 = vector.load %arg28[%c2_298, %c0_299] : memref<10x128xf32, #tpu.memory_space<vmem>>, vector<4x128xf32>
    %c2_300 = arith.constant 2 : index
    %c0_301 = arith.constant 0 : index
    %c0_302 = arith.constant 0 : index
    %375 = vector.load %arg11[%c2_300, %c0_301, %c0_302] : memref<9x128x256xf32, #tpu.memory_space<vmem>>, vector<1x128x256xf32>
    %376 = vector.shape_cast %375 : vector<1x128x256xf32> to vector<128x256xf32>
    %cst_303 = arith.constant dense<0.000000e+00> : vector<4x256xf32>
    %377 = tpu.matmul %374, %376, %cst_303 {dimension_numbers = #tpu.dot_dimension_numbers<[1], [0], [0], [1], [0, 0, 1, 1], [], []>} : vector<4x128xf32>, vector<128x256xf32>, vector<4x256xf32> -> vector<4x256xf32>
    %378 = arith.addf %373, %377 : vector<4x256xf32>
    %c4_304 = arith.constant 4 : index
    %c0_305 = arith.constant 0 : index
    %379 = vector.load %arg28[%c4_304, %c0_305] : memref<10x128xf32, #tpu.memory_space<vmem>>, vector<4x128xf32>
    %c5_306 = arith.constant 5 : index
    %c0_307 = arith.constant 0 : index
    %c0_308 = arith.constant 0 : index
    %380 = vector.load %arg11[%c5_306, %c0_307, %c0_308] : memref<9x128x256xf32, #tpu.memory_space<vmem>>, vector<1x128x256xf32>
    %381 = vector.shape_cast %380 : vector<1x128x256xf32> to vector<128x256xf32>
    %cst_309 = arith.constant dense<0.000000e+00> : vector<4x256xf32>
    %382 = tpu.matmul %379, %381, %cst_309 {dimension_numbers = #tpu.dot_dimension_numbers<[1], [0], [0], [1], [0, 0, 1, 1], [], []>} : vector<4x128xf32>, vector<128x256xf32>, vector<4x256xf32> -> vector<4x256xf32>
    %383 = arith.addf %378, %382 : vector<4x256xf32>
    %c6_310 = arith.constant 6 : index
    %c0_311 = arith.constant 0 : index
    %384 = vector.load %arg28[%c6_310, %c0_311] : memref<10x128xf32, #tpu.memory_space<vmem>>, vector<4x128xf32>
    %c8_312 = arith.constant 8 : index
    %c0_313 = arith.constant 0 : index
    %c0_314 = arith.constant 0 : index
    %385 = vector.load %arg11[%c8_312, %c0_313, %c0_314] : memref<9x128x256xf32, #tpu.memory_space<vmem>>, vector<1x128x256xf32>
    %386 = vector.shape_cast %385 : vector<1x128x256xf32> to vector<128x256xf32>
    %cst_315 = arith.constant dense<0.000000e+00> : vector<4x256xf32>
    %387 = tpu.matmul %384, %386, %cst_315 {dimension_numbers = #tpu.dot_dimension_numbers<[1], [0], [0], [1], [0, 0, 1, 1], [], []>} : vector<4x128xf32>, vector<128x256xf32>, vector<4x256xf32> -> vector<4x256xf32>
    %388 = arith.addf %383, %387 : vector<4x256xf32>
    %389 = vector.broadcast %335 : vector<4x1xf32> to vector<4x256xf32>
    %390 = arith.mulf %388, %389 : vector<4x256xf32>
    %391 = arith.addf %372, %390 : vector<4x256xf32>
    %c0_316 = arith.constant 0 : index
    %c0_317 = arith.constant 0 : index
    %392 = vector.load %arg12[%c0_316, %c0_317] : memref<1x256xf32, #tpu.memory_space<vmem>>, vector<1x256xf32>
    %393 = vector.broadcast %392 : vector<1x256xf32> to vector<4x256xf32>
    %394 = arith.mulf %391, %393 : vector<4x256xf32>
    %c0_318 = arith.constant 0 : index
    %c0_319 = arith.constant 0 : index
    %395 = vector.load %arg13[%c0_318, %c0_319] : memref<1x256xf32, #tpu.memory_space<vmem>>, vector<1x256xf32>
    %396 = vector.broadcast %395 : vector<1x256xf32> to vector<4x256xf32>
    %397 = arith.addf %394, %396 : vector<4x256xf32>
    %cst_320 = arith.constant 0.000000e+00 : f32
    %398 = vector.broadcast %cst_320 : f32 to vector<4x256xf32>
    %399 = arith.maximumf %397, %398 : vector<4x256xf32>
    %c0_321 = arith.constant 0 : index
    %c0_322 = arith.constant 0 : index
    %400 = vector.load %arg29[%c0_321, %c0_322] : memref<4x256xf32, #tpu.memory_space<vmem>>, vector<4x256xf32>
    tpu.vector_store %arg29[%c0_321, %c0_322], %399 {strides = array<i32>} : memref<4x256xf32, #tpu.memory_space<vmem>>, vector<4x256xf32>,
    %c0_323 = arith.constant 0 : index
    %c0_324 = arith.constant 0 : index
    %401 = vector.load %arg29[%c0_323, %c0_324] : memref<4x256xf32, #tpu.memory_space<vmem>>, vector<1x256xf32>
    %c1_325 = arith.constant 1 : index
    %c0_326 = arith.constant 0 : index
    %402 = vector.load %arg29[%c1_325, %c0_326] : memref<4x256xf32, #tpu.memory_space<vmem>>, vector<1x256xf32>
    %403 = arith.maximumf %401, %402 : vector<1x256xf32>
    %c2_327 = arith.constant 2 : index
    %c0_328 = arith.constant 0 : index
    %404 = vector.load %arg29[%c2_327, %c0_328] : memref<4x256xf32, #tpu.memory_space<vmem>>, vector<1x256xf32>
    %c3_329 = arith.constant 3 : index
    %c0_330 = arith.constant 0 : index
    %405 = vector.load %arg29[%c3_329, %c0_330] : memref<4x256xf32, #tpu.memory_space<vmem>>, vector<1x256xf32>
    %406 = arith.maximumf %404, %405 : vector<1x256xf32>
    %407 = arith.maximumf %403, %406 : vector<1x256xf32>
    %cst_331 = arith.constant dense<0.000000e+00> : vector<256xf32>
    %408 = vector.multi_reduction <add>, %407, %cst_331 [0] : vector<1x256xf32> to vector<256xf32>
    %409 = vector.shape_cast %408 : vector<256xf32> to vector<1x256xf32>
    %cst_332 = arith.constant 1.000000e+00 : f32
    %410 = vector.broadcast %cst_332 : f32 to vector<1x256xf32>
    %411 = arith.mulf %409, %410 : vector<1x256xf32>
    %c0_333 = arith.constant 0 : index
    %c0_334 = arith.constant 0 : index
    %412 = vector.load %arg14[%c0_333, %c0_334] : memref<256x512xf32, #tpu.memory_space<vmem>>, vector<256x512xf32>
    %cst_335 = arith.constant dense<0.000000e+00> : vector<1x512xf32>
    %413 = tpu.matmul %411, %412, %cst_335 {dimension_numbers = #tpu.dot_dimension_numbers<[1], [0], [0], [1], [0, 0, 1, 1], [], []>} : vector<1x256xf32>, vector<256x512xf32>, vector<1x512xf32> -> vector<1x512xf32>
    %c0_336 = arith.constant 0 : index
    %c0_337 = arith.constant 0 : index
    %414 = vector.load %arg15[%c0_336, %c0_337] : memref<1x512xf32, #tpu.memory_space<vmem>>, vector<1x512xf32>
    %415 = arith.addf %413, %414 : vector<1x512xf32>
    %cst_338 = arith.constant 0.000000e+00 : f32
    %416 = vector.broadcast %cst_338 : f32 to vector<1x512xf32>
    %417 = arith.maximumf %415, %416 : vector<1x512xf32>
    %c0_339 = arith.constant 0 : index
    %c0_340 = arith.constant 0 : index
    %418 = vector.load %arg16[%c0_339, %c0_340] : memref<512x256xf32, #tpu.memory_space<vmem>>, vector<512x256xf32>
    %cst_341 = arith.constant dense<0.000000e+00> : vector<1x256xf32>
    %419 = tpu.matmul %417, %418, %cst_341 {dimension_numbers = #tpu.dot_dimension_numbers<[1], [0], [0], [1], [0, 0, 1, 1], [], []>} : vector<1x512xf32>, vector<512x256xf32>, vector<1x256xf32> -> vector<1x256xf32>
    %c0_342 = arith.constant 0 : index
    %c0_343 = arith.constant 0 : index
    %420 = vector.load %arg17[%c0_342, %c0_343] : memref<1x256xf32, #tpu.memory_space<vmem>>, vector<1x256xf32>
    %421 = arith.addf %419, %420 : vector<1x256xf32>
    %cst_344 = arith.constant 0.000000e+00 : f32
    %422 = vector.broadcast %cst_344 : f32 to vector<1x256xf32>
    %423 = arith.maximumf %421, %422 : vector<1x256xf32>
    %c0_345 = arith.constant 0 : index
    %c0_346 = arith.constant 0 : index
    %424 = vector.load %arg18[%c0_345, %c0_346] : memref<256x128xf32, #tpu.memory_space<vmem>>, vector<256x128xf32>
    %cst_347 = arith.constant dense<0.000000e+00> : vector<1x128xf32>
    %425 = tpu.matmul %423, %424, %cst_347 {dimension_numbers = #tpu.dot_dimension_numbers<[1], [0], [0], [1], [0, 0, 1, 1], [], []>} : vector<1x256xf32>, vector<256x128xf32>, vector<1x128xf32> -> vector<1x128xf32>
    %c0_348 = arith.constant 0 : index
    %c0_349 = arith.constant 0 : index
    %426 = vector.load %arg19[%c0_348, %c0_349] : memref<1x128xf32, #tpu.memory_space<vmem>>, vector<1x128xf32>
    %427 = arith.addf %425, %426 : vector<1x128xf32>
    %cst_350 = arith.constant 0.000000e+00 : f32
    %428 = vector.broadcast %cst_350 : f32 to vector<1x128xf32>
    %429 = arith.maximumf %427, %428 : vector<1x128xf32>
    %c0_351 = arith.constant 0 : index
    %c0_352 = arith.constant 0 : index
    %430 = vector.load %arg20[%c0_351, %c0_352] : memref<128x10xf32, #tpu.memory_space<vmem>>, vector<128x10xf32>
    %cst_353 = arith.constant dense<0.000000e+00> : vector<1x10xf32>
    %431 = tpu.matmul %429, %430, %cst_353 {dimension_numbers = #tpu.dot_dimension_numbers<[1], [0], [0], [1], [0, 0, 1, 1], [], []>} : vector<1x128xf32>, vector<128x10xf32>, vector<1x10xf32> -> vector<1x10xf32>
    %c0_354 = arith.constant 0 : index
    %c0_355 = arith.constant 0 : index
    %432 = vector.load %arg21[%c0_354, %c0_355] : memref<1x10xf32, #tpu.memory_space<vmem>>, vector<1x10xf32>
    %433 = arith.addf %431, %432 : vector<1x10xf32>
    %c0_356 = arith.constant 0 : index
    %c0_357 = arith.constant 0 : index
    %c0_358 = arith.constant 0 : index
    %434 = vector.load %arg22[%c0_356, %c0_357, %c0_358] : memref<1x1x10xf32, #tpu.memory_space<vmem>>, vector<1x1x10xf32>
    %435 = vector.shape_cast %434 : vector<1x1x10xf32> to vector<1x10xf32>
    %436 = vector.shape_cast %433 : vector<1x10xf32> to vector<1x1x10xf32>
    tpu.vector_store %arg22[%c0_356, %c0_357, %c0_358], %436 {strides = array<i32>} : memref<1x1x10xf32, #tpu.memory_space<vmem>>, vector<1x1x10xf32>,
    return
  }
  func.func @transform_0(%arg0: i32) -> (i32, i32, i32) {
    %c0_i32 = arith.constant 0 : i32
    %c0_i32_0 = arith.constant 0 : i32
    %c0_i32_1 = arith.constant 0 : i32
    return %arg0, %c0_i32, %c0_i32_0 : i32, i32, i32
  }
  func.func @transform_1(%arg0: i32) -> (i32, i32) {
    %c0_i32 = arith.constant 0 : i32
    %c0_i32_0 = arith.constant 0 : i32
    %c0_i32_1 = arith.constant 0 : i32
    return %c0_i32, %c0_i32_0 : i32, i32
  }
  func.func @transform_2(%arg0: i32) -> (i32, i32) {
    %c0_i32 = arith.constant 0 : i32
    %c0_i32_0 = arith.constant 0 : i32
    %c0_i32_1 = arith.constant 0 : i32
    return %c0_i32, %c0_i32_0 : i32, i32
  }
  func.func @transform_3(%arg0: i32) -> (i32, i32) {
    %c0_i32 = arith.constant 0 : i32
    %c0_i32_0 = arith.constant 0 : i32
    %c0_i32_1 = arith.constant 0 : i32
    return %c0_i32, %c0_i32_0 : i32, i32
  }
  func.func @transform_4(%arg0: i32) -> (i32, i32, i32) {
    %c0_i32 = arith.constant 0 : i32
    %c0_i32_0 = arith.constant 0 : i32
    %c0_i32_1 = arith.constant 0 : i32
    %c0_i32_2 = arith.constant 0 : i32
    return %c0_i32, %c0_i32_0, %c0_i32_1 : i32, i32, i32
  }
  func.func @transform_5(%arg0: i32) -> (i32, i32) {
    %c0_i32 = arith.constant 0 : i32
    %c0_i32_0 = arith.constant 0 : i32
    %c0_i32_1 = arith.constant 0 : i32
    return %c0_i32, %c0_i32_0 : i32, i32
  }
  func.func @transform_6(%arg0: i32) -> (i32, i32) {
    %c0_i32 = arith.constant 0 : i32
    %c0_i32_0 = arith.constant 0 : i32
    %c0_i32_1 = arith.constant 0 : i32
    return %c0_i32, %c0_i32_0 : i32, i32
  }
  func.func @transform_7(%arg0: i32) -> (i32, i32, i32) {
    %c0_i32 = arith.constant 0 : i32
    %c0_i32_0 = arith.constant 0 : i32
    %c0_i32_1 = arith.constant 0 : i32
    %c0_i32_2 = arith.constant 0 : i32
    return %c0_i32, %c0_i32_0, %c0_i32_1 : i32, i32, i32
  }
  func.func @transform_8(%arg0: i32) -> (i32, i32) {
    %c0_i32 = arith.constant 0 : i32
    %c0_i32_0 = arith.constant 0 : i32
    %c0_i32_1 = arith.constant 0 : i32
    return %c0_i32, %c0_i32_0 : i32, i32
  }
  func.func @transform_9(%arg0: i32) -> (i32, i32) {
    %c0_i32 = arith.constant 0 : i32
    %c0_i32_0 = arith.constant 0 : i32
    %c0_i32_1 = arith.constant 0 : i32
    return %c0_i32, %c0_i32_0 : i32, i32
  }
  func.func @transform_10(%arg0: i32) -> (i32, i32, i32) {
    %c0_i32 = arith.constant 0 : i32
    %c0_i32_0 = arith.constant 0 : i32
    %c0_i32_1 = arith.constant 0 : i32
    %c0_i32_2 = arith.constant 0 : i32
    return %c0_i32, %c0_i32_0, %c0_i32_1 : i32, i32, i32
  }
  func.func @transform_11(%arg0: i32) -> (i32, i32) {
    %c0_i32 = arith.constant 0 : i32
    %c0_i32_0 = arith.constant 0 : i32
    %c0_i32_1 = arith.constant 0 : i32
    return %c0_i32, %c0_i32_0 : i32, i32
  }
  func.func @transform_12(%arg0: i32) -> (i32, i32) {
    %c0_i32 = arith.constant 0 : i32
    %c0_i32_0 = arith.constant 0 : i32
    %c0_i32_1 = arith.constant 0 : i32
    return %c0_i32, %c0_i32_0 : i32, i32
  }
  func.func @transform_13(%arg0: i32) -> (i32, i32) {
    %c0_i32 = arith.constant 0 : i32
    %c0_i32_0 = arith.constant 0 : i32
    %c0_i32_1 = arith.constant 0 : i32
    return %c0_i32, %c0_i32_0 : i32, i32
  }
  func.func @transform_14(%arg0: i32) -> (i32, i32) {
    %c0_i32 = arith.constant 0 : i32
    %c0_i32_0 = arith.constant 0 : i32
    %c0_i32_1 = arith.constant 0 : i32
    return %c0_i32, %c0_i32_0 : i32, i32
  }
  func.func @transform_15(%arg0: i32) -> (i32, i32) {
    %c0_i32 = arith.constant 0 : i32
    %c0_i32_0 = arith.constant 0 : i32
    %c0_i32_1 = arith.constant 0 : i32
    return %c0_i32, %c0_i32_0 : i32, i32
  }
  func.func @transform_16(%arg0: i32) -> (i32, i32) {
    %c0_i32 = arith.constant 0 : i32
    %c0_i32_0 = arith.constant 0 : i32
    %c0_i32_1 = arith.constant 0 : i32
    return %c0_i32, %c0_i32_0 : i32, i32
  }
  func.func @transform_17(%arg0: i32) -> (i32, i32) {
    %c0_i32 = arith.constant 0 : i32
    %c0_i32_0 = arith.constant 0 : i32
    %c0_i32_1 = arith.constant 0 : i32
    return %c0_i32, %c0_i32_0 : i32, i32
  }
  func.func @transform_18(%arg0: i32) -> (i32, i32) {
    %c0_i32 = arith.constant 0 : i32
    %c0_i32_0 = arith.constant 0 : i32
    %c0_i32_1 = arith.constant 0 : i32
    return %c0_i32, %c0_i32_0 : i32, i32
  }
  func.func @transform_19(%arg0: i32) -> (i32, i32) {
    %c0_i32 = arith.constant 0 : i32
    %c0_i32_0 = arith.constant 0 : i32
    %c0_i32_1 = arith.constant 0 : i32
    return %c0_i32, %c0_i32_0 : i32, i32
  }
  func.func @transform_20(%arg0: i32) -> (i32, i32) {
    %c0_i32 = arith.constant 0 : i32
    %c0_i32_0 = arith.constant 0 : i32
    %c0_i32_1 = arith.constant 0 : i32
    return %c0_i32, %c0_i32_0 : i32, i32
  }
  func.func @transform_21(%arg0: i32) -> (i32, i32, i32) {
    %c0_i32 = arith.constant 0 : i32
    %c0_i32_0 = arith.constant 0 : i32
    %c0_i32_1 = arith.constant 0 : i32
    return %arg0, %c0_i32, %c0_i32_0 : i32, i32, i32
  }
}

</mosaic_0001>

<bundles_post_ra>
// kernel: arcanum_forward_pallas.1
= control target key start
LH: loop header
LB: loop body
LE: loop exit
PB: predicated region body
PF: predicated region fallthrough
CT: control target
= control target key end

     0   :  { %s10333_s0 = inlined_call_operand.vmem [shape: f32[2,256,27], index: 0, kind: input, shape index: {}]   ;;  %s10334_s1 = inlined_call_operand.vmem [shape: f32[27,32], index: 1, kind: input, shape index: {}]   ;;  %s10335_s2 = inlined_call_operand.vmem [shape: f32[1,32], index: 2, kind: input, shape index: {}]   ;;  %s10336_s3 = inlined_call_operand.vmem [shape: f32[1,32], index: 3, kind: input, shape index: {}]   ;;  %s10337_s4 = inlined_call_operand.hbm [shape: f32[9,32,64], index: 4, kind: input, shape index: {}]   ;;  %s10338_s5 = inlined_call_operand.vmem [shape: f32[1,64], index: 5, kind: input, shape index: {}]   ;;  %s10339_s6 = inlined_call_operand.vmem [shape: f32[1,64], index: 6, kind: input, shape index: {}]   ;;  %s10340_s7 = inlined_call_operand.hbm [shape: f32[9,64,128], index: 7, kind: input, shape index: {}]   ;;  %s10341_s8 = inlined_call_operand.vmem [shape: f32[1,128], index: 8, kind: input, shape index: {}]   ;;  %s10342_s9 = inlined_call_operand.vmem [shape: f32[1,128], index: 9, kind: input, shape index: {}]   ;;  %s10343_s10 = inlined_call_operand.vmem [shape: f32[9,128,256], index: 10, kind: input, shape index: {}]   ;;  %s10344_s11 = inlined_call_operand.vmem [shape: f32[1,256], index: 11, kind: input, shape index: {}]   ;;  %s10345_s12 = inlined_call_operand.vmem [shape: f32[1,256], index: 12, kind: input, shape index: {}]   ;;  %s10346_s13 = inlined_call_operand.vmem [shape: f32[256,512], index: 13, kind: input, shape index: {}]   ;;  %s10347_s14 = inlined_call_operand.vmem [shape: f32[1,512], index: 14, kind: input, shape index: {}]   ;;  %s10348_s15 = inlined_call_operand.hbm [shape: f32[512,256], index: 15, kind: input, shape index: {}]   ;;  %s10349_s16 = inlined_call_operand.vmem [shape: f32[1,256], index: 16, kind: input, shape index: {}]   ;;  %s10350_s17 = inlined_call_operand.hbm [shape: f32[256,128], index: 17, kind: input, shape index: {}]   ;;  %s10351_s18 = inlined_call_operand.vmem [shape: f32[1,128], index: 18, kind: input, shape index: {}]   ;;  %s10352_s19 = inlined_call_operand.vmem [shape: f32[128,10], index: 19, kind: input, shape index: {}]   ;;  %s10353_s20 = inlined_call_operand.vmem [shape: f32[1,10], index: 20, kind: input, shape index: {}]   ;;  %s10354_s21 = inlined_call_operand.hbm [shape: f32[2,1,10], index: 21, kind: output, shape index: {}]  }
   0x1   :  { %10373 = sst [smem:[#allocation30_spill]] %s10333_s0 }
   0x2   :  { %10374 = sst [smem:[#allocation31_spill]] %s10334_s1 }
   0x3   :  { %10375 = sst [smem:[#allocation32_spill]] %s10335_s2 }
   0x4   :  { %10376 = sst [smem:[#allocation33_spill]] %s10336_s3 }
   0x5   :  { %10377 = sst [smem:[#allocation34_spill]] %s10337_s4 }
   0x6   :  { %10378 = sst [smem:[#allocation35_spill]] %s10338_s5 }
   0x7   :  { %10379 = sst [smem:[#allocation36_spill]] %s10351_s18 }
   0x8   :  { %10380 = sst [smem:[#allocation37_spill]] %s10352_s19 }
   0x9   :  { %10381 = sst [smem:[#allocation38_spill]] %s10353_s20 }
   0xa   :  { %10382 = sst [smem:[#allocation39_spill]] %s10354_s21 }
   0xb   :  { %26 = vsyncpa [#allocation10], 0 }
   0xc   :  { %27 = vsyncpa [#allocation13], 0 }
   0xd   :  { %28 = vsyncpa [#allocation16], 0 }
   0xe   :  { %29 = vsyncpa [#allocation11], 0 }
   0xf   :  { %31 = vsyncpa [#allocation11 + $0x1], 0  ;;  %s8131_s2 = smov 0   ;;  %s8133_s25 = smov 0  }
  0x10   :  { %s8135_s26 = smov 0   ;;  %s8137_s27 = smov 0  }
  0x11 LB: > { %10383 = sst [smem:[#allocation22_spill]] %s7994_s2  ;;  %s8152_s3 = sadd.s32 4294967295, %s8006_s27   ;;  %s8006_s27 = sphi %s8137_s27, %s10454_s27   ;;  %s8002_s26 = sphi %s8135_s26, %s10457_s26   ;;  %s7998_s25 = sphi %s8133_s25, %s10456_s25   ;;  %s7994_s2 = sphi %s8131_s2, %s10455_s2  }
  0x12   : > { %10384 = sst [smem:[#allocation23_spill]] %s7998_s25  ;;  %s5676_s28 = sadd.s32 4294967294, %s8006_s27  }
  0x13   : > { %10385 = sst [smem:[#allocation24_spill]] %s8002_s26  ;;  %s8156_s29 = sadd.s32 1, %s8006_s27  }
  0x14   : > { %10386 = sst [smem:[#allocation25_spill]] %s8006_s27  ;;  %s490_s0 = sadd.s32 1, %s8002_s26 }
  0x15   : > { %10387 = sst [smem:[#allocation26_spill]] %s8156_s29  ;;  %s487_s4 = ssub.s32 %s8006_s27, %s8156_s29 }
  0x16   : > { %p500_p0 = scmp.ne.s32.totalorder %s8002_s26, %s7998_s25  ;;  %p488_p1 = scmp.eq.s32.totalorder %s487_s4, 0 }
  0x17   : > { %p501_p2 = scmp.eq.s32.totalorder %s8152_s3, 1  ;;  %p506_p3 = scmp.ne.s32.totalorder %s7998_s25, %s7994_s2 }
  0x18   : > { %p507_p4 = scmp.eq.s32.totalorder %s5676_s28, 1  ;;  %p5677_p7 = scmp.ge.s32.totalorder %s8006_s27, 1 }
  0x19   : > { %s8167_s30 = scalar_select %p488_p1, %s8002_s26, %s490_s0  }
  0x1a   : > { %p8169_p5 = por %p501_p2, %p500_p0  ;;  %p8173_p6 = por %p507_p4, %p506_p3 }
  0x1b   : > { %10388 = sst [smem:[#allocation27_spill]] %s8167_s30  ;;  %p514_p8 = scmp.lt.s32.totalorder %s8006_s27, 3 }
  0x1c   : > { %s10389_s5 = scalar_select %p8169_p5, 1, 0 }
  0x1d   : > { %s10391_s22 = scalar_select %p8173_p6, 1, 0 }
  0x1e   : > { %10390 = sst [smem:[#allocation28_spill]] %s10389_s5  ;;  %p10364_p9 = scmp.eq.s32.totalorder %s8152_s3, 0 }
  0x1f   : > { %10392 = sst [smem:[#allocation29_spill]] %s10391_s22  ;;  %p8180_p10 = pnand %p5677_p7, %p514_p8 }
  0x20   : > { %s8008_s1 = smov [#allocation12]   ;;  %s8009_s0 = smov [#allocation9]  }
  0x21   : > { %s10393_s23 = scalar_select %p8180_p10, 1, 0 }
  0x22   : > { %p7749_p11 = pneg %p8180_p10  ;;  %s554_s24 = sshll.u32 %s8008_s1, 4  ;;  %s8186_s24 = int_to_ptr.vmem [resolvable:$true] %s554_s24 }
  0x23   : > { %s535_s4 = sshll.u32 %s8009_s0, 4  ;;  %s8010_s30 = smov [#allocation14]   ;;  %s8194_s4 = int_to_ptr.vmem [resolvable:$true] %s535_s4 }
  0x24   : > { %p8190_p12 = pnand %p10364_p9, %p7749_p11  ;;  %s8196_s26 = sshll.u32 %s8010_s30, 4  ;;  %s589_s26 = int_to_ptr.vmem [resolvable:$true] %s8196_s26 }
  0x25   : > { %s7820_s2 = scalar_lea.hbm %s10340_s7, 9216 }
  0x26   : > { %p7821_p13 = scmp.ne.s32.totalorder %s10340_s7, %s7820_s2  ;;  %p8206_p0 = pneg %p8190_p12 }
  0x27   : > { %p7827_p3 = scmp.lt.u32.totalorder %s7820_s2, %s10340_s7 }
  0x28   : > { %p7823_p1 = pnand %p8206_p0, %p7821_p13 }
  0x2a   : > { %p7824_p2 = pneg %p7823_p1 }
  0x2c   : > { %p7829_p4 = pnand %p7827_p3, %p7824_p2 }
  0x2e   : > { %7832 = shalt.err (!%p7829_p4)
}
  0x2f   : > { %s7833_s27 = scalar_lea.vmem %s8186_s24, 9216  ;;  %p7841_p9 = scmp.lt.s32.totalorder %s8186_s24, %s8186_s24 }
  0x30   : > { %p7834_p7 = scmp.ne.s32.totalorder %s8186_s24, %s7833_s27  ;;  %p7842_p6 = scmp.lt.s32.totalorder %s7833_s27, %s7833_s27 }
  0x32   : > { %p7836_p8 = pnand %p7834_p7, %p8206_p0  ;;  %p7843_p13 = por %p7842_p6, %p7841_p9 }
  0x34   : > { %p7837_p11 = pneg %p7836_p8 }
  0x36   : > { %p7844_p1 = pnand %p7843_p13, %p7837_p11 }
  0x38   : > { %7847 = shalt.err (!%p7844_p1)
}
  0x39   : > { %s10371_s29 = smov 128   ;;  %s10372_s2 = smov 8  }
  0x3a   : > { %7755 = dma.hbm_to_vmem [thread:$0]  (!%p8190_p12), %s10340_s7, 9216, %s8186_s24, [#allocation13], %s10371_s29, %s10371_s29, %s10372_s2  }
  0x3b   : > { %s10396_s20 = sld [smem:[#allocation34_spill]] }
  0x41   : > { %s7848_s27 = scalar_lea.hbm %s10396_s20, 4608 }
  0x42   : > { %p7849_p6 = scmp.ne.s32.totalorder %s10396_s20, %s7848_s27  ;;  %p7855_p3 = scmp.lt.u32.totalorder %s7848_s27, %s10396_s20 }
  0x44   : > { %p7851_p9 = pnand %p7849_p6, %p8206_p0 }
  0x46   : > { %p7852_p2 = pneg %p7851_p9 }
  0x48   : > { %p7857_p4 = pnand %p7855_p3, %p7852_p2 }
  0x4a   : > { %7860 = shalt.err (!%p7857_p4)
}
  0x4b   : > { %s7861_s24 = scalar_lea.vmem %s8194_s4, 4608  ;;  %p7869_p13 = scmp.lt.s32.totalorder %s8194_s4, %s8194_s4 }
  0x4c   : > { %p7862_p7 = scmp.ne.s32.totalorder %s8194_s4, %s7861_s24  ;;  %p7870_p1 = scmp.lt.s32.totalorder %s7861_s24, %s7861_s24 }
  0x4e   : > { %p7864_p8 = pnand %p7862_p7, %p8206_p0  ;;  %p7871_p6 = por %p7870_p1, %p7869_p13 }
  0x50   : > { %p7865_p11 = pneg %p7864_p8 }
  0x52   : > { %p7872_p9 = pnand %p7871_p6, %p7865_p11 }
  0x54   : > { %7875 = shalt.err (!%p7872_p9)
}
  0x55   : > { %7752 = dma.hbm_to_vmem [thread:$0]  (!%p8190_p12), %s10396_s20, 4608, %s8194_s4, [#allocation10], %s10371_s29, %s10371_s29, %s10372_s2  }
  0x56   : > { %s7876_s22 = scalar_lea.hbm %s10348_s15, 16384 }
  0x57   : > { %p7877_p2 = scmp.ne.s32.totalorder %s10348_s15, %s7876_s22  ;;  %p7883_p7 = scmp.lt.u32.totalorder %s7876_s22, %s10348_s15 }
  0x59   : > { %p7879_p3 = pnand %p7877_p2, %p8206_p0 }
  0x5b   : > { %p7880_p4 = pneg %p7879_p3 }
  0x5d   : > { %p7885_p8 = pnand %p7883_p7, %p7880_p4 }
  0x5f   : > { %7888 = shalt.err (!%p7885_p8)
}
  0x60   : > { %s7889_s24 = scalar_lea.vmem %s589_s26, 16384  ;;  %p7897_p6 = scmp.lt.s32.totalorder %s589_s26, %s589_s26 }
  0x61   : > { %p7890_p11 = scmp.ne.s32.totalorder %s589_s26, %s7889_s24  ;;  %p7898_p9 = scmp.lt.s32.totalorder %s7889_s24, %s7889_s24 }
  0x63   : > { %p7892_p13 = pnand %p7890_p11, %p8206_p0  ;;  %p7899_p5 = por %p7898_p9, %p7897_p6 }
  0x65   : > { %p7893_p1 = pneg %p7892_p13 }
  0x67   : > { %p7900_p10 = pnand %p7899_p5, %p7893_p1 }
  0x69   : > { %7903 = shalt.err (!%p7900_p10)
}
  0x6a   : > { %s8013_s4 = smov 256   ;;  %s8014_s18 = smov 16  }
  0x6b   : > { %7758 = dma.hbm_to_vmem [thread:$0]  (!%p8190_p12), %s10348_s15, 16384, %s589_s26, [#allocation13], %s8013_s4, %s8013_s4, %s8014_s18  }
  0x6c   : > { %s8015_s5 = smov [#allocation15]   ;;  %s7904_s30 = scalar_lea.hbm %s10350_s17, 4096 }
  0x6d   : > { %s604_s22 = sshll.u32 %s8015_s5, 4  ;;  %p7905_p5 = scmp.ne.s32.totalorder %s10350_s17, %s7904_s30  ;;  %s605_s22 = int_to_ptr.vmem [resolvable:$true] %s604_s22 }
  0x6e   : > { %p7911_p3 = scmp.lt.u32.totalorder %s7904_s30, %s10350_s17 }
  0x6f   : > { %p7907_p10 = pnand %p7905_p5, %p8206_p0 }
  0x71   : > { %p7908_p2 = pneg %p7907_p10 }
  0x73   : > { %p7913_p4 = pnand %p7911_p3, %p7908_p2 }
  0x75   : > { %7916 = shalt.err (!%p7913_p4)
}
  0x76   : > { %s7917_s26 = scalar_lea.vmem %s605_s22, 4096  ;;  %p7925_p13 = scmp.lt.s32.totalorder %s605_s22, %s605_s22 }
  0x77   : > { %p7918_p7 = scmp.ne.s32.totalorder %s605_s22, %s7917_s26  ;;  %p7926_p1 = scmp.lt.s32.totalorder %s7917_s26, %s7917_s26 }
  0x79   : > { %p7920_p8 = pnand %p7918_p7, %p8206_p0  ;;  %p7927_p6 = por %p7926_p1, %p7925_p13 }
  0x7b   : > { %p7921_p11 = pneg %p7920_p8 }
  0x7d   : > { %p7928_p9 = pnand %p7927_p6, %p7921_p11 }
  0x7f   : > { %7931 = shalt.err (!%p7928_p9)
}
  0x80   : > { %s10397_s4 = smov 8   ;;  %s10398_s18 = smov 128  }
  0x81   : > { %7761 = dma.hbm_to_vmem [thread:$0]  (!%p8190_p12), %s10350_s17, 4096, %s605_s22, [#allocation16], %s10398_s18, %s10398_s18, %s10397_s4  }
  0x82   : > { %p10399_p5 = scmp.ne.s32.totalorder %s10393_s23, 0 }
  0x83   : > { %p10400_p0 = scmp.eq.s32.totalorder (!%p10399_p5), %s8152_s3, 0 }
  0x84   : > { %637 = sbr.rel (%p10399_p5) target bundleno = 2460 (0x99c), region = 104 }
  0x8b   : > { %7977 = dma.done.wait (%p10400_p0), [#allocation10], 4608   ;;  %p10401_p10 = pmov %p10400_p0 }
  0x8c   : > { %p10402_p2 = pmov %p10400_p0 }
  0x8d   : > { %7979 = vsyncadd (%p10401_p10), [#allocation10], 4294962688 }
  0x8e   : > { %7981 = dma.done.wait (%p10402_p2), [#allocation13], 25600   ;;  %p10403_p3 = pmov %p10400_p0 }
  0x8f   : > { %p10404_p4 = pmov %p10400_p0 }
  0x90   : > { %7983 = vsyncadd (%p10403_p3), [#allocation13], 4294941696 }
  0x91   : > { %7985 = dma.done.wait (%p10404_p4), [#allocation16], 4096   ;;  %p10405_p12 = pmov %p10400_p0 }
  0x92   : > { %p708_p7 = scmp.lt.s32.totalorder %s8152_s3, 1  ;;  %s10406_s25 = sld [smem:[#allocation30_spill]]  ;;  %vm867_vm0 = vcmask 1042432   ;;  %vm770_vm1 = vcmask 220160   ;;  %vm8016_vm2 = vmmov 1   ;;  %vm713_vm4 = vcmask 261120  }
  0x93   : > { %7987 = vsyncadd (%p10405_p12), [#allocation16], 4294963200  ;;  %s10407_s0 = sld [smem:[#allocation31_spill]]  ;;  %v8017_v38 = vmov 0.0   ;;  %v1500_v39 = vld [vmem:[#allocation9 + $0x60] sm:$0xff]  ;;  %v1501_v40 = vld [vmem:[#allocation9 + $0x68] sm:$0xff] }
  0x94   : > { %s709_s21 = scalar_select %p708_p7, %s8152_s3, 1  ;;  %vm6834_vm3 = vmpackc.low %vm867_vm0, %vm8016_vm2  ;;  %715 = vst.msk [vmem:[#allocation3 + $0x8] sm:$0xff] %vm713_vm4, %v8017_v38  ;;  %v6839_v41 = vpack.c.bf16 %v1501_v40, %v1500_v39  ;;  %v1502_v42 = vld [vmem:[#allocation9 + $0x70] sm:$0xff]  ;;  %v1503_v43 = vld [vmem:[#allocation9 + $0x78] sm:$0xff]  ;;  %vm724_vm5 = vcmask 254976   ;;  %vm726_vm6 = vcmask 523264  }
  0x95   : > { %716 = vst.msk [vmem:[#allocation3 + $0x10] sm:$0xff] %vm713_vm4, %v8017_v38  ;;  %714 = vst.msk [vmem:[#allocation3] sm:$0xff] %vm713_vm4, %v8017_v38  ;;  %v6843_v44 = vpack.c.bf16 %v1503_v43, %v1502_v42  ;;  %v2336_v45 = vld [vmem:[#allocation9 + $0xa0] sm:$0xff]  ;;  %v2337_v46 = vld [vmem:[#allocation9 + $0xa8] sm:$0xff]  ;;  %s10409_s19 = sld [smem:[#allocation33_spill]]  ;;  %vm730_vm7 = vcmask 517120  }
  0x96   : > { %s6100_s23 = sshll.u32 %s709_s21, 8  ;;  %717 = vst.msk [vmem:[#allocation3 + $0x18] sm:$0xff] %vm713_vm4, %v8017_v38  ;;  %718 = vst.msk [vmem:[#allocation3 + $0x20] sm:$0xff] %vm713_vm4, %v8017_v38  ;;  %6840 = vmatprep.subr.bf16.mxu1 %v6839_v41  ;;  %v6887_v47 = vpack.c.bf16 %v2337_v46, %v2336_v45  ;;  %v2338_v48 = vld [vmem:[#allocation9 + $0xb0] sm:$0xff]  ;;  %v2339_v49 = vld [vmem:[#allocation9 + $0xb8] sm:$0xff]  ;;  %s10408_s21 = sld [smem:[#allocation32_spill]] }
  0x97   : > { %719 = vst.msk [vmem:[#allocation3 + $0x28] sm:$0xff] %vm713_vm4, %v8017_v38  ;;  %720 = vst.msk [vmem:[#allocation3 + $0x30] sm:$0xff] %vm713_vm4, %v8017_v38  ;;  %6842 = vmatpush3.bf16.msra.mxu1 %v6839_v41  ;;  %v6891_v50 = vpack.c.bf16 %v2339_v49, %v2338_v48  ;;  %v1494_v51 = vld [vmem:[#allocation9] sm:$0xff]  ;;  %v1495_v52 = vld [vmem:[#allocation9 + $0x8] sm:$0xff]  ;;  %s10436_s22 = sld [smem:[#allocation35_spill]]  ;;  %s10443_s1 = sld [smem:[#allocation37_spill]] }
  0x98   : > { %s8315_s5 = scalar_lea.vmem %s10406_s25, %s6100_s23  ;;  %721 = vst.msk [vmem:[#allocation3 + $0x38] sm:$0xff] %vm713_vm4, %v8017_v38  ;;  %722 = vst.msk [vmem:[#allocation3 + $0x40] sm:$0xff] %vm713_vm4, %v8017_v38  ;;  %6844 = vmatprep.subr.bf16.mxu1 %v6843_v44  ;;  %v8415_v53 = vpack.c.bf16 %v1495_v52, %v1494_v51  ;;  %v2330_v54 = vld [vmem:[#allocation9 + $0x40] sm:$0xff]  ;;  %v2331_v55 = vld [vmem:[#allocation9 + $0x48] sm:$0xff]  ;;  %s10445_s26 = sld [smem:[#allocation36_spill]] }
  0x99   : > { %v766_v0 = vld [vmem:[%s10407_s0] sm:$0xff]  ;;  %v767_v1 = vld [vmem:[%s10407_s0 + $0x8] sm:$0xff]  ;;  %v768_v2 = vld [vmem:[%s10407_s0 + $0x10] sm:$0xff]  ;;  %723 = vst.msk [vmem:[#allocation3 + $0x48] sm:$0xff] %vm713_vm4, %v8017_v38  ;;  %v8417_v56 = vpack.c.bf16 %v2331_v55, %v2330_v54  ;;  %s10446_s4 = sld [smem:[#allocation28_spill]]  ;;  %s6097_s23 = sshll.u32 %s8152_s3, 4 }
  0x9a   : > { %v6829_v3 = vpack.c.bf16 %v767_v1, %v766_v0  ;;  %v769_v4 = vld [vmem:[%s10407_s0 + $0x18] sm:$0x7]  ;;  %v734_v5 = vld [vmem:[%s8315_s5] sm:$0xff]  ;;  %v735_v7 = vld [vmem:[%s8315_s5 + $0x8] sm:$0xff]  ;;  %732 = vst [vmem:[#allocation7] sm:$0xff] %v8017_v38  ;;  %s10448_s30 = sld [smem:[#allocation39_spill]] }
  0x9b   : > { %v6833_v6 = vpack.c.bf16 %v769_v4, %v768_v2  ;;  %6395 = vmatprep.mubr.msk.f32.mxu0 %vm770_vm1, %v734_v5  ;;  %v736_v8 = vld [vmem:[%s8315_s5 + $0x10] sm:$0xff]  ;;  %v737_v9 = vld [vmem:[%s8315_s5 + $0x18] sm:$0xff]  ;;  %v738_v10 = vld [vmem:[%s8315_s5 + $0x20] sm:$0xff]  ;;  %733 = vst [vmem:[#allocation7 + $0x8] sm:$0x3] %v8017_v38  ;;  %6846 = vmatpush3.bf16.msra.mxu1 %v6843_v44  ;;  %s8020_s3 = smov [#allocation17]  }
  0x9c   : > { %6830 = vmatprep.subr.bf16.mxu0 %v6829_v3  ;;  %v739_v11 = vld [vmem:[%s8315_s5 + $0x28] sm:$0xff]  ;;  %v740_v12 = vld [vmem:[%s8315_s5 + $0x30] sm:$0xff]  ;;  %v741_v13 = vld [vmem:[%s8315_s5 + $0x38] sm:$0xff]  ;;  %6848 = vmatprep.subr.bf16.mxu1 %v8415_v53  ;;  %725 = vst.msk [vmem:[#allocation3 + $0x50] sm:$0x3] %vm724_vm5, %v8017_v38 }
  0x9d   : > { %6832 = vmatpush3.bf16.msra.mxu0 %v6829_v3  ;;  %v742_v14 = vld [vmem:[%s8315_s5 + $0x40] sm:$0xff]  ;;  %v743_v15 = vld [vmem:[%s8315_s5 + $0x48] sm:$0xff]  ;;  %v744_v16 = vld [vmem:[%s8315_s5 + $0x50] sm:$0xff]  ;;  %727 = vst.msk [vmem:[#allocation5] sm:$0xff] %vm726_vm6, %v8017_v38 }
  0x9e   : > { %6835 = vmatprep.subr.msk.bf16.mxu0 %vm6834_vm3, %v6833_v6  ;;  %v745_v17 = vld [vmem:[%s8315_s5 + $0x58] sm:$0xff]  ;;  %v746_v18 = vld [vmem:[%s8315_s5 + $0x60] sm:$0xff]  ;;  %v747_v19 = vld [vmem:[%s8315_s5 + $0x68] sm:$0xff]  ;;  %728 = vst.msk [vmem:[#allocation5 + $0x8] sm:$0xff] %vm726_vm6, %v8017_v38 }
  0x9f   : > { %v748_v20 = vld [vmem:[%s8315_s5 + $0x70] sm:$0xff]  ;;  %v749_v21 = vld [vmem:[%s8315_s5 + $0x78] sm:$0xff]  ;;  %v750_v22 = vld [vmem:[%s8315_s5 + $0x80] sm:$0xff]  ;;  %729 = vst.msk [vmem:[#allocation5 + $0x10] sm:$0xff] %vm726_vm6, %v8017_v38  ;;  %p10449_p11 = scmp.ne.s32.totalorder %s10446_s4, 0 }
  0xa0   : > { %v751_v23 = vld [vmem:[%s8315_s5 + $0x88] sm:$0xff]  ;;  %v752_v24 = vld [vmem:[%s8315_s5 + $0x90] sm:$0xff]  ;;  %v753_v25 = vld [vmem:[%s8315_s5 + $0x98] sm:$0xff]  ;;  %731 = vst.msk [vmem:[#allocation5 + $0x18] sm:$0x3] %vm730_vm7, %v8017_v38  ;;  %s10291_s27 = scalar_lea.hbm %s10448_s30, %s6097_s23 }
  0xa1   : > { %6838 = vmatpush3.bf16.msk.msra.mxu0 %vm6834_vm3, %v6833_v6  ;;  %v754_v26 = vld [vmem:[%s8315_s5 + $0xa0] sm:$0xff]  ;;  %v755_v27 = vld [vmem:[%s8315_s5 + $0xa8] sm:$0xff]  ;;  %v756_v28 = vld [vmem:[%s8315_s5 + $0xb0] sm:$0xff] }
  0xa2   : > { %v757_v29 = vld [vmem:[%s8315_s5 + $0xb8] sm:$0xff]  ;;  %v758_v30 = vld [vmem:[%s8315_s5 + $0xc0] sm:$0xff]  ;;  %v759_v31 = vld [vmem:[%s8315_s5 + $0xc8] sm:$0xff]  ;;  %6888 = vmatprep.subr.bf16.mxu0 %v6887_v47 }
  0xa3   : > { %v760_v32 = vld [vmem:[%s8315_s5 + $0xd0] sm:$0xff]  ;;  %v761_v33 = vld [vmem:[%s8315_s5 + $0xd8] sm:$0xff]  ;;  %v762_v34 = vld [vmem:[%s8315_s5 + $0xe0] sm:$0xff] }
  0xa4   : > { %6396 = vmatmul.mubr.msk.f32.vlgmr.msra.gmra.mrb[0].mxu0 %vm770_vm1, %v735_v7  ;;  %v763_v35 = vld [vmem:[%s8315_s5 + $0xe8] sm:$0xff]  ;;  %v764_v36 = vld [vmem:[%s8315_s5 + $0xf0] sm:$0xff]  ;;  %v765_v37 = vld [vmem:[%s8315_s5 + $0xf8] sm:$0xff] }
  0xa5   : > { %6398 = vmatprep.mubr.msk.f32.mxu0 %vm770_vm1, %v736_v8  ;;  %6890 = vmatpush3.bf16.msra.mxu0 %v6887_v47  ;;  %v8425_v57 = vld [vmem:[%s10408_s21] ss:$0 sm:$0xff]  ;;  %s10447_s21 = sld [smem:[#allocation38_spill]] }
  0xa6   : > { %6892 = vmatprep.subr.bf16.mxu0 %v6891_v50  ;;  %v8430_v59 = vld [vmem:[%s10409_s19] ss:$0 sm:$0xff]  ;;  %s10444_s19 = sld [smem:[#allocation23_spill]] }
  0xa8   : > { %6399 = vmatmul.mubr.msk.f32.gmra.mrb[2].mxu0 %vm770_vm1, %v737_v9 }
  0xa9   : > { %6401 = vmatprep.mubr.msk.f32.mxu0 %vm770_vm1, %v738_v10  ;;  %6894 = vmatpush3.bf16.msra.mxu0 %v6891_v50 }
  0xaa   : > { %6896 = vmatprep.subr.bf16.mxu0 %v8417_v56 }
  0xac   : > { %6402 = vmatmul.mubr.msk.f32.gmra.mrb[4].mxu0 %vm770_vm1, %v739_v11  ;;  %s706_s18 = sand.u32 1, %s10444_s19  }
  0xad   : > { %6404 = vmatprep.mubr.msk.f32.mxu0 %vm770_vm1, %v740_v12  ;;  %s707_s28 = scalar_lea.vmem [#allocation17], %s706_s18  ;;  %s5568_s19 = scalar_lea.sflag [#allocation11], %s706_s18 }
  0xae   : > { %s5580_s25 = sshll.u32 %s707_s28, 4  ;;  %s10293_s25 = int_to_ptr.vmem [resolvable:$true] %s5580_s25 }
  0xaf   : > { %s7932_s24 = scalar_lea.vmem %s10293_s25, 16 }
  0xb0   : > { %6405 = vmatmul.mubr.msk.f32.gmra.mrb[6].mxu0 %vm770_vm1, %v741_v13  ;;  %p7933_p8 = scmp.ne.s32.totalorder %s10293_s25, %s7932_s24 }
  0xb1   : > { %6407 = vmatprep.mubr.msk.f32.mxu0 %vm770_vm1, %v742_v14 }
  0xb2   : > { %p7934_p13 = pnand %p7933_p8, %p10449_p11 }
  0xb4   : > { %6408 = vmatmul.mubr.msk.f32.gmra.mrb[8].mxu0 %vm770_vm1, %v743_v15  ;;  %p7935_p1 = pneg %p7934_p13 }
  0xb5   : > { %6410 = vmatprep.mubr.msk.f32.mxu0 %vm770_vm1, %v744_v16 }
  0xb8   : > { %6411 = vmatmul.mubr.msk.f32.gmra.mrb[10].mxu0 %vm770_vm1, %v745_v17 }
  0xb9   : > { %6413 = vmatprep.mubr.msk.f32.mxu0 %vm770_vm1, %v746_v18 }
  0xbc   : > { %6414 = vmatmul.mubr.msk.f32.gmra.mrb[12].mxu0 %vm770_vm1, %v747_v19 }
  0xbd   : > { %6416 = vmatprep.mubr.msk.f32.mxu0 %vm770_vm1, %v748_v20 }
  0xc0   : > { %6417 = vmatmul.mubr.msk.f32.gmra.mrb[14].mxu0 %vm770_vm1, %v749_v21 }
  0xc1   : > { %6419 = vmatprep.mubr.msk.f32.mxu0 %vm770_vm1, %v750_v22 }
  0xc4   : > { %6420 = vmatmul.mubr.msk.f32.gmra.mrb[16].mxu0 %vm770_vm1, %v751_v23 }
  0xc5   : > { %6422 = vmatprep.mubr.msk.f32.mxu0 %vm770_vm1, %v752_v24 }
  0xc8   : > { %6423 = vmatmul.mubr.msk.f32.gmra.mrb[18].mxu0 %vm770_vm1, %v753_v25 }
  0xc9   : > { %6425 = vmatprep.mubr.msk.f32.mxu0 %vm770_vm1, %v754_v26 }
  0xcc   : > { %6426 = vmatmul.mubr.msk.f32.gmra.mrb[20].mxu0 %vm770_vm1, %v755_v27 }
  0xcd   : > { %6428 = vmatprep.mubr.msk.f32.mxu0 %vm770_vm1, %v756_v28 }
  0xd0   : > { %6429 = vmatmul.mubr.msk.f32.gmra.mrb[22].mxu0 %vm770_vm1, %v757_v29 }
  0xd1   : > { %6431 = vmatprep.mubr.msk.f32.mxu0 %vm770_vm1, %v758_v30 }
  0xd4   : > { %6432 = vmatmul.mubr.msk.f32.gmra.mrb[24].mxu0 %vm770_vm1, %v759_v31 }
  0xd5   : > { %6434 = vmatprep.mubr.msk.f32.mxu0 %vm770_vm1, %v760_v32 }
  0xd8   : > { %6435 = vmatmul.mubr.msk.f32.gmra.mrb[26].mxu0 %vm770_vm1, %v761_v33 }
  0xd9   : > { %6437 = vmatprep.mubr.msk.f32.mxu0 %vm770_vm1, %v762_v34 }
  0xdc   : > { %6438 = vmatmul.mubr.msk.f32.gmra.mrb[28].mxu0 %vm770_vm1, %v763_v35 }
  0xdd   : > { %6440 = vmatprep.mubr.msk.f32.mxu0 %vm770_vm1, %v764_v36 }
  0xe0   : > { %6441 = vmatmul.mubr.msk.f32.gmra.mrb[30].mxu0 %vm770_vm1, %v765_v37 }
 0x177   : > { %v6397_v58 = vpop.f32.mrb[0].mxu0 }
 0x178   : > { %v1104_v60 = vmul.f32 %v6397_v58, %v8425_v57  ;;  %v937_v61 = vpop.f32.mrb[1].mxu0 }
 0x179   : > { %v1103_v62 = vmul.f32 %v8425_v57, %v937_v61 }
 0x17a   : > { %v1143_v63 = vadd.f32 %v8430_v59, %v1104_v60 }
 0x17b   : > { %v1142_v0 = vadd.f32 %v8430_v59, %v1103_v62  ;;  %v6400_v1 = vpop.f32.mrb[2].mxu0 }
 0x17c   : > { %v1175_v2 = vmax.f32 %v1143_v63, 0.0  ;;  %v1106_v3 = vmul.f32 %v6400_v1, %v8425_v57  ;;  %v947_v4 = vpop.f32.mrb[3].mxu0 }
 0x17d   : > { %v1174_v5 = vmax.f32 %v1142_v0, 0.0  ;;  %v1105_v6 = vmul.f32 %v8425_v57, %v947_v4 }
 0x17e   : > { %1207 = vst.msk [vmem:[#allocation2 + $0x8] sm:$0xff] %vm713_vm4, %v1175_v2  ;;  %v1145_v7 = vadd.f32 %v8430_v59, %v1106_v3 }
 0x17f   : > { %1206 = vst.msk [vmem:[#allocation2] sm:$0xff] %vm713_vm4, %v1174_v5  ;;  %v1144_v8 = vadd.f32 %v8430_v59, %v1105_v6  ;;  %v6403_v9 = vpop.f32.mrb[4].mxu0 }
 0x180   : > { %v1177_v10 = vmax.f32 %v1145_v7, 0.0  ;;  %v1108_v11 = vmul.f32 %v6403_v9, %v8425_v57  ;;  %v957_v12 = vpop.f32.mrb[5].mxu0 }
 0x181   : > { %v1176_v13 = vmax.f32 %v1144_v8, 0.0  ;;  %v1107_v14 = vmul.f32 %v8425_v57, %v957_v12 }
 0x182   : > { %1209 = vst.msk [vmem:[#allocation2 + $0x18] sm:$0xff] %vm713_vm4, %v1177_v10  ;;  %v1147_v15 = vadd.f32 %v8430_v59, %v1108_v11 }
 0x183   : > { %1208 = vst.msk [vmem:[#allocation2 + $0x10] sm:$0xff] %vm713_vm4, %v1176_v13  ;;  %v1146_v16 = vadd.f32 %v8430_v59, %v1107_v14  ;;  %v6406_v17 = vpop.f32.mrb[6].mxu0 }
 0x184   : > { %v1179_v18 = vmax.f32 %v1147_v15, 0.0  ;;  %v1110_v19 = vmul.f32 %v6406_v17, %v8425_v57  ;;  %v967_v20 = vpop.f32.mrb[7].mxu0 }
 0x185   : > { %v1178_v21 = vmax.f32 %v1146_v16, 0.0  ;;  %v1109_v22 = vmul.f32 %v8425_v57, %v967_v20 }
 0x186   : > { %1211 = vst.msk [vmem:[#allocation2 + $0x28] sm:$0xff] %vm713_vm4, %v1179_v18  ;;  %v1149_v23 = vadd.f32 %v8430_v59, %v1110_v19  ;;  %v1238_v26 = vld [vmem:[#allocation2] ss:$2 sm:$0xff]  ;;  %v1240_v27 = vld [vmem:[#allocation2 + $0x1] ss:$2 sm:$0xff] }
 0x187   : > { %1210 = vst.msk [vmem:[#allocation2 + $0x20] sm:$0xff] %vm713_vm4, %v1178_v21  ;;  %v1148_v24 = vadd.f32 %v8430_v59, %v1109_v22  ;;  %v6409_v25 = vpop.f32.mrb[8].mxu0  ;;  %v1241_v36 = vmax.f32 %v1238_v26, %v1240_v27  ;;  %v1496_v21 = vld [vmem:[#allocation9 + $0x10] sm:$0xff] }
 0x188   : > { %v1181_v28 = vmax.f32 %v1149_v23, 0.0  ;;  %v1112_v29 = vmul.f32 %v6409_v25, %v8425_v57  ;;  %v977_v30 = vpop.f32.mrb[9].mxu0  ;;  %v1497_v25 = vld [vmem:[#allocation9 + $0x18] sm:$0xff] }
 0x189   : > { %v1180_v31 = vmax.f32 %v1148_v24, 0.0  ;;  %v1111_v32 = vmul.f32 %v8425_v57, %v977_v30 }
 0x18a   : > { %v1243_v33 = vld [vmem:[#allocation2 + $0x10] ss:$2 sm:$0xff]  ;;  %v1245_v34 = vld [vmem:[#allocation2 + $0x11] ss:$2 sm:$0xff]  ;;  %1213 = vst.msk [vmem:[#allocation2 + $0x38] sm:$0xff] %vm713_vm4, %v1181_v28  ;;  %v1151_v35 = vadd.f32 %v8430_v59, %v1112_v29 }
 0x18b   : > { %v1246_v37 = vmax.f32 %v1243_v33, %v1245_v34  ;;  %1212 = vst.msk [vmem:[#allocation2 + $0x30] sm:$0xff] %vm713_vm4, %v1180_v31  ;;  %v1150_v39 = vadd.f32 %v8430_v59, %v1111_v32  ;;  %v6412_v40 = vpop.f32.mrb[10].mxu0 }
 0x18c   : > { %v1183_v41 = vmax.f32 %v1151_v35, 0.0  ;;  %v1114_v42 = vmul.f32 %v6412_v40, %v8425_v57  ;;  %v987_v43 = vpop.f32.mrb[11].mxu0  ;;  %v1750_v40 = vld [vmem:[#allocation9 + $0xc0] sm:$0xff] }
 0x18d   : > { %v1247_v44 = vmax.f32 %v1241_v36, %v1246_v37  ;;  %v1182_v45 = vmax.f32 %v1150_v39, 0.0  ;;  %v1113_v46 = vmul.f32 %v8425_v57, %v987_v43  ;;  %v6851_v36 = vpack.c.bf16 %v1497_v25, %v1496_v21 }
 0x18e   : > { %1215 = vst.msk [vmem:[#allocation2 + $0x48] sm:$0xff] %vm713_vm4, %v1183_v41  ;;  %v1153_v47 = vadd.f32 %v8430_v59, %v1114_v42  ;;  %v1250_v50 = vld [vmem:[#allocation2 + $0x20] ss:$2 sm:$0xff]  ;;  %v1252_v51 = vld [vmem:[#allocation2 + $0x21] ss:$2 sm:$0xff] }
 0x18f   : > { %1214 = vst.msk [vmem:[#allocation2 + $0x40] sm:$0xff] %vm713_vm4, %v1182_v45  ;;  %v1152_v48 = vadd.f32 %v8430_v59, %v1113_v46  ;;  %v6415_v49 = vpop.f32.mrb[12].mxu0  ;;  %1248 = vst.msk [vmem:[#allocation3 + $0x9] sm:$0xff] %vm713_vm4, %v1247_v44  ;;  %v1253_v0 = vmax.f32 %v1250_v50, %v1252_v51  ;;  %v1751_v41 = vld [vmem:[#allocation9 + $0xc8] sm:$0xff] }
 0x190   : > { %v1185_v52 = vmax.f32 %v1153_v47, 0.0  ;;  %v1116_v54 = vmul.f32 %v6415_v49, %v8425_v57  ;;  %v997_v55 = vpop.f32.mrb[13].mxu0 }
 0x191   : > { %v1184_v58 = vmax.f32 %v1152_v48, 0.0  ;;  %v1115_v60 = vmul.f32 %v8425_v57, %v997_v55 }
 0x192   : > { %v1255_v61 = vld [vmem:[#allocation2 + $0x30] ss:$2 sm:$0xff]  ;;  %v1257_v62 = vld [vmem:[#allocation2 + $0x31] ss:$2 sm:$0xff]  ;;  %1217 = vst.msk [vmem:[#allocation2 + $0x58] sm:$0xff] %vm713_vm4, %v1185_v52  ;;  %v1155_v63 = vadd.f32 %v8430_v59, %v1116_v54  ;;  %v8508_v52 = vpack.c.bf16 %v1751_v41, %v1750_v40 }
 0x193   : > { %v1258_v1 = vmax.f32 %v1255_v61, %v1257_v62  ;;  %1216 = vst.msk [vmem:[#allocation2 + $0x50] sm:$0xff] %vm713_vm4, %v1184_v58  ;;  %v1154_v2 = vadd.f32 %v8430_v59, %v1115_v60  ;;  %v6418_v3 = vpop.f32.mrb[14].mxu0 }
 0x194   : > { %v1187_v4 = vmax.f32 %v1155_v63, 0.0  ;;  %v1118_v5 = vmul.f32 %v6418_v3, %v8425_v57  ;;  %v1007_v6 = vpop.f32.mrb[15].mxu0 }
 0x195   : > { %v1259_v7 = vmax.f32 %v1253_v0, %v1258_v1  ;;  %v1186_v8 = vmax.f32 %v1154_v2, 0.0  ;;  %v1117_v9 = vmul.f32 %v8425_v57, %v1007_v6  ;;  %v2333_v0 = vld [vmem:[#allocation9 + $0x58] sm:$0xff] }
 0x196   : > { %1219 = vst.msk [vmem:[#allocation2 + $0x68] sm:$0xff] %vm713_vm4, %v1187_v4  ;;  %v1157_v10 = vadd.f32 %v8430_v59, %v1118_v5  ;;  %v8477_v11 = vld [vmem:[#allocation3 + $0x8] sm:$0xff] }
 0x197   : > { %1218 = vst.msk [vmem:[#allocation2 + $0x60] sm:$0xff] %vm713_vm4, %v1186_v8  ;;  %v1156_v12 = vadd.f32 %v8430_v59, %v1117_v9  ;;  %v6421_v13 = vpop.f32.mrb[16].mxu0  ;;  %6451 = vmatprep.mubr.msk.f32.mxu1 %vm713_vm4, %v8477_v11  ;;  %1260 = vst.msk [vmem:[#allocation3 + $0x11] sm:$0xff] %vm713_vm4, %v1259_v7  ;;  %v1262_v14 = vld [vmem:[#allocation2 + $0x40] ss:$2 sm:$0xff] }
 0x198   : > { %v1264_v15 = vld [vmem:[#allocation2 + $0x41] ss:$2 sm:$0xff]  ;;  %v1189_v16 = vmax.f32 %v1157_v10, 0.0  ;;  %v1120_v17 = vmul.f32 %v6421_v13, %v8425_v57  ;;  %v1017_v18 = vpop.f32.mrb[17].mxu0 }
 0x199   : > { %v1188_v19 = vmax.f32 %v1156_v12, 0.0  ;;  %v1119_v20 = vmul.f32 %v8425_v57, %v1017_v18  ;;  %v1265_v26 = vmax.f32 %v1262_v14, %v1264_v15  ;;  %v2586_v14 = vld [vmem:[#allocation9 + $0x100] sm:$0xff]  ;;  %v2587_v15 = vld [vmem:[#allocation9 + $0x108] sm:$0xff] }
 0x19a   : > { %v1267_v22 = vld [vmem:[#allocation2 + $0x50] ss:$2 sm:$0xff]  ;;  %v1269_v23 = vld [vmem:[#allocation2 + $0x51] ss:$2 sm:$0xff]  ;;  %1221 = vst.msk [vmem:[#allocation2 + $0x78] sm:$0xff] %vm713_vm4, %v1189_v16  ;;  %v1159_v24 = vadd.f32 %v8430_v59, %v1120_v17 }
 0x19b   : > { %v1270_v27 = vmax.f32 %v1267_v22, %v1269_v23  ;;  %1220 = vst.msk [vmem:[#allocation2 + $0x70] sm:$0xff] %vm713_vm4, %v1188_v19  ;;  %v1158_v28 = vadd.f32 %v8430_v59, %v1119_v20  ;;  %v6424_v29 = vpop.f32.mrb[18].mxu0 }
 0x19c   : > { %v1191_v30 = vmax.f32 %v1159_v24, 0.0  ;;  %v1122_v31 = vmul.f32 %v6424_v29, %v8425_v57  ;;  %v1027_v32 = vpop.f32.mrb[19].mxu0 }
 0x19d   : > { %v1271_v33 = vmax.f32 %v1265_v26, %v1270_v27  ;;  %v1190_v34 = vmax.f32 %v1158_v28, 0.0  ;;  %v1121_v35 = vmul.f32 %v8425_v57, %v1027_v32  ;;  %v8535_v26 = vpack.c.bf16 %v2587_v15, %v2586_v14 }
 0x19e   : > { %1223 = vst.msk [vmem:[#allocation2 + $0x88] sm:$0xff] %vm713_vm4, %v1191_v30  ;;  %v1161_v37 = vadd.f32 %v8430_v59, %v1122_v31  ;;  %v8494_v39 = vld [vmem:[#allocation3 + $0x10] sm:$0xff]  ;;  %v1274_v45 = vld [vmem:[#allocation2 + $0x60] ss:$2 sm:$0xff]  ;;  %v1276_v46 = vld [vmem:[#allocation2 + $0x61] ss:$2 sm:$0xff] }
 0x19f   : > { %1222 = vst.msk [vmem:[#allocation2 + $0x80] sm:$0xff] %vm713_vm4, %v1190_v34  ;;  %1272 = vst.msk [vmem:[#allocation3 + $0x19] sm:$0xff] %vm713_vm4, %v1271_v33  ;;  %v1160_v42 = vadd.f32 %v8430_v59, %v1121_v35  ;;  %v6427_v43 = vpop.f32.mrb[20].mxu0  ;;  %6452 = vmatmul.mubr.msk.f32.vlgmr.msra.gmra.mrb[0].mxu1 %vm713_vm4, %v8494_v39  ;;  %v8501_v44 = vld [vmem:[#allocation3 + $0xa] sm:$0xff]  ;;  %v1277_v60 = vmax.f32 %v1274_v45, %v1276_v46 }
 0x1a0   : > { %v1193_v47 = vmax.f32 %v1161_v37, 0.0  ;;  %v1124_v48 = vmul.f32 %v6427_v43, %v8425_v57  ;;  %6571 = vmatprep.mubr.msk.f32.mxu0 %vm713_vm4, %v8501_v44  ;;  %v1037_v49 = vpop.f32.mrb[21].mxu0  ;;  %6850 = vmatpush3.bf16.msra.mxu1 %v8415_v53  ;;  %v2332_v53 = vld [vmem:[#allocation9 + $0x50] sm:$0xff] }
 0x1a1   : > { %v1192_v50 = vmax.f32 %v1160_v42, 0.0  ;;  %v1123_v51 = vmul.f32 %v8425_v57, %v1037_v49  ;;  %6852 = vmatprep.subr.bf16.mxu1 %v6851_v36  ;;  %v6899_v9 = vpack.c.bf16 %v2333_v0, %v2332_v53 }
 0x1a2   : > { %v1279_v54 = vld [vmem:[#allocation2 + $0x70] ss:$2 sm:$0xff]  ;;  %v1281_v55 = vld [vmem:[#allocation2 + $0x71] ss:$2 sm:$0xff]  ;;  %1225 = vst.msk [vmem:[#allocation2 + $0x98] sm:$0xff] %vm713_vm4, %v1193_v47  ;;  %v1163_v58 = vadd.f32 %v8430_v59, %v1124_v48 }
 0x1a3   : > { %v1282_v61 = vmax.f32 %v1279_v54, %v1281_v55  ;;  %1224 = vst.msk [vmem:[#allocation2 + $0x90] sm:$0xff] %vm713_vm4, %v1192_v50  ;;  %v1162_v62 = vadd.f32 %v8430_v59, %v1123_v51  ;;  %v6430_v63 = vpop.f32.mrb[22].mxu0 }
 0x1a4   : > { %v1195_v1 = vmax.f32 %v1163_v58, 0.0  ;;  %v1126_v2 = vmul.f32 %v6430_v63, %v8425_v57  ;;  %v1047_v3 = vpop.f32.mrb[23].mxu0  ;;  %6854 = vmatpush3.bf16.msra.mxu1 %v6851_v36 }
 0x1a5   : > { %v1283_v4 = vmax.f32 %v1277_v60, %v1282_v61  ;;  %v1194_v5 = vmax.f32 %v1162_v62, 0.0  ;;  %v1125_v6 = vmul.f32 %v8425_v57, %v1047_v3  ;;  %6856 = vmatprep.subr.bf16.mxu1 %v8508_v52 }
 0x1a6   : > { %1227 = vst.msk [vmem:[#allocation2 + $0xa8] sm:$0xff] %vm713_vm4, %v1195_v1  ;;  %v1165_v7 = vadd.f32 %v8430_v59, %v1126_v2  ;;  %v8519_v8 = vld [vmem:[#allocation3 + $0x18] sm:$0xff]  ;;  %v1286_v16 = vld [vmem:[#allocation2 + $0x80] ss:$2 sm:$0xff]  ;;  %v1288_v17 = vld [vmem:[#allocation2 + $0x81] ss:$2 sm:$0xff] }
 0x1a7   : > { %1284 = vst.msk [vmem:[#allocation3 + $0x21] sm:$0xff] %vm713_vm4, %v1283_v4  ;;  %1226 = vst.msk [vmem:[#allocation2 + $0xa0] sm:$0xff] %vm713_vm4, %v1194_v5  ;;  %v1164_v10 = vadd.f32 %v8430_v59, %v1125_v6  ;;  %v6433_v12 = vpop.f32.mrb[24].mxu0  ;;  %6454 = vmatprep.mubr.msk.f32.mxu1 %vm713_vm4, %v8519_v8  ;;  %v8526_v13 = vld [vmem:[#allocation3 + $0x12] sm:$0xff]  ;;  %v1289_v27 = vmax.f32 %v1286_v16, %v1288_v17 }
 0x1a8   : > { %v1197_v18 = vmax.f32 %v1165_v7, 0.0  ;;  %v1128_v19 = vmul.f32 %v6433_v12, %v8425_v57  ;;  %6572 = vmatmul.mubr.msk.f32.vlgmr.msra.gmra.mrb[32].mxu0 %vm713_vm4, %v8526_v13  ;;  %v1057_v20 = vpop.f32.mrb[25].mxu0 }
 0x1a9   : > { %v1196_v21 = vmax.f32 %v1164_v10, 0.0  ;;  %v1127_v22 = vmul.f32 %v8425_v57, %v1057_v20  ;;  %6898 = vmatpush3.bf16.msra.mxu0 %v8417_v56 }
 0x1aa   : > { %v1291_v23 = vld [vmem:[#allocation2 + $0x90] ss:$2 sm:$0xff]  ;;  %v1293_v24 = vld [vmem:[#allocation2 + $0x91] ss:$2 sm:$0xff]  ;;  %1229 = vst.msk [vmem:[#allocation2 + $0xb8] sm:$0xff] %vm713_vm4, %v1197_v18  ;;  %v1167_v25 = vadd.f32 %v8430_v59, %v1128_v19  ;;  %6900 = vmatprep.subr.bf16.mxu0 %v6899_v9 }
 0x1ab   : > { %v1294_v28 = vmax.f32 %v1291_v23, %v1293_v24  ;;  %1228 = vst.msk [vmem:[#allocation2 + $0xb0] sm:$0xff] %vm713_vm4, %v1196_v21  ;;  %v1166_v29 = vadd.f32 %v8430_v59, %v1127_v22  ;;  %v6436_v30 = vpop.f32.mrb[26].mxu0 }
 0x1ac   : > { %v1199_v31 = vmax.f32 %v1167_v25, 0.0  ;;  %v1130_v32 = vmul.f32 %v6436_v30, %v8425_v57  ;;  %v1067_v56 = vpop.f32.mrb[27].mxu0  ;;  %v1486_v30 = vld [vmem:[#allocation3] sm:$0xff] }
 0x1ad   : > { %v1295_v33 = vmax.f32 %v1289_v27, %v1294_v28  ;;  %v1198_v34 = vmax.f32 %v1166_v29, 0.0  ;;  %v1129_v35 = vmul.f32 %v8425_v57, %v1067_v56  ;;  %6902 = vmatpush3.bf16.msra.mxu0 %v6899_v9 }
 0x1ae   : > { %1231 = vst.msk [vmem:[#allocation2 + $0xc8] sm:$0xff] %vm713_vm4, %v1199_v31  ;;  %v1169_v36 = vadd.f32 %v8430_v59, %v1130_v32  ;;  %v8543_v37 = vld [vmem:[#allocation3 + $0x20] sm:$0xff]  ;;  %6904 = vmatprep.subr.bf16.mxu0 %v8535_v26  ;;  %v1752_v31 = vld [vmem:[#allocation9 + $0xd0] sm:$0xff]  ;;  %v1753_v32 = vld [vmem:[#allocation9 + $0xd8] sm:$0xff] }
 0x1af   : > { %1296 = vst.msk [vmem:[#allocation3 + $0x29] sm:$0xff] %vm713_vm4, %v1295_v33  ;;  %1230 = vst.msk [vmem:[#allocation2 + $0xc0] sm:$0xff] %vm713_vm4, %v1198_v34  ;;  %v1168_v40 = vadd.f32 %v8430_v59, %v1129_v35  ;;  %v6439_v41 = vpop.f32.mrb[28].mxu0  ;;  %6455 = vmatmul.mubr.msk.f32.gmra.mrb[2].mxu1 %vm713_vm4, %v8543_v37  ;;  %v8551_v42 = vld [vmem:[#allocation3 + $0x1a] sm:$0xff]  ;;  %v2321_v35 = vld [vmem:[#allocation3 + $0x2] sm:$0xff] }
 0x1b0   : > { %v1298_v43 = vld [vmem:[#allocation2 + $0xa0] ss:$2 sm:$0xff]  ;;  %v1300_v45 = vld [vmem:[#allocation2 + $0xa1] ss:$2 sm:$0xff]  ;;  %v1201_v46 = vmax.f32 %v1169_v36, 0.0  ;;  %v1132_v47 = vmul.f32 %v6439_v41, %v8425_v57  ;;  %6574 = vmatprep.mubr.msk.f32.mxu0 %vm713_vm4, %v8551_v42  ;;  %v1077_v48 = vpop.f32.mrb[29].mxu0  ;;  %v6859_v41 = vpack.c.bf16 %v1753_v32, %v1752_v31 }
 0x1b1   : > { %v1200_v49 = vmax.f32 %v1168_v40, 0.0  ;;  %v1131_v50 = vmul.f32 %v8425_v57, %v1077_v48  ;;  %v1301_v58 = vmax.f32 %v1298_v43, %v1300_v45  ;;  %v2588_v36 = vld [vmem:[#allocation9 + $0x110] sm:$0xff]  ;;  %v2589_v40 = vld [vmem:[#allocation9 + $0x118] sm:$0xff]  ;;  %v1922_v43 = vld [vmem:[#allocation9 + $0x80] sm:$0xff] }
 0x1b2   : > { %v1303_v51 = vld [vmem:[#allocation2 + $0xb0] ss:$2 sm:$0xff]  ;;  %v1305_v54 = vld [vmem:[#allocation2 + $0xb1] ss:$2 sm:$0xff]  ;;  %1233 = vst.msk [vmem:[#allocation2 + $0xd8] sm:$0xff] %vm713_vm4, %v1201_v46  ;;  %v1171_v55 = vadd.f32 %v8430_v59, %v1132_v47  ;;  %v1923_v45 = vld [vmem:[#allocation9 + $0x88] sm:$0xff]  ;;  %v6907_v46 = vpack.c.bf16 %v2589_v40, %v2588_v36 }
 0x1b3   : > { %v1306_v60 = vmax.f32 %v1303_v51, %v1305_v54  ;;  %1232 = vst.msk [vmem:[#allocation2 + $0xd0] sm:$0xff] %vm713_vm4, %v1200_v49  ;;  %v1170_v61 = vadd.f32 %v8430_v59, %v1131_v50  ;;  %v6442_v62 = vpop.f32.mrb[30].mxu0  ;;  %v6863_v47 = vpack.c.bf16 %v1923_v45, %v1922_v43  ;;  %v1917_v48 = vld [vmem:[#allocation9 + $0x28] sm:$0xff]  ;;  %v1909_v51 = vld [vmem:[#allocation3 + $0x11] sm:$0xff]  ;;  %v2172_v54 = vld [vmem:[#allocation9 + $0xe0] sm:$0xff] }
 0x1b4   : > { %v1203_v63 = vmax.f32 %v1171_v55, 0.0  ;;  %v1134_v53 = vmul.f32 %v6442_v62, %v8425_v57  ;;  %v1087_v0 = vpop.f32.mrb[31].mxu0  ;;  %v1908_v49 = vld [vmem:[#allocation3 + $0x9] sm:$0xff]  ;;  %v2875_v31 = vld [vmem:[#allocation12] sm:$0xff] }
 0x1b5   : > { %v1307_v1 = vmax.f32 %v1301_v58, %v1306_v60  ;;  %v1202_v2 = vmax.f32 %v1170_v61, 0.0  ;;  %v1133_v3 = vmul.f32 %v8425_v57, %v1087_v0  ;;  %v2173_v55 = vld [vmem:[#allocation9 + $0xe8] sm:$0xff]  ;;  %v1910_v58 = vld [vmem:[#allocation3 + $0x19] sm:$0xff] }
 0x1b6   : > { %1235 = vst.msk [vmem:[#allocation2 + $0xe8] sm:$0xff] %vm713_vm4, %v1203_v63  ;;  %v1173_v4 = vadd.f32 %v8430_v59, %v1134_v53  ;;  %v8565_v5 = vld [vmem:[#allocation3 + $0x28] sm:$0xff]  ;;  %v6879_v60 = vpack.c.bf16 %v2173_v55, %v2172_v54 }
 0x1b7   : > { %1308 = vst.msk [vmem:[#allocation3 + $0x31] sm:$0xff] %vm713_vm4, %v1307_v1  ;;  %1234 = vst.msk [vmem:[#allocation2 + $0xe0] sm:$0xff] %vm713_vm4, %v1202_v2  ;;  %v1172_v6 = vadd.f32 %v8430_v59, %v1133_v3  ;;  %6457 = vmatprep.mubr.msk.f32.mxu1 %vm713_vm4, %v8565_v5  ;;  %v8572_v7 = vld [vmem:[#allocation3 + $0x22] sm:$0xff]  ;;  %v2174_v2 = vld [vmem:[#allocation9 + $0xf0] sm:$0xff] }
 0x1b8   : > { %v1310_v9 = vld [vmem:[#allocation2 + $0xc0] ss:$2 sm:$0xff]  ;;  %v1312_v10 = vld [vmem:[#allocation2 + $0xc1] ss:$2 sm:$0xff]  ;;  %v1205_v57 = vmax.f32 %v1173_v4, 0.0  ;;  %6575 = vmatmul.mubr.msk.f32.gmra.mrb[34].mxu0 %vm713_vm4, %v8572_v7  ;;  %v2175_v3 = vld [vmem:[#allocation9 + $0xf8] sm:$0xff] }
 0x1b9   : > { %v1204_v12 = vmax.f32 %v1172_v6, 0.0  ;;  %v1313_v16 = vmax.f32 %v1310_v9, %v1312_v10  ;;  %v1911_v61 = vld [vmem:[#allocation3 + $0x21] sm:$0xff]  ;;  %v1912_v62 = vld [vmem:[#allocation3 + $0x29] sm:$0xff]  ;;  %v6883_v4 = vpack.c.bf16 %v2175_v3, %v2174_v2 }
 0x1ba   : > { %v1315_v14 = vld [vmem:[#allocation2 + $0xd0] ss:$2 sm:$0xff]  ;;  %v1317_v15 = vld [vmem:[#allocation2 + $0xd1] ss:$2 sm:$0xff]  ;;  %1237 = vst.msk [vmem:[#allocation2 + $0xf8] sm:$0xff] %vm713_vm4, %v1205_v57  ;;  %v1907_v0 = vld [vmem:[#allocation3 + $0x1] sm:$0xff] }
 0x1bb   : > { %v1318_v17 = vmax.f32 %v1315_v14, %v1317_v15  ;;  %1236 = vst.msk [vmem:[#allocation2 + $0xf0] sm:$0xff] %vm713_vm4, %v1204_v12  ;;  %v2886_v6 = vld [vmem:[#allocation12 + $0xc0] sm:$0xff]  ;;  %v3169_v57 = vld [vmem:[#allocation12 + $0x108] sm:$0xff]  ;;  %v2888_v14 = vld [vmem:[#allocation12 + $0xd0] sm:$0xff] }
 0x1bc   : > { %v3168_v9 = vld [vmem:[#allocation12 + $0x100] sm:$0xff]  ;;  %v2889_v15 = vld [vmem:[#allocation12 + $0xd8] sm:$0xff]  ;;  %v2876_v32 = vld [vmem:[#allocation12 + $0x8] sm:$0xff] }
 0x1bd   : > { %v1319_v59 = vmax.f32 %v1313_v16, %v1318_v17  ;;  %v6959_v12 = vpack.c.bf16 %v3169_v57, %v3168_v9  ;;  %v3170_v16 = vld [vmem:[#allocation12 + $0x110] sm:$0xff]  ;;  %v6915_v17 = vpack.c.bf16 %v2889_v15, %v2888_v14  ;;  %v8749_v9 = vld [vmem:[#allocation7] sm:$0xff] }
 0x1be   : > { %v8578_v18 = vld [vmem:[#allocation3 + $0x30] sm:$0xff]  ;;  %v1322_v20 = vld [vmem:[#allocation2 + $0xe0] ss:$2 sm:$0xff]  ;;  %v1324_v21 = vld [vmem:[#allocation2 + $0xe1] ss:$2 sm:$0xff] }
 0x1bf   : > { %1320 = vst.msk [vmem:[#allocation3 + $0x39] sm:$0xff] %vm713_vm4, %v1319_v59  ;;  %6458 = vmatmul.mubr.msk.f32.gmra.mrb[4].mxu1 %vm713_vm4, %v8578_v18  ;;  %v8583_v19 = vld [vmem:[#allocation3 + $0x2a] sm:$0xff]  ;;  %v1325_v24 = vmax.f32 %v1322_v20, %v1324_v21  ;;  %v3171_v59 = vld [vmem:[#allocation12 + $0x118] sm:$0xff]  ;;  %v3172_v21 = vld [vmem:[#allocation12 + $0x120] sm:$0xff] }
 0x1c0   : > { %6577 = vmatprep.mubr.msk.f32.mxu0 %vm713_vm4, %v8583_v19  ;;  %v1913_v63 = vld [vmem:[#allocation3 + $0x31] sm:$0xff]  ;;  %v2891_v20 = vld [vmem:[#allocation12 + $0xe8] sm:$0xff] }
 0x1c2   : > { %v1327_v22 = vld [vmem:[#allocation2 + $0xf0] ss:$2 sm:$0xff]  ;;  %v1329_v23 = vld [vmem:[#allocation2 + $0xf1] ss:$2 sm:$0xff] }
 0x1c3   : > { %v1330_v25 = vmax.f32 %v1327_v22, %v1329_v23  ;;  %v3173_v23 = vld [vmem:[#allocation12 + $0x128] sm:$0xff] }
 0x1c5   : > { %v1331_v27 = vmax.f32 %v1325_v24, %v1330_v25  ;;  %v6967_v24 = vpack.c.bf16 %v3173_v23, %v3172_v21  ;;  %v2892_v25 = vld [vmem:[#allocation12 + $0xf0] sm:$0xff] }
 0x1c6   : > { %v8587_v28 = vld [vmem:[#allocation3 + $0x38] sm:$0xff] }
 0x1c7   : > { %v8589_v29 = vld [vmem:[#allocation3 + $0x32] sm:$0xff]  ;;  %1332 = vst.msk [vmem:[#allocation3 + $0x41] sm:$0xff] %vm713_vm4, %v1331_v27  ;;  %6460 = vmatprep.mubr.msk.f32.mxu1 %vm713_vm4, %v8587_v28 }
 0x1c8   : > { %6578 = vmatmul.mubr.msk.f32.gmra.mrb[36].mxu0 %vm713_vm4, %v8589_v29  ;;  %v1914_v53 = vld [vmem:[#allocation3 + $0x39] sm:$0xff] }
 0x1c9   : > { %v2893_v27 = vld [vmem:[#allocation12 + $0xf8] sm:$0xff] }
 0x1ce   : > { %v1498_v56 = vld [vmem:[#allocation3 + $0x40] sm:$0xff] }
 0x1cf   : > { %v2328_v33 = vld [vmem:[#allocation3 + $0x3a] sm:$0xff]  ;;  %v2334_v34 = vld [vmem:[#allocation3 + $0x42] sm:$0xff]  ;;  %6461 = vmatmul.mubr.msk.f32.gmra.mrb[6].mxu1 %vm713_vm4, %v1498_v56 }
 0x1d0   : > { %6580 = vmatprep.mubr.msk.f32.mxu0 %vm713_vm4, %v2328_v33  ;;  %6471 = vmatprep.mubr.msk.f32.mxu1 %vm713_vm4, %v1486_v30  ;;  %v1920_v1 = vld [vmem:[#allocation3 + $0x41] sm:$0xff]  ;;  %v3175_v30 = vld [vmem:[#allocation12 + $0x138] sm:$0xff] }
 0x1d1   : > { %6581 = vmatmul.mubr.msk.f32.gmra.mrb[38].mxu0 %vm713_vm4, %v2334_v34 }
 0x1d2   : > { %6591 = vmatprep.mubr.msk.f32.mxu0 %vm713_vm4, %v2321_v35  ;;  %v3158_v35 = vld [vmem:[#allocation12 + $0x48] sm:$0xff] }
 0x1d3   : > { %6472 = vmatmul.mubr.msk.f32.vlgmr.msra.gmra.mrb[0].mxu1 %vm713_vm4, %v8477_v11  ;;  %v1924_v11 = vld [vmem:[#allocation9 + $0x90] sm:$0xff] }
 0x1d4   : > { %6858 = vmatpush3.bf16.msra.mxu1 %v8508_v52  ;;  %6474 = vmatprep.mubr.msk.f32.mxu1 %vm713_vm4, %v8494_v39 }
 0x1d5   : > { %6592 = vmatmul.mubr.msk.f32.vlgmr.msra.gmra.mrb[32].mxu0 %vm713_vm4, %v8501_v44  ;;  %6860 = vmatprep.subr.bf16.mxu1 %v6859_v41  ;;  %v1925_v44 = vld [vmem:[#allocation9 + $0x98] sm:$0xff] }
 0x1d6   : > { %6594 = vmatprep.mubr.msk.f32.mxu0 %vm713_vm4, %v8526_v13  ;;  %6906 = vmatpush3.bf16.msra.mxu0 %v8535_v26  ;;  %v6867_v52 = vpack.c.bf16 %v1925_v44, %v1924_v11  ;;  %v1916_v26 = vld [vmem:[#allocation9 + $0x20] sm:$0xff] }
 0x1d7   : > { %6475 = vmatmul.mubr.msk.f32.gmra.mrb[2].mxu1 %vm713_vm4, %v8519_v8  ;;  %6908 = vmatprep.subr.bf16.mxu0 %v6907_v46 }
 0x1d8   : > { %6477 = vmatprep.mubr.msk.f32.mxu1 %vm713_vm4, %v8543_v37  ;;  %6862 = vmatpush3.bf16.msra.mxu1 %v6859_v41 }
 0x1d9   : > { %6595 = vmatmul.mubr.msk.f32.gmra.mrb[34].mxu0 %vm713_vm4, %v8551_v42  ;;  %6864 = vmatprep.subr.bf16.mxu1 %v6863_v47 }
 0x1da   : > { %6597 = vmatprep.mubr.msk.f32.mxu0 %vm713_vm4, %v8572_v7  ;;  %6910 = vmatpush3.bf16.msra.mxu0 %v6907_v46 }
 0x1db   : > { %6478 = vmatmul.mubr.msk.f32.gmra.mrb[4].mxu1 %vm713_vm4, %v8565_v5  ;;  %6960 = vmatprep.subr.bf16.mxu0 %v6959_v12 }
 0x1dc   : > { %6480 = vmatprep.mubr.msk.f32.mxu1 %vm713_vm4, %v8578_v18 }
 0x1dd   : > { %6598 = vmatmul.mubr.msk.f32.gmra.mrb[36].mxu0 %vm713_vm4, %v8583_v19 }
 0x1de   : > { %6600 = vmatprep.mubr.msk.f32.mxu0 %vm713_vm4, %v8589_v29 }
 0x1df   : > { %6481 = vmatmul.mubr.msk.f32.gmra.mrb[6].mxu1 %vm713_vm4, %v8587_v28 }
 0x1e0   : > { %6491 = vmatprep.mubr.msk.f32.mxu1 %vm713_vm4, %v8494_v39  ;;  %v6871_v39 = vpack.c.bf16 %v1917_v48, %v1916_v26 }
 0x1e1   : > { %6601 = vmatmul.mubr.msk.f32.gmra.mrb[38].mxu0 %vm713_vm4, %v2328_v33 }
 0x1e2   : > { %6611 = vmatprep.mubr.msk.f32.mxu0 %vm713_vm4, %v8526_v13  ;;  %v1748_v13 = vld [vmem:[#allocation3 + $0x48] sm:$0xff] }
 0x1e3   : > { %6492 = vmatmul.mubr.msk.f32.vlgmr.msra.gmra.mrb[0].mxu1 %vm713_vm4, %v8519_v8  ;;  %v2584_v8 = vld [vmem:[#allocation3 + $0x4a] sm:$0xff] }
 0x1e4   : > { %6866 = vmatpush3.bf16.msra.mxu1 %v6863_v47  ;;  %6494 = vmatprep.mubr.msk.f32.mxu1 %vm713_vm4, %v8543_v37  ;;  %v1918_v37 = vld [vmem:[#allocation9 + $0x30] sm:$0xff] }
 0x1e5   : > { %6612 = vmatmul.mubr.msk.f32.vlgmr.msra.gmra.mrb[32].mxu0 %vm713_vm4, %v8551_v42  ;;  %6868 = vmatprep.subr.bf16.mxu1 %v6867_v52  ;;  %v1919_v42 = vld [vmem:[#allocation9 + $0x38] sm:$0xff] }
 0x1e6   : > { %6614 = vmatprep.mubr.msk.f32.mxu0 %vm713_vm4, %v8572_v7  ;;  %v6875_v50 = vpack.c.bf16 %v1919_v42, %v1918_v37  ;;  %v2887_v7 = vld [vmem:[#allocation12 + $0xc8] sm:$0xff]  ;;  %6962 = vmatpush3.bf16.msra.mxu0 %v6959_v12  ;;  %v1333_v42 = vlaneseq }
 0x1e7   : > { %6495 = vmatmul.mubr.msk.f32.gmra.mrb[2].mxu1 %vm713_vm4, %v8565_v5  ;;  %v2170_v5 = vld [vmem:[#allocation3 + $0x49] sm:$0xff]  ;;  %v6911_v10 = vpack.c.bf16 %v2887_v7, %v2886_v6 }
 0x1e8   : > { %6497 = vmatprep.mubr.msk.f32.mxu1 %vm713_vm4, %v8578_v18  ;;  %6870 = vmatpush3.bf16.msra.mxu1 %v6867_v52  ;;  %v6963_v18 = vpack.c.bf16 %v3171_v59, %v3170_v16 }
 0x1e9   : > { %6615 = vmatmul.mubr.msk.f32.gmra.mrb[34].mxu0 %vm713_vm4, %v8583_v19  ;;  %6872 = vmatprep.subr.bf16.mxu1 %v6871_v39  ;;  %v2890_v19 = vld [vmem:[#allocation12 + $0xe0] sm:$0xff] }
 0x1ea   : > { %6617 = vmatprep.mubr.msk.f32.mxu0 %vm713_vm4, %v8589_v29  ;;  %6964 = vmatprep.subr.bf16.mxu0 %v6963_v18  ;;  %v6919_v22 = vpack.c.bf16 %v2891_v20, %v2890_v19  ;;  %v6923_v29 = vpack.c.bf16 %v2893_v27, %v2892_v25 }
 0x1eb   : > { %6498 = vmatmul.mubr.msk.f32.gmra.mrb[4].mxu1 %vm713_vm4, %v8587_v28  ;;  %6966 = vmatpush3.bf16.msra.mxu0 %v6963_v18  ;;  %v3174_v28 = vld [vmem:[#allocation12 + $0x130] sm:$0xff] }
 0x1ec   : > { %6500 = vmatprep.mubr.msk.f32.mxu1 %vm713_vm4, %v1498_v56  ;;  %6968 = vmatprep.subr.bf16.mxu0 %v6967_v24  ;;  %v6971_v56 = vpack.c.bf16 %v3175_v30, %v3174_v28 }
 0x1ed   : > { %6618 = vmatmul.mubr.msk.f32.gmra.mrb[36].mxu0 %vm713_vm4, %v2328_v33  ;;  %v8687_v33 = vpack.c.bf16 %v2876_v32, %v2875_v31 }
 0x1ee   : > { %6620 = vmatprep.mubr.msk.f32.mxu0 %vm713_vm4, %v2334_v34  ;;  %v3157_v34 = vld [vmem:[#allocation12 + $0x40] sm:$0xff] }
 0x1ef   : > { %6501 = vmatmul.mubr.msk.f32.gmra.mrb[6].mxu1 %vm713_vm4, %v1748_v13  ;;  %6970 = vmatpush3.bf16.msra.mxu0 %v6967_v24  ;;  %v8690_v36 = vpack.c.bf16 %v3158_v35, %v3157_v34 }
 0x1f0   : > { %6511 = vmatprep.mubr.msk.f32.mxu1 %vm713_vm4, %v1908_v49  ;;  %6972 = vmatprep.subr.bf16.mxu0 %v6971_v56 }
 0x1f1   : > { %6621 = vmatmul.mubr.msk.f32.gmra.mrb[38].mxu0 %vm713_vm4, %v2584_v8 }
 0x1f3   : > { %6512 = vmatmul.mubr.msk.f32.vlgmr.msra.gmra.mrb[8].mxu1 %vm713_vm4, %v1909_v51  ;;  %6974 = vmatpush3.bf16.msra.mxu0 %v6971_v56 }
 0x1f4   : > { %6874 = vmatpush3.bf16.msra.mxu1 %v6871_v39  ;;  %6514 = vmatprep.mubr.msk.f32.mxu1 %vm713_vm4, %v1910_v58 }
 0x1f5   : > { %6876 = vmatprep.subr.bf16.mxu1 %v6875_v50  ;;  %6976 = vmatprep.subr.bf16.mxu0 %v8690_v36 }
 0x1f7   : > { %6515 = vmatmul.mubr.msk.f32.gmra.mrb[10].mxu1 %vm713_vm4, %v1911_v61 }
 0x1f8   : > { %6517 = vmatprep.mubr.msk.f32.mxu1 %vm713_vm4, %v1912_v62  ;;  %6878 = vmatpush3.bf16.msra.mxu1 %v6875_v50 }
 0x1f9   : > { %6880 = vmatprep.subr.bf16.mxu1 %v6879_v60 }
 0x1fb   : > { %6518 = vmatmul.mubr.msk.f32.gmra.mrb[12].mxu1 %vm713_vm4, %v1913_v63 }
 0x1fc   : > { %6520 = vmatprep.mubr.msk.f32.mxu1 %vm713_vm4, %v1914_v53 }
 0x1ff   : > { %6521 = vmatmul.mubr.msk.f32.gmra.mrb[14].mxu1 %vm713_vm4, %v1920_v1 }
 0x200   : > { %6531 = vmatprep.mubr.msk.f32.mxu1 %vm713_vm4, %v1907_v0 }
 0x203   : > { %6532 = vmatmul.mubr.msk.f32.vlgmr.msra.gmra.mrb[8].mxu1 %vm713_vm4, %v1908_v49  ;;  %v8716_v49 = vshrl.u32 %v1333_v42, 7 }
 0x204   : > { %6882 = vmatpush3.bf16.msra.mxu1 %v6879_v60  ;;  %6534 = vmatprep.mubr.msk.f32.mxu1 %vm713_vm4, %v1909_v51 }
 0x205   : > { %6884 = vmatprep.subr.bf16.mxu1 %v6883_v4  ;;  %v8719_v50 = vadd.s32 8, %v8716_v49  ;;  %v1336_v54 = vadd.s32 16, %v8716_v49  ;;  %v1339_v60 = vadd.s32 40, %v8716_v49  ;;  %v1341_v3 = vadd.s32 56, %v8716_v49 }
 0x206   : > { %v1340_v7 = vadd.s32 48, %v8716_v49 }
 0x207   : > { %6535 = vmatmul.mubr.msk.f32.gmra.mrb[10].mxu1 %vm713_vm4, %v1910_v58  ;;  %v1353_v55 = vand.u32 7, %v8719_v50  ;;  %v1381_v2 = vand.u32 7, %v1339_v60  ;;  %v1395_v19 = vand.u32 7, %v1341_v3 }
 0x208   : > { %6537 = vmatprep.mubr.msk.f32.mxu1 %vm713_vm4, %v1911_v61  ;;  %6886 = vmatpush3.bf16.msra.mxu1 %v6883_v4  ;;  %v1388_v23 = vand.u32 7, %v1340_v7 }
 0x209   : > { %6912 = vmatprep.subr.bf16.mxu1 %v6911_v10  ;;  %vm8727_vm8 = vcmp.ne.s32.totalorder %v1353_v55, 0  ;;  %vm8735_vm10 = vcmp.ne.s32.totalorder %v1353_v55, 7  ;;  %vm8778_vm0 = vcmp.ne.s32.totalorder %v1381_v2, 0  ;;  %vm8795_vm2 = vcmp.ne.s32.totalorder %v1381_v2, 7 }
 0x20a   : > { %v5734_v14 = vsel %vm8735_vm10, 1.0, %v8749_v9  ;;  %v5730_v31 = vsel %vm8778_vm0, 1.0, %v8749_v9  ;;  %vm8821_vm5 = vcmp.ne.s32.totalorder %v1388_v23, 0  ;;  %vm8829_vm7 = vcmp.ne.s32.totalorder %v1395_v19, 7 }
 0x20b   : > { %6538 = vmatmul.mubr.msk.f32.gmra.mrb[12].mxu1 %vm713_vm4, %v1912_v62  ;;  %v5731_v4 = vsel %vm8821_vm5, 1.0, %v8749_v9  ;;  %vm5565_vm0 = vcmask 73728  }
 0x20c   : > { %6540 = vmatprep.mubr.msk.f32.mxu1 %vm713_vm4, %v1913_v63 }
 0x20f   : > { %6541 = vmatmul.mubr.msk.f32.gmra.mrb[14].mxu1 %vm713_vm4, %v1914_v53 }
 0x210   : > { %6551 = vmatprep.mubr.msk.f32.mxu1 %vm713_vm4, %v1909_v51  ;;  %v1337_v51 = vadd.s32 24, %v8716_v49 }
 0x213   : > { %6552 = vmatmul.mubr.msk.f32.vlgmr.msra.gmra.mrb[8].mxu1 %vm713_vm4, %v1910_v58  ;;  %v1346_v58 = vand.u32 7, %v8716_v49 }
 0x214   : > { %6554 = vmatprep.mubr.msk.f32.mxu1 %vm713_vm4, %v1911_v61  ;;  %6914 = vmatpush3.bf16.msra.mxu1 %v6911_v10  ;;  %v1367_v61 = vand.u32 7, %v1337_v51  ;;  %v5726_v10 = vsel %vm8727_vm8, 1.0, %v8749_v9  ;;  %vm8854_vm8 = vcmp.ne.s32.totalorder %v1388_v23, 7 }
 0x215   : > { %6916 = vmatprep.subr.bf16.mxu1 %v6915_v17  ;;  %vm8731_vm9 = vcmp.ne.s32.totalorder %v1346_v58, 0  ;;  %vm8740_vm11 = vcmp.ne.s32.totalorder %v1346_v58, 7 }
 0x216   : > { %vm8744_vm12 = vcmp.ne.s32.totalorder %v1367_v61, 0  ;;  %v5725_v12 = vsel %vm8731_vm9, 1.0, %v8749_v9  ;;  %vm8764_vm14 = vcmp.ne.s32.totalorder %v1367_v61, 7  ;;  %vm2799_vm9 = vcmask 519168  }
 0x217   : > { %6555 = vmatmul.mubr.msk.f32.gmra.mrb[10].mxu1 %vm713_vm4, %v1912_v62  ;;  %v1338_v62 = vadd.s32 32, %v8716_v49  ;;  %v5728_v59 = vsel %vm8744_vm12, 1.0, %v8749_v9  ;;  %v5736_v25 = vsel %vm8764_vm14, 1.0, %v8749_v9 }
 0x218   : > { %6557 = vmatprep.mubr.msk.f32.mxu1 %vm713_vm4, %v1913_v63  ;;  %6918 = vmatpush3.bf16.msra.mxu1 %v6915_v17  ;;  %v1360_v63 = vand.u32 7, %v1336_v54  ;;  %v5733_v17 = vsel %vm8740_vm11, 1.0, %v8749_v9  ;;  %v5738_v54 = vsel %vm8795_vm2, 1.0, %v8749_v9 }
 0x219   : > { %6920 = vmatprep.subr.bf16.mxu1 %v6919_v22  ;;  %v1374_v6 = vand.u32 7, %v1338_v62 }
 0x21a   : > { %vm8754_vm13 = vcmp.ne.s32.totalorder %v1360_v63, 0  ;;  %vm8768_vm15 = vcmp.ne.s32.totalorder %v1360_v63, 7 }
 0x21b   : > { %6558 = vmatmul.mubr.msk.f32.gmra.mrb[12].mxu1 %vm713_vm4, %v1914_v53  ;;  %v5727_v21 = vsel %vm8754_vm13, 1.0, %v8749_v9  ;;  %vm8785_vm1 = vcmp.ne.s32.totalorder %v1374_v6, 0  ;;  %v5735_v27 = vsel %vm8768_vm15, 1.0, %v8749_v9  ;;  %vm8802_vm3 = vcmp.ne.s32.totalorder %v1374_v6, 7 }
 0x21c   : > { %6560 = vmatprep.mubr.msk.f32.mxu1 %vm713_vm4, %v1920_v1  ;;  %6922 = vmatpush3.bf16.msra.mxu1 %v6919_v22  ;;  %v5737_v60 = vsel %vm8802_vm3, 1.0, %v8749_v9  ;;  %vm8019_vm15 = vmmov 0  }
 0x21d   : > { %6924 = vmatprep.subr.bf16.mxu1 %v6923_v29 }
 0x21f   : > { %6561 = vmatmul.mubr.msk.f32.gmra.mrb[14].mxu1 %vm713_vm4, %v2170_v5  ;;  %vm8809_vm4 = vcmp.ne.s32.totalorder %v1395_v19, 0 }
 0x220   : > { %6926 = vmatpush3.bf16.msra.mxu1 %v6923_v29 }
 0x221   : > { %6928 = vmatprep.subr.bf16.mxu1 %v8687_v33 }
 0x2b6   : > { %v6493_v40 = vpop.f32.mrb[0].mxu1 }
 0x2b7   : > { %v1844_v41 = vpop.f32.mrb[1].mxu1  ;;  %v1892_v20 = vmul.f32 %v6493_v40, %v5726_v10  ;;  %v5729_v40 = vsel %vm8785_vm1, 1.0, %v8749_v9 }
 0x2b8   : > { %v6613_v43 = vpop.f32.mrb[32].mxu0  ;;  %v1891_v24 = vmul.f32 %v5725_v12, %v1844_v41 }
 0x2b9   : > { %v2680_v45 = vpop.f32.mrb[33].mxu0  ;;  %v2728_v30 = vmul.f32 %v6613_v43, %v5734_v14  ;;  %v8816_v43 = vld [vmem:[%s10436_s22] ss:$0 sm:$0xff] }
 0x2ba   : > { %v6496_v46 = vpop.f32.mrb[2].mxu1  ;;  %v2727_v35 = vmul.f32 %v5733_v17, %v2680_v45 }
 0x2bb   : > { %v8694_v47 = vpop.f32.mrb[3].mxu1  ;;  %v1894_v51 = vmul.f32 %v6496_v46, %v5728_v59  ;;  %v8836_v46 = vld [vmem:[%s10339_s6] ss:$0 sm:$0xff] }
 0x2bc   : > { %v8696_v11 = vpop.f32.mrb[34].mxu0  ;;  %v1893_v58 = vmul.f32 %v5727_v21, %v8694_v47  ;;  %v5732_v47 = vsel %vm8809_vm4, 1.0, %v8749_v9 }
 0x2bd   : > { %v8698_v38 = vpop.f32.mrb[35].mxu0  ;;  %v2730_v53 = vmul.f32 %v8696_v11, %v5736_v25  ;;  %v5740_v11 = vsel %vm8829_vm7, 1.0, %v8749_v9 }
 0x2be   : > { %v8700_v44 = vpop.f32.mrb[4].mxu1  ;;  %v2729_v3 = vmul.f32 %v5735_v27, %v8698_v38 }
 0x2bf   : > { %v8702_v52 = vpop.f32.mrb[5].mxu1  ;;  %v1896_v7 = vmul.f32 %v8700_v44, %v5730_v31 }
 0x2c0   : > { %v8704_v26 = vpop.f32.mrb[36].mxu0  ;;  %v1895_v12 = vmul.f32 %v5729_v40, %v8702_v52 }
 0x2c1   : > { %v8706_v48 = vpop.f32.mrb[37].mxu0  ;;  %v2732_v17 = vmul.f32 %v8704_v26, %v5738_v54 }
 0x2c2   : > { %v8708_v39 = vpop.f32.mrb[6].mxu1 }
 0x2c3   : > { %v8710_v8 = vpop.f32.mrb[7].mxu1  ;;  %v1898_v23 = vmul.f32 %v8708_v39, %v5732_v47 }
 0x2c4   : > { %v8712_v13 = vpop.f32.mrb[38].mxu0  ;;  %v1897_v27 = vmul.f32 %v5731_v4, %v8710_v8 }
 0x2c5   : > { %v8714_v37 = vpop.f32.mrb[39].mxu0 }
 0x2e6   : > { %v6553_v29 = vpop.f32.mrb[8].mxu1 }
 0x2e7   : > { %v2314_v56 = vadd.f32 %v6553_v29, %v1892_v20  ;;  %v2266_v34 = vpop.f32.mrb[9].mxu1  ;;  %v2731_v20 = vmul.f32 %v5737_v60, %v8706_v48 }
 0x2e8   : > { %v2313_v42 = vadd.f32 %v2266_v34, %v1891_v24  ;;  %v5739_v24 = vsel %vm8854_vm8, 1.0, %v8749_v9 }
 0x2e9   : > { %v2736_v55 = vadd.f32 %v2728_v30, %v2314_v56  ;;  %v2734_v30 = vmul.f32 %v8712_v13, %v5740_v11  ;;  %v2733_v34 = vmul.f32 %v5739_v24, %v8714_v37  ;;  %v2878_v24 = vld [vmem:[#allocation12 + $0x18] sm:$0xff] }
 0x2ea   : > { %v2735_v62 = vadd.f32 %v2727_v35, %v2313_v42  ;;  %v6556_v63 = vpop.f32.mrb[10].mxu1 }
 0x2eb   : > { %v2751_v0 = vmul.f32 %v8816_v43, %v2736_v55  ;;  %v2316_v1 = vadd.f32 %v6556_v63, %v1894_v51  ;;  %v2276_v2 = vpop.f32.mrb[11].mxu1 }
 0x2ec   : > { %v2750_v5 = vmul.f32 %v8816_v43, %v2735_v62  ;;  %v2315_v6 = vadd.f32 %v2276_v2, %v1893_v58 }
 0x2ed   : > { %v2766_v10 = vadd.f32 %v8836_v46, %v2751_v0  ;;  %v2738_v57 = vadd.f32 %v2730_v53, %v2316_v1 }
 0x2ee   : > { %v2765_v14 = vadd.f32 %v8836_v46, %v2750_v5  ;;  %v2737_v15 = vadd.f32 %v2729_v3, %v2315_v6  ;;  %v6559_v16 = vpop.f32.mrb[12].mxu1 }
 0x2ef   : > { %v2774_v44 = vmax.f32 %v2766_v10, 0.0  ;;  %v2753_v59 = vmul.f32 %v8816_v43, %v2738_v57  ;;  %v2318_v18 = vadd.f32 %v6559_v16, %v1896_v7  ;;  %v2286_v19 = vpop.f32.mrb[13].mxu1 }
 0x2f0   : > { %v2773_v21 = vmax.f32 %v2765_v14, 0.0  ;;  %v2752_v52 = vmul.f32 %v8816_v43, %v2737_v15  ;;  %v2317_v22 = vadd.f32 %v2286_v19, %v1895_v12 }
 0x2f1   : > { %2782 = vst.msk [vmem:[#allocation4 + $0x8] sm:$0xff] %vm726_vm6, %v2774_v44  ;;  %v2768_v26 = vadd.f32 %v8836_v46, %v2753_v59  ;;  %v2740_v25 = vadd.f32 %v2732_v17, %v2318_v18 }
 0x2f2   : > { %2781 = vst.msk [vmem:[#allocation4] sm:$0xff] %vm726_vm6, %v2773_v21  ;;  %v2767_v48 = vadd.f32 %v8836_v46, %v2752_v52  ;;  %v2739_v28 = vadd.f32 %v2731_v20, %v2317_v22  ;;  %v6562_v29 = vpop.f32.mrb[14].mxu1 }
 0x2f3   : > { %v2776_v39 = vmax.f32 %v2768_v26, 0.0  ;;  %v2755_v31 = vmul.f32 %v8816_v43, %v2740_v25  ;;  %v2320_v32 = vadd.f32 %v6562_v29, %v1898_v23  ;;  %v2296_v56 = vpop.f32.mrb[15].mxu1  ;;  %v2877_v23 = vld [vmem:[#allocation12 + $0x10] sm:$0xff]  ;;  %v3160_v25 = vld [vmem:[#allocation12 + $0x58] sm:$0xff] }
 0x2f4   : > { %v2775_v35 = vmax.f32 %v2767_v48, 0.0  ;;  %v2754_v40 = vmul.f32 %v8816_v43, %v2739_v28  ;;  %v2319_v41 = vadd.f32 %v2296_v56, %v1897_v27  ;;  %v3159_v26 = vld [vmem:[#allocation12 + $0x50] sm:$0xff]  ;;  %v2879_v27 = vld [vmem:[#allocation12 + $0x20] sm:$0xff]  ;;  %v2880_v48 = vld [vmem:[#allocation12 + $0x28] sm:$0xff] }
 0x2f5   : > { %2784 = vst.msk [vmem:[#allocation4 + $0x18] sm:$0xff] %vm726_vm6, %v2776_v39  ;;  %v2770_v8 = vadd.f32 %v8836_v46, %v2755_v31  ;;  %v2742_v42 = vadd.f32 %v2734_v30, %v2320_v32  ;;  %v3161_v28 = vld [vmem:[#allocation12 + $0x60] sm:$0xff]  ;;  %v6931_v39 = vpack.c.bf16 %v2878_v24, %v2877_v23  ;;  %v6979_v31 = vpack.c.bf16 %v3160_v25, %v3159_v26  ;;  %v3162_v32 = vld [vmem:[#allocation12 + $0x68] sm:$0xff]  ;;  %v3455_v23 = vld [vmem:[#allocation12 + $0x178] sm:$0xff] }
 0x2f6   : > { %2783 = vst.msk [vmem:[#allocation4 + $0x10] sm:$0xff] %vm726_vm6, %v2775_v35  ;;  %v2769_v13 = vadd.f32 %v8836_v46, %v2754_v40  ;;  %v2741_v51 = vadd.f32 %v2733_v34, %v2319_v41  ;;  %v6935_v35 = vpack.c.bf16 %v2880_v48, %v2879_v27  ;;  %v6983_v40 = vpack.c.bf16 %v3162_v32, %v3161_v28  ;;  %v2881_v41 = vld [vmem:[#allocation12 + $0x30] sm:$0xff]  ;;  %v3437_v26 = vld [vmem:[#allocation12 + $0x80] sm:$0xff]  ;;  %v3438_v25 = vld [vmem:[#allocation12 + $0x88] sm:$0xff] }
 0x2f7   : > { %v2778_v54 = vmax.f32 %v2770_v8, 0.0  ;;  %v2757_v45 = vmul.f32 %v8816_v43, %v2742_v42  ;;  %v2882_v8 = vld [vmem:[#allocation12 + $0x38] sm:$0xff]  ;;  %v3163_v42 = vld [vmem:[#allocation12 + $0x70] sm:$0xff]  ;;  %v7023_v27 = vpack.c.bf16 %v3438_v25, %v3437_v26  ;;  %v5945_v26 = vld [vmem:[%s10343_s10 + $0x440] sm:$0xff] }
 0x2f8   : > { %v2794_v55 = vld [vmem:[#allocation4 + $0x8] ss:$2 sm:$0xf]  ;;  %v2796_v58 = vld [vmem:[#allocation4 + $0x9] ss:$2 sm:$0xf]  ;;  %v2756_v37 = vmul.f32 %v8816_v43, %v2741_v51 }
 0x2f9   : > { %v2797_v60 = vmax.f32 %v2794_v55, %v2796_v58  ;;  %v2789_v61 = vld [vmem:[#allocation4] ss:$2 sm:$0xf]  ;;  %v2791_v62 = vld [vmem:[#allocation4 + $0x1] ss:$2 sm:$0xf]  ;;  %v2772_v63 = vadd.f32 %v8836_v46, %v2757_v45 }
 0x2fa   : > { %2786 = vst.msk [vmem:[#allocation4 + $0x28] sm:$0xff] %vm726_vm6, %v2778_v54  ;;  %v2792_v53 = vmax.f32 %v2789_v61, %v2791_v62  ;;  %v2777_v47 = vmax.f32 %v2769_v13, 0.0  ;;  %v2771_v0 = vadd.f32 %v8836_v46, %v2756_v37  ;;  %v3164_v13 = vld [vmem:[#allocation12 + $0x78] sm:$0xff]  ;;  %v3059_v51 = vld [vmem:[#allocation12 + $0x180] sm:$0xff]  ;;  %v3060_v54 = vld [vmem:[#allocation12 + $0x188] sm:$0xff] }
 0x2fb   : > { %v2780_v1 = vmax.f32 %v2772_v63, 0.0  ;;  %v3341_v45 = vld [vmem:[#allocation12 + $0x1c0] sm:$0xff]  ;;  %v3342_v55 = vld [vmem:[#allocation12 + $0x1c8] sm:$0xff]  ;;  %v6943_v58 = vpack.c.bf16 %v3060_v54, %v3059_v51  ;;  %v3062_v61 = vld [vmem:[#allocation12 + $0x198] sm:$0xff] }
 0x2fc   : > { %v2798_v2 = vmax.f32 %v2792_v53, %v2797_v60  ;;  %v2807_v3 = vld [vmem:[#allocation4 + $0x18] ss:$2 sm:$0xf]  ;;  %v2809_v4 = vld [vmem:[#allocation4 + $0x19] ss:$2 sm:$0xf]  ;;  %v6991_v37 = vpack.c.bf16 %v3342_v55, %v3341_v45 }
 0x2fd   : > { %2785 = vst.msk [vmem:[#allocation4 + $0x20] sm:$0xff] %vm726_vm6, %v2777_v47  ;;  %v2810_v5 = vmax.f32 %v2807_v3, %v2809_v4  ;;  %v2802_v43 = vld [vmem:[#allocation4 + $0x10] ss:$2 sm:$0xf]  ;;  %2788 = vst.msk [vmem:[#allocation4 + $0x38] sm:$0xff] %vm726_vm6, %v2780_v1  ;;  %v2779_v11 = vmax.f32 %v2771_v0, 0.0 }
 0x2fe   : > { %v2804_v6 = vld [vmem:[#allocation4 + $0x11] ss:$2 sm:$0xf]  ;;  %2800 = vst.msk [vmem:[#allocation5 + $0x5] sm:$0xf] %vm2799_vm9, %v2798_v2  ;;  %v3061_v60 = vld [vmem:[#allocation12 + $0x190] sm:$0xff] }
 0x2ff   : > { %v2805_v7 = vmax.f32 %v2802_v43, %v2804_v6  ;;  %2787 = vst.msk [vmem:[#allocation4 + $0x30] sm:$0xff] %vm726_vm6, %v2779_v11  ;;  %v3343_v62 = vld [vmem:[#allocation12 + $0x1d0] sm:$0xff]  ;;  %v3344_v63 = vld [vmem:[#allocation12 + $0x1d8] sm:$0xff]  ;;  %v3063_v53 = vld [vmem:[#allocation12 + $0x1a0] sm:$0xff]  ;;  %v6947_v1 = vpack.c.bf16 %v3062_v61, %v3061_v60 }
 0x300   : > { %v6995_v2 = vpack.c.bf16 %v3344_v63, %v3343_v62  ;;  %v3064_v3 = vld [vmem:[#allocation12 + $0x1a8] sm:$0xff]  ;;  %v3345_v4 = vld [vmem:[#allocation12 + $0x1e0] sm:$0xff]  ;;  %v3066_v11 = vld [vmem:[#allocation12 + $0x1b8] sm:$0xff] }
 0x301   : > { %v2819_v10 = vld [vmem:[#allocation4 + $0x28] ss:$2 sm:$0xf]  ;;  %v2821_v57 = vld [vmem:[#allocation4 + $0x29] ss:$2 sm:$0xf]  ;;  %v2811_v46 = vmax.f32 %v2805_v7, %v2810_v5  ;;  %v6951_v43 = vpack.c.bf16 %v3064_v3, %v3063_v53 }
 0x302   : > { %v2822_v12 = vmax.f32 %v2819_v10, %v2821_v57  ;;  %v3346_v5 = vld [vmem:[#allocation12 + $0x1e8] sm:$0xff]  ;;  %v3065_v7 = vld [vmem:[#allocation12 + $0x1b0] sm:$0xff]  ;;  %v3348_v57 = vld [vmem:[#allocation12 + $0x1f8] sm:$0xff] }
 0x303   : > { %2812 = vst.msk [vmem:[#allocation5 + $0x9] sm:$0xf] %vm2799_vm9, %v2811_v46  ;;  %v6999_v6 = vpack.c.bf16 %v3346_v5, %v3345_v4  ;;  %v3347_v10 = vld [vmem:[#allocation12 + $0x1f0] sm:$0xff]  ;;  %v6955_v46 = vpack.c.bf16 %v3066_v11, %v3065_v7  ;;  %v3440_v28 = vld [vmem:[#allocation12 + $0x98] sm:$0xff]  ;;  %v3625_v54 = vld [vmem:[#allocation12 + $0x220] sm:$0xff] }
 0x304   : > { %v2814_v38 = vld [vmem:[#allocation4 + $0x20] ss:$2 sm:$0xf]  ;;  %v2816_v14 = vld [vmem:[#allocation4 + $0x21] ss:$2 sm:$0xf] }
 0x305   : > { %v2817_v15 = vmax.f32 %v2814_v38, %v2816_v14  ;;  %v2831_v16 = vld [vmem:[#allocation4 + $0x38] ss:$2 sm:$0xf]  ;;  %v2833_v17 = vld [vmem:[#allocation4 + $0x39] ss:$2 sm:$0xf] }
 0x306   : > { %v2834_v59 = vmax.f32 %v2831_v16, %v2833_v17  ;;  %v2826_v18 = vld [vmem:[#allocation4 + $0x30] ss:$2 sm:$0xf]  ;;  %v2828_v19 = vld [vmem:[#allocation4 + $0x31] ss:$2 sm:$0xf] }
 0x307   : > { %v2823_v44 = vmax.f32 %v2817_v15, %v2822_v12  ;;  %v2829_v20 = vmax.f32 %v2826_v18, %v2828_v19  ;;  %v2873_v56 = vld [vmem:[#allocation5] sm:$0xff]  ;;  %v7003_v12 = vpack.c.bf16 %v3348_v57, %v3347_v10  ;;  %v3448_v38 = vld [vmem:[#allocation12 + $0x140] sm:$0xff]  ;;  %v3449_v14 = vld [vmem:[#allocation12 + $0x148] sm:$0xff] }
 0x308   : > { %v3154_v34 = vld [vmem:[#allocation5 + $0x1] sm:$0xff]  ;;  %v7007_v15 = vpack.c.bf16 %v3449_v14, %v3448_v38  ;;  %v3450_v16 = vld [vmem:[#allocation12 + $0x150] sm:$0xff]  ;;  %v3453_v19 = vld [vmem:[#allocation12 + $0x168] sm:$0xff] }
 0x309   : > { %2824 = vst.msk [vmem:[#allocation5 + $0xd] sm:$0xf] %vm2799_vm9, %v2823_v44  ;;  %v2835_v22 = vmax.f32 %v2829_v20, %v2834_v59  ;;  %v3451_v17 = vld [vmem:[#allocation12 + $0x158] sm:$0xff]  ;;  %v3452_v18 = vld [vmem:[#allocation12 + $0x160] sm:$0xff]  ;;  %v3439_v48 = vld [vmem:[#allocation12 + $0x90] sm:$0xff] }
 0x30a   : > { %v2883_v21 = vld [vmem:[#allocation5 + $0x4] sm:$0xff]  ;;  %v7011_v44 = vpack.c.bf16 %v3451_v17, %v3450_v16  ;;  %v3626_v45 = vld [vmem:[#allocation12 + $0x228] sm:$0xff]  ;;  %v5843_v3 = vld [vmem:[%s10343_s10 + $0x310] sm:$0xff] }
 0x30b   : > { %v3165_v52 = vld [vmem:[#allocation5 + $0x5] sm:$0xff]  ;;  %6639 = vmatprep.mubr.msk.f32.mxu1 %vm726_vm6, %v2883_v21  ;;  %2836 = vst.msk [vmem:[#allocation5 + $0x11] sm:$0xf] %vm2799_vm9, %v2835_v22  ;;  %v3454_v22 = vld [vmem:[#allocation12 + $0x170] sm:$0xff]  ;;  %v7047_v55 = vpack.c.bf16 %v3626_v45, %v3625_v54  ;;  %v5842_v62 = vld [vmem:[%s10343_s10 + $0x308] sm:$0xff] }
 0x30c   : > { %6696 = vmatprep.mubr.msk.f32.mxu0 %vm726_vm6, %v3165_v52  ;;  %v7015_v52 = vpack.c.bf16 %v3453_v19, %v3452_v18  ;;  %v7019_v24 = vpack.c.bf16 %v3455_v23, %v3454_v22  ;;  %v3434_v32 = vld [vmem:[#allocation5 + $0x2] sm:$0xff]  ;;  %v5938_v53 = vld [vmem:[%s10343_s10 + $0x408] sm:$0xff]  ;;  %v5847_v14 = vld [vmem:[%s10343_s10 + $0x330] sm:$0xff] }
 0x30d   : > { %v5844_v63 = vld [vmem:[%s10343_s10 + $0x318] sm:$0xff]  ;;  %v5937_v4 = vld [vmem:[%s10343_s10 + $0x400] sm:$0xff]  ;;  %v5846_v7 = vld [vmem:[%s10343_s10 + $0x328] sm:$0xff] }
 0x30e   : > { %v5848_v11 = vld [vmem:[%s10343_s10 + $0x338] sm:$0xff]  ;;  %v5942_v10 = vld [vmem:[%s10343_s10 + $0x428] sm:$0xff]  ;;  %v5943_v16 = vld [vmem:[%s10343_s10 + $0x430] sm:$0xff] }
 0x30f   : > { %v7059_v57 = vpack.c.bf16 %v5848_v11, %v5846_v7  ;;  %v5852_v18 = vld [vmem:[%s10343_s10 + $0x358] sm:$0xff]  ;;  %v5946_v19 = vld [vmem:[%s10343_s10 + $0x448] sm:$0xff]  ;;  %v5851_v22 = vld [vmem:[%s10343_s10 + $0x350] sm:$0xff] }
 0x310   : > { %v2874_v47 = vld [vmem:[#allocation5 + $0x8] sm:$0xff]  ;;  %v5947_v25 = vld [vmem:[%s10343_s10 + $0x450] sm:$0xff]  ;;  %v5868_v7 = vld [vmem:[%s10343_s10 + $0x3d8] sm:$0xff] }
 0x311   : > { %v3155_v0 = vld [vmem:[#allocation5 + $0x9] sm:$0xff]  ;;  %v5859_v54 = vld [vmem:[%s10343_s10 + $0x390] sm:$0xff] }
 0x312   : > { %v2884_v29 = vld [vmem:[#allocation5 + $0xc] sm:$0xff] }
 0x313   : > { %v3166_v30 = vld [vmem:[#allocation5 + $0xd] sm:$0xff]  ;;  %6640 = vmatmul.mubr.msk.f32.vlgmr.msra.gmra.mrb[16].mxu1 %vm726_vm6, %v2884_v29  ;;  %v7027_v29 = vpack.c.bf16 %v3440_v28, %v3439_v48  ;;  %v5856_v28 = vld [vmem:[%s10343_s10 + $0x378] sm:$0xff] }
 0x314   : > { %6697 = vmatmul.mubr.msk.f32.vlgmr.msra.gmra.mrb[40].mxu0 %vm726_vm6, %v3166_v30  ;;  %6930 = vmatpush3.bf16.msra.mxu1 %v8687_v33  ;;  %v6939_v33 = vpack.c.bf16 %v2882_v8, %v2881_v41  ;;  %v3057_v59 = vld [vmem:[#allocation5 + $0x10] sm:$0xff]  ;;  %v3445_v21 = vld [vmem:[#allocation5 + $0x6] sm:$0xff] }
 0x315   : > { %6978 = vmatpush3.bf16.msra.mxu0 %v8690_v36  ;;  %6658 = vmatprep.mubr.msk.f32.mxu1 %vm726_vm6, %v2873_v56  ;;  %v6987_v36 = vpack.c.bf16 %v3164_v13, %v3163_v42  ;;  %v3339_v20 = vld [vmem:[#allocation5 + $0x11] sm:$0xff]  ;;  %v3621_v41 = vld [vmem:[#allocation12 + $0x200] sm:$0xff] }
 0x316   : > { %6715 = vmatprep.mubr.msk.f32.mxu0 %vm726_vm6, %v3154_v34  ;;  %6932 = vmatprep.subr.bf16.mxu1 %v6931_v39  ;;  %v3446_v30 = vld [vmem:[#allocation5 + $0xe] sm:$0xff]  ;;  %v3443_v34 = vld [vmem:[#allocation12 + $0xb0] sm:$0xff] }
 0x317   : > { %6980 = vmatprep.subr.bf16.mxu0 %v6979_v31  ;;  %v3622_v8 = vld [vmem:[#allocation12 + $0x208] sm:$0xff]  ;;  %v3623_v13 = vld [vmem:[#allocation12 + $0x210] sm:$0xff] }
 0x318   : > { %6934 = vmatpush3.bf16.msra.mxu1 %v6931_v39  ;;  %v3441_v39 = vld [vmem:[#allocation12 + $0xa0] sm:$0xff]  ;;  %v7039_v42 = vpack.c.bf16 %v3622_v8, %v3621_v41  ;;  %v3619_v61 = vld [vmem:[#allocation5 + $0x12] sm:$0xff] }
 0x319   : > { %6982 = vmatpush3.bf16.msra.mxu0 %v6979_v31  ;;  %6936 = vmatprep.subr.bf16.mxu1 %v6935_v35  ;;  %v3442_v31 = vld [vmem:[#allocation12 + $0xa8] sm:$0xff] }
 0x31a   : > { %6984 = vmatprep.subr.bf16.mxu0 %v6983_v40  ;;  %v7031_v56 = vpack.c.bf16 %v3442_v31, %v3441_v39  ;;  %v3435_v51 = vld [vmem:[#allocation5 + $0xa] sm:$0xff]  ;;  %v5952_v39 = vld [vmem:[%s10343_s10 + $0x478] sm:$0xff] }
 0x31b   : > { %v5854_v48 = vld [vmem:[%s10343_s10 + $0x368] sm:$0xff]  ;;  %v5853_v31 = vld [vmem:[%s10343_s10 + $0x360] sm:$0xff] }
 0x31c   : > { %6938 = vmatpush3.bf16.msra.mxu1 %v6935_v35  ;;  %v3444_v35 = vld [vmem:[#allocation12 + $0xb8] sm:$0xff]  ;;  %v5858_v8 = vld [vmem:[%s10343_s10 + $0x388] sm:$0xff] }
 0x31d   : > { %6986 = vmatpush3.bf16.msra.mxu0 %v6983_v40  ;;  %6940 = vmatprep.subr.bf16.mxu1 %v6939_v33  ;;  %v7035_v40 = vpack.c.bf16 %v3444_v35, %v3443_v34  ;;  %v5949_v35 = vld [vmem:[%s10343_s10 + $0x460] sm:$0xff]  ;;  %v5962_v11 = vld [vmem:[%s10343_s10 + $0x4c8] sm:$0xff] }
 0x31e   : > { %6988 = vmatprep.subr.bf16.mxu0 %v6987_v36 }
 0x320   : > { %6942 = vmatpush3.bf16.msra.mxu1 %v6939_v33  ;;  %v3624_v33 = vld [vmem:[#allocation12 + $0x218] sm:$0xff] }
 0x321   : > { %6990 = vmatpush3.bf16.msra.mxu0 %v6987_v36  ;;  %6944 = vmatprep.subr.bf16.mxu1 %v6943_v58  ;;  %v7043_v36 = vpack.c.bf16 %v3624_v33, %v3623_v13  ;;  %v5954_v13 = vld [vmem:[%s10343_s10 + $0x488] sm:$0xff] }
 0x322   : > { %6992 = vmatprep.subr.bf16.mxu0 %v6991_v37 }
 0x323   : > { %6659 = vmatmul.mubr.msk.f32.vlgmr.msra.gmra.mrb[16].mxu1 %vm726_vm6, %v2874_v47 }
 0x324   : > { %6716 = vmatmul.mubr.msk.f32.vlgmr.msra.gmra.mrb[40].mxu0 %vm726_vm6, %v3155_v0  ;;  %6946 = vmatpush3.bf16.msra.mxu1 %v6943_v58  ;;  %v3627_v58 = vld [vmem:[#allocation12 + $0x230] sm:$0xff] }
 0x325   : > { %6677 = vmatprep.mubr.msk.f32.mxu1 %vm726_vm6, %v2874_v47  ;;  %6994 = vmatpush3.bf16.msra.mxu0 %v6991_v37  ;;  %v3628_v37 = vld [vmem:[#allocation12 + $0x238] sm:$0xff]  ;;  %v7055_v47 = vpack.c.bf16 %v5844_v63, %v5842_v62  ;;  %v5958_v63 = vld [vmem:[%s10343_s10 + $0x4a8] sm:$0xff] }
 0x326   : > { %6734 = vmatprep.mubr.msk.f32.mxu0 %vm726_vm6, %v3155_v0  ;;  %6948 = vmatprep.subr.bf16.mxu1 %v6947_v1  ;;  %v7051_v60 = vpack.c.bf16 %v3628_v37, %v3627_v58  ;;  %v5940_v0 = vld [vmem:[%s10343_s10 + $0x418] sm:$0xff]  ;;  %v5953_v58 = vld [vmem:[%s10343_s10 + $0x480] sm:$0xff]  ;;  %v5955_v37 = vld [vmem:[%s10343_s10 + $0x490] sm:$0xff] }
 0x327   : > { %6996 = vmatprep.subr.bf16.mxu0 %v6995_v2  ;;  %v5864_v62 = vld [vmem:[%s10343_s10 + $0x3b8] sm:$0xff] }
 0x328   : > { %6950 = vmatpush3.bf16.msra.mxu1 %v6947_v1  ;;  %v7151_v1 = vpack.c.bf16 %v5940_v0, %v5938_v53  ;;  %v5861_v0 = vld [vmem:[%s10343_s10 + $0x3a0] sm:$0xff] }
 0x329   : > { %6998 = vmatpush3.bf16.msra.mxu0 %v6995_v2  ;;  %6952 = vmatprep.subr.bf16.mxu1 %v6951_v43  ;;  %v5841_v2 = vld [vmem:[%s10343_s10 + $0x300] sm:$0xff] }
 0x32a   : > { %7000 = vmatprep.subr.bf16.mxu0 %v6999_v6  ;;  %v7057_v5 = vpack.c.bf16 %v5843_v3, %v5841_v2 }
 0x32c   : > { %6954 = vmatpush3.bf16.msra.mxu1 %v6951_v43  ;;  %v5939_v43 = vld [vmem:[%s10343_s10 + $0x410] sm:$0xff] }
 0x32d   : > { %7002 = vmatpush3.bf16.msra.mxu0 %v6999_v6  ;;  %6956 = vmatprep.subr.bf16.mxu1 %v6955_v46  ;;  %v7153_v6 = vpack.c.bf16 %v5939_v43, %v5937_v4  ;;  %v5957_v4 = vld [vmem:[%s10343_s10 + $0x4a0] sm:$0xff] }
 0x32e   : > { %7004 = vmatprep.subr.bf16.mxu0 %v7003_v12 }
 0x330   : > { %6958 = vmatpush3.bf16.msra.mxu1 %v6955_v46  ;;  %v5944_v46 = vld [vmem:[%s10343_s10 + $0x438] sm:$0xff] }
 0x331   : > { %7006 = vmatpush3.bf16.msra.mxu0 %v7003_v12  ;;  %7008 = vmatprep.subr.bf16.mxu1 %v7007_v15  ;;  %v5845_v12 = vld [vmem:[%s10343_s10 + $0x320] sm:$0xff]  ;;  %v7155_v38 = vpack.c.bf16 %v5944_v46, %v5942_v10 }
 0x332   : > { %7056 = vmatprep.subr.bf16.mxu0 %v7055_v47  ;;  %v7061_v17 = vpack.c.bf16 %v5847_v14, %v5845_v12  ;;  %v5960_v47 = vld [vmem:[%s10343_s10 + $0x4b8] sm:$0xff]  ;;  %v5865_v46 = vld [vmem:[%s10343_s10 + $0x3c0] sm:$0xff]  ;;  %v5867_v12 = vld [vmem:[%s10343_s10 + $0x3d0] sm:$0xff] }
 0x333   : > { %6678 = vmatmul.mubr.msk.f32.vlgmr.msra.gmra.mrb[16].mxu1 %vm726_vm6, %v3057_v59  ;;  %v5850_v59 = vld [vmem:[%s10343_s10 + $0x348] sm:$0xff]  ;;  %v7171_v2 = vpack.c.bf16 %v5960_v47, %v5958_v63  ;;  %v7081_v14 = vpack.c.bf16 %v5867_v12, %v5865_v46 }
 0x334   : > { %6735 = vmatmul.mubr.msk.f32.vlgmr.msra.gmra.mrb[40].mxu0 %vm726_vm6, %v3339_v20  ;;  %7010 = vmatpush3.bf16.msra.mxu1 %v7007_v15  ;;  %v5941_v15 = vld [vmem:[%s10343_s10 + $0x420] sm:$0xff]  ;;  %v7063_v20 = vpack.c.bf16 %v5852_v18, %v5850_v59  ;;  %v5872_v59 = vld [vmem:[%s10343_s10 + $0x3f8] sm:$0xff]  ;;  %v5966_v18 = vld [vmem:[%s10343_s10 + $0x4e8] sm:$0xff] }
 0x335   : > { %6753 = vmatprep.mubr.msk.f32.mxu1 %vm726_vm6, %v3445_v21  ;;  %7012 = vmatprep.subr.bf16.mxu1 %v7011_v44  ;;  %v5948_v21 = vld [vmem:[%s10343_s10 + $0x458] sm:$0xff] }
 0x336   : > { %3910 = vmatprep.mubr.f32.mxu0 %v8749_v9  ;;  %7058 = vmatpush1.bf16.msra.mxu0 %v7057_v5  ;;  %v7159_v23 = vpack.c.bf16 %v5948_v21, %v5946_v19  ;;  %v5959_v5 = vld [vmem:[%s10343_s10 + $0x4b0] sm:$0xff]  ;;  %v5968_v19 = vld [vmem:[%s10343_s10 + $0x4f8] sm:$0xff] }
 0x337   : > { %7060 = vmatprep.subr.bf16.mxu0 %v7059_v57  ;;  %v7173_v43 = vpack.c.bf16 %v5959_v5, %v5957_v4  ;;  %v5964_v57 = vld [vmem:[%s10343_s10 + $0x4d8] sm:$0xff]  ;;  %v7179_v21 = vpack.c.bf16 %v5968_v19, %v5966_v18  ;;  %v3785_v18 = vld [vmem:[%s10343_s10 + $0x28] sm:$0xff] }
 0x338   : > { %7014 = vmatpush3.bf16.msra.mxu1 %v7011_v44  ;;  %v7157_v44 = vpack.c.bf16 %v5943_v16, %v5941_v15  ;;  %v5961_v15 = vld [vmem:[%s10343_s10 + $0x4c0] sm:$0xff]  ;;  %v5963_v16 = vld [vmem:[%s10343_s10 + $0x4d0] sm:$0xff]  ;;  %v3787_v19 = vld [vmem:[%s10343_s10 + $0x38] sm:$0xff] }
 0x339   : > { %7016 = vmatprep.subr.bf16.mxu1 %v7015_v52 }
 0x33a   : > { %7062 = vmatpush1.bf16.msra.mxu0 %v7061_v17  ;;  %v5870_v17 = vld [vmem:[%s10343_s10 + $0x3e8] sm:$0xff] }
 0x33b   : > { %7064 = vmatprep.subr.bf16.mxu0 %v7063_v20  ;;  %v7083_v20 = vpack.c.bf16 %v5872_v59, %v5870_v17  ;;  %v3782_v17 = vld [vmem:[%s10343_s10 + $0x10] sm:$0xff] }
 0x33c   : > { %7018 = vmatpush3.bf16.msra.mxu1 %v7015_v52  ;;  %v5849_v52 = vld [vmem:[%s10343_s10 + $0x340] sm:$0xff]  ;;  %v5907_v59 = vld [vmem:[%s10343_s10 + $0x110] sm:$0xff] }
 0x33d   : > { %7020 = vmatprep.subr.bf16.mxu1 %v7019_v24 }
 0x340   : > { %7022 = vmatpush3.bf16.msra.mxu1 %v7019_v24  ;;  %v7065_v24 = vpack.c.bf16 %v5851_v22, %v5849_v52  ;;  %v5869_v52 = vld [vmem:[%s10343_s10 + $0x3e0] sm:$0xff]  ;;  %v5871_v22 = vld [vmem:[%s10343_s10 + $0x3f0] sm:$0xff] }
 0x341   : > { %7024 = vmatprep.subr.bf16.mxu1 %v7023_v27 }
 0x342   : > { %7066 = vmatpush1.bf16.msra.mxu0 %v7065_v24  ;;  %v5967_v24 = vld [vmem:[%s10343_s10 + $0x4f0] sm:$0xff] }
 0x343   : > { %6754 = vmatmul.mubr.msk.f32.vlgmr.msra.gmra.mrb[18].mxu1 %vm726_vm6, %v3446_v30  ;;  %v7067_v30 = vpack.c.bf16 %v5856_v28, %v5854_v48  ;;  %v5906_v28 = vld [vmem:[%s10343_s10 + $0x108] sm:$0xff] }
 0x344   : > { %7026 = vmatpush3.bf16.msra.mxu1 %v7023_v27  ;;  %6772 = vmatprep.mubr.msk.f32.mxu1 %vm726_vm6, %v3434_v32  ;;  %v7161_v27 = vpack.c.bf16 %v5947_v25, %v5945_v26  ;;  %v5855_v32 = vld [vmem:[%s10343_s10 + $0x370] sm:$0xff]  ;;  %v3781_v26 = vld [vmem:[%s10343_s10 + $0x8] sm:$0xff]  ;;  %v3783_v25 = vld [vmem:[%s10343_s10 + $0x18] sm:$0xff] }
 0x345   : > { %7028 = vmatprep.subr.bf16.mxu1 %v7027_v29  ;;  %v7069_v34 = vpack.c.bf16 %v5855_v32, %v5853_v31  ;;  %7068 = vmatprep.subr.bf16.mxu0 %v7067_v30  ;;  %v7087_v30 = vpack.c.bf16 %v3783_v25, %v3781_v26  ;;  %v2848_v31 = vand.u32 3, %v8719_v50  ;;  %v2841_v32 = vand.u32 3, %v8716_v49  ;;  %v5909_v26 = vld [vmem:[%s10343_s10 + $0x120] sm:$0xff]  ;;  %v5911_v25 = vld [vmem:[%s10343_s10 + $0x130] sm:$0xff] }
 0x347   : > { %7070 = vmatpush1.bf16.msra.mxu0 %v7069_v34  ;;  %vm2861_vm10 = vcmp.ne.s32.totalorder %v2841_v32, 0  ;;  %vm2868_vm11 = vcmp.ne.s32.totalorder %v2848_v31, 3  ;;  %vm2867_vm12 = vcmp.ne.s32.totalorder %v2841_v32, 3  ;;  %v5916_v32 = vld [vmem:[%s10343_s10 + $0x158] sm:$0xff] }
 0x348   : > { %7030 = vmatpush3.bf16.msra.mxu1 %v7027_v29  ;;  %v5950_v29 = vld [vmem:[%s10343_s10 + $0x468] sm:$0xff]  ;;  %v5815_v34 = vsel %vm2861_vm10, 1.0, %v8749_v9  ;;  %v5818_v50 = vsel %vm2868_vm11, 1.0, %v8749_v9 }
 0x349   : > { %7032 = vmatprep.subr.bf16.mxu1 %v7031_v56 }
 0x34c   : > { %7034 = vmatpush3.bf16.msra.mxu1 %v7031_v56  ;;  %v7163_v56 = vpack.c.bf16 %v5952_v39, %v5950_v29  ;;  %v5908_v29 = vld [vmem:[%s10343_s10 + $0x118] sm:$0xff] }
 0x34d   : > { %7036 = vmatprep.subr.bf16.mxu1 %v7035_v40  ;;  %v7183_v39 = vpack.c.bf16 %v5908_v29, %v5906_v28  ;;  %v3789_v28 = vld [vmem:[%s10343_s10 + $0x48] sm:$0xff]  ;;  %v3791_v29 = vld [vmem:[%s10343_s10 + $0x58] sm:$0xff] }
 0x350   : > { %7038 = vmatpush3.bf16.msra.mxu1 %v7035_v40  ;;  %v5951_v40 = vld [vmem:[%s10343_s10 + $0x470] sm:$0xff] }
 0x351   : > { %7040 = vmatprep.subr.bf16.mxu1 %v7039_v42  ;;  %v7165_v41 = vpack.c.bf16 %v5951_v40, %v5949_v35 }
 0x353   : > { %6773 = vmatmul.mubr.msk.f32.vlgmr.msra.gmra.mrb[18].mxu1 %vm726_vm6, %v3435_v51 }
 0x354   : > { %7042 = vmatpush3.bf16.msra.mxu1 %v7039_v42  ;;  %6791 = vmatprep.mubr.msk.f32.mxu1 %vm726_vm6, %v3435_v51  ;;  %v5860_v42 = vld [vmem:[%s10343_s10 + $0x398] sm:$0xff]  ;;  %v5857_v51 = vld [vmem:[%s10343_s10 + $0x380] sm:$0xff] }
 0x355   : > { %7044 = vmatprep.subr.bf16.mxu1 %v7043_v36  ;;  %v7071_v33 = vpack.c.bf16 %v5860_v42, %v5858_v8 }
 0x357   : > { %7072 = vmatprep.subr.bf16.mxu0 %v7071_v33 }
 0x358   : > { %7046 = vmatpush3.bf16.msra.mxu1 %v7043_v36  ;;  %v5956_v36 = vld [vmem:[%s10343_s10 + $0x498] sm:$0xff] }
 0x359   : > { %7048 = vmatprep.subr.bf16.mxu1 %v7047_v55  ;;  %v7167_v45 = vpack.c.bf16 %v5956_v36, %v5954_v13 }
 0x35c   : > { %7050 = vmatpush3.bf16.msra.mxu1 %v7047_v55  ;;  %v7073_v55 = vpack.c.bf16 %v5859_v54, %v5857_v51  ;;  %v5817_v51 = vsel %vm2867_vm12, 1.0, %v8749_v9 }
 0x35d   : > { %7052 = vmatprep.subr.bf16.mxu1 %v7051_v60 }
 0x35e   : > { %7074 = vmatpush1.bf16.msra.mxu0 %v7073_v55 }
 0x360   : > { %7054 = vmatpush3.bf16.msra.mxu1 %v7051_v60  ;;  %v7169_v60 = vpack.c.bf16 %v5955_v37, %v5953_v58  ;;  %v5837_v58 = vld [vmem:[%s10341_s8] ss:$0 sm:$0xff] }
 0x361   : > { %7152 = vmatprep.subr.bf16.mxu1 %v7151_v1  ;;  %v5863_v1 = vld [vmem:[%s10343_s10 + $0x3b0] sm:$0xff] }
 0x362   : > { %v7077_v3 = vpack.c.bf16 %v5863_v1, %v5861_v0 }
 0x363   : > { %6792 = vmatmul.mubr.msk.f32.vlgmr.msra.gmra.mrb[18].mxu1 %vm726_vm6, %v3619_v61  ;;  %v5862_v61 = vld [vmem:[%s10343_s10 + $0x3a8] sm:$0xff]  ;;  %vm2862_vm6 = vcmp.ne.s32.totalorder %v2848_v31, 0 }
 0x364   : > { %4231 = vmatprep.mubr.f32.mxu1 %v8749_v9  ;;  %7154 = vmatpush1.bf16.msra.mxu1 %v7153_v6  ;;  %v7075_v53 = vpack.c.bf16 %v5864_v62, %v5862_v61  ;;  %v5866_v6 = vld [vmem:[%s10343_s10 + $0x3c8] sm:$0xff]  ;;  %v5838_v61 = vld [vmem:[%s10342_s9] ss:$0 sm:$0xff] }
 0x365   : > { %7156 = vmatprep.subr.bf16.mxu1 %v7155_v38  ;;  %v7079_v10 = vpack.c.bf16 %v5868_v7, %v5866_v6  ;;  %v7175_v38 = vpack.c.bf16 %v5964_v57, %v5962_v11 }
 0x366   : > { %7076 = vmatprep.subr.bf16.mxu0 %v7075_v53 }
 0x367   : > { %7078 = vmatpush1.bf16.msra.mxu0 %v7077_v3 }
 0x368   : > { %7158 = vmatpush1.bf16.msra.mxu1 %v7157_v44  ;;  %7080 = vmatprep.subr.bf16.mxu0 %v7079_v10  ;;  %v7177_v44 = vpack.c.bf16 %v5963_v16, %v5961_v15  ;;  %v3780_v16 = vld [vmem:[%s10343_s10] sm:$0xff] }
 0x369   : > { %7160 = vmatprep.subr.bf16.mxu1 %v7159_v23  ;;  %v5965_v23 = vld [vmem:[%s10343_s10 + $0x4e0] sm:$0xff] }
 0x36a   : > { %v7181_v48 = vpack.c.bf16 %v5967_v24, %v5965_v23  ;;  %v3786_v24 = vld [vmem:[%s10343_s10 + $0x30] sm:$0xff] }
 0x36b   : > { %7082 = vmatpush1.bf16.msra.mxu0 %v7081_v14 }
 0x36c   : > { %7162 = vmatpush1.bf16.msra.mxu1 %v7161_v27  ;;  %v7085_v27 = vpack.c.bf16 %v5871_v22, %v5869_v52  ;;  %7084 = vmatprep.subr.bf16.mxu0 %v7083_v20  ;;  %v5910_v20 = vld [vmem:[%s10343_s10 + $0x128] sm:$0xff]  ;;  %v3784_v52 = vld [vmem:[%s10343_s10 + $0x20] sm:$0xff]  ;;  %v7089_v22 = vpack.c.bf16 %v3782_v17, %v3780_v16 }
 0x36d   : > { %7164 = vmatprep.subr.bf16.mxu1 %v7163_v56  ;;  %v5816_v56 = vsel %vm2862_vm6, 1.0, %v8749_v9 }
 0x36f   : > { %7086 = vmatpush1.bf16.msra.mxu0 %v7085_v27  ;;  %v7091_v27 = vpack.c.bf16 %v3787_v19, %v3785_v18  ;;  %v3805_v18 = vld [vmem:[%s10343_s10 + $0xc8] sm:$0xff]  ;;  %v3807_v19 = vld [vmem:[%s10343_s10 + $0xd8] sm:$0xff] }
 0x370   : > { %7166 = vmatpush1.bf16.msra.mxu1 %v7165_v41  ;;  %7088 = vmatprep.subr.bf16.mxu0 %v7087_v30  ;;  %v5914_v30 = vld [vmem:[%s10343_s10 + $0x148] sm:$0xff] }
 0x371   : > { %7168 = vmatprep.subr.bf16.mxu1 %v7167_v45 }
 0x374   : > { %7170 = vmatpush1.bf16.msra.mxu1 %v7169_v60 }
 0x375   : > { %7172 = vmatprep.subr.bf16.mxu1 %v7171_v2 }
 0x378   : > { %7174 = vmatpush1.bf16.msra.mxu1 %v7173_v43 }
 0x379   : > { %7176 = vmatprep.subr.bf16.mxu1 %v7175_v38 }
 0x37c   : > { %7178 = vmatpush1.bf16.msra.mxu1 %v7177_v44  ;;  %v5905_v44 = vld [vmem:[%s10343_s10 + $0x100] sm:$0xff] }
 0x37d   : > { %7180 = vmatprep.subr.bf16.mxu1 %v7179_v21  ;;  %v5912_v21 = vld [vmem:[%s10343_s10 + $0x138] sm:$0xff]  ;;  %v7185_v23 = vpack.c.bf16 %v5907_v59, %v5905_v44  ;;  %v5925_v44 = vld [vmem:[%s10343_s10 + $0x1a0] sm:$0xff]  ;;  %v5927_v59 = vld [vmem:[%s10343_s10 + $0x1b0] sm:$0xff] }
 0x380   : > { %7182 = vmatpush1.bf16.msra.mxu1 %v7181_v48  ;;  %v7187_v48 = vpack.c.bf16 %v5912_v21, %v5910_v20  ;;  %v5930_v20 = vld [vmem:[%s10343_s10 + $0x1c8] sm:$0xff]  ;;  %v5932_v21 = vld [vmem:[%s10343_s10 + $0x1d8] sm:$0xff] }
 0x381   : > { %7184 = vmatprep.subr.bf16.mxu1 %v7183_v39 }
 0x406   : > { %v6679_v35 = vpop.f32.mrb[16].mxu1 }
 0x407   : > { %v3151_v40 = vmul.f32 %v6679_v35, %v5816_v56  ;;  %v6736_v41 = vpop.f32.mrb[40].mxu0  ;;  %v3139_v8 = vpop.f32.mrb[17].mxu1  ;;  %v7093_v56 = vpack.c.bf16 %v3786_v24, %v3784_v52  ;;  %v3788_v35 = vld [vmem:[%s10343_s10 + $0x40] sm:$0xff]  ;;  %v3806_v24 = vld [vmem:[%s10343_s10 + $0xd0] sm:$0xff] }
 0x408   : > { %v3150_v42 = vmul.f32 %v5815_v34, %v3139_v8  ;;  %v3421_v13 = vpop.f32.mrb[41].mxu0  ;;  %v7189_v34 = vpack.c.bf16 %v5911_v25, %v5909_v26  ;;  %v7191_v8 = vpack.c.bf16 %v5916_v32, %v5914_v30  ;;  %v7111_v26 = vpack.c.bf16 %v3807_v19, %v3805_v18  ;;  %v5934_v30 = vld [vmem:[%s10343_s10 + $0x1e8] sm:$0xff]  ;;  %v5979_v18 = vld [vmem:[%s10343_s10 + $0x750] sm:$0xff] }
 0x409   : > { %v3433_v33 = vadd.f32 %v6736_v41, %v3151_v40  ;;  %v3790_v40 = vld [vmem:[%s10343_s10 + $0x50] sm:$0xff]  ;;  %v7095_v41 = vpack.c.bf16 %v3791_v29, %v3789_v28  ;;  %v7207_v25 = vpack.c.bf16 %v5932_v21, %v5930_v20  ;;  %v3809_v28 = vld [vmem:[%s10343_s10 + $0xe8] sm:$0xff]  ;;  %v3811_v29 = vld [vmem:[%s10343_s10 + $0xf8] sm:$0xff] }
 0x40a   : > { %v3432_v36 = vadd.f32 %v3421_v13, %v3150_v42  ;;  %v5913_v42 = vld [vmem:[%s10343_s10 + $0x140] sm:$0xff]  ;;  %v5915_v13 = vld [vmem:[%s10343_s10 + $0x150] sm:$0xff]  ;;  %v5886_v19 = vld [vmem:[%s10343_s10 + $0x668] sm:$0xff] }
 0x40b   : > { %v5888_v20 = vld [vmem:[%s10343_s10 + $0x678] sm:$0xff]  ;;  %v5982_v21 = vld [vmem:[%s10343_s10 + $0x768] sm:$0xff] }
 0x436   : > { %v6793_v54 = vpop.f32.mrb[18].mxu1 }
 0x437   : > { %v3713_v45 = vmul.f32 %v6793_v54, %v5818_v50  ;;  %v3701_v55 = vpop.f32.mrb[19].mxu1  ;;  %v5918_v50 = vld [vmem:[%s10343_s10 + $0x168] sm:$0xff]  ;;  %v7097_v54 = vpack.c.bf16 %v3790_v40, %v3788_v35  ;;  %v3810_v35 = vld [vmem:[%s10343_s10 + $0xf0] sm:$0xff]  ;;  %v7115_v40 = vpack.c.bf16 %v3811_v29, %v3809_v28 }
 0x438   : > { %v3712_v37 = vmul.f32 %v5817_v51, %v3701_v55  ;;  %v5920_v51 = vld [vmem:[%s10343_s10 + $0x178] sm:$0xff]  ;;  %v3792_v55 = vld [vmem:[%s10343_s10 + $0x60] sm:$0xff]  ;;  %v5983_v28 = vld [vmem:[%s10343_s10 + $0x770] sm:$0xff] }
 0x439   : > { %v3715_v60 = vadd.f32 %v3713_v45, %v3433_v33  ;;  %v3793_v33 = vld [vmem:[%s10343_s10 + $0x68] sm:$0xff]  ;;  %v7193_v45 = vpack.c.bf16 %v5915_v13, %v5913_v42  ;;  %v5935_v42 = vld [vmem:[%s10343_s10 + $0x1f0] sm:$0xff] }
 0x43a   : > { %v3714_v62 = vadd.f32 %v3712_v37, %v3432_v36  ;;  %v3795_v36 = vld [vmem:[%s10343_s10 + $0x78] sm:$0xff]  ;;  %v5874_v13 = vld [vmem:[%s10343_s10 + $0x608] sm:$0xff] }
 0x43b   : > { %v3724_v63 = vmul.f32 %v5837_v58, %v3715_v60  ;;  %v7099_v37 = vpack.c.bf16 %v3795_v36, %v3793_v33  ;;  %v7195_v60 = vpack.c.bf16 %v5920_v51, %v5918_v50  ;;  %v5876_v33 = vld [vmem:[%s10343_s10 + $0x618] sm:$0xff]  ;;  %v5970_v36 = vld [vmem:[%s10343_s10 + $0x708] sm:$0xff] }
 0x43c   : > { %v3723_v53 = vmul.f32 %v5837_v58, %v3714_v62  ;;  %v3794_v58 = vld [vmem:[%s10343_s10 + $0x70] sm:$0xff]  ;;  %v5972_v50 = vld [vmem:[%s10343_s10 + $0x718] sm:$0xff]  ;;  %v5890_v29 = vld [vmem:[%s10343_s10 + $0x688] sm:$0xff] }
 0x43d   : > { %v3733_v47 = vadd.f32 %v5838_v61, %v3724_v63  ;;  %v5919_v62 = vld [vmem:[%s10343_s10 + $0x170] sm:$0xff]  ;;  %v3797_v63 = vld [vmem:[%s10343_s10 + $0x88] sm:$0xff] }
 0x43e   : > { %v3732_v0 = vadd.f32 %v5838_v61, %v3723_v53  ;;  %v5917_v61 = vld [vmem:[%s10343_s10 + $0x160] sm:$0xff]  ;;  %v3799_v53 = vld [vmem:[%s10343_s10 + $0x98] sm:$0xff] }
 0x43f   : > { %v3735_v1 = vmax.f32 %v3733_v47, 0.0  ;;  %v5922_v47 = vld [vmem:[%s10343_s10 + $0x188] sm:$0xff] }
 0x440   : > { %v3734_v2 = vmax.f32 %v3732_v0, 0.0  ;;  %v5924_v0 = vld [vmem:[%s10343_s10 + $0x198] sm:$0xff] }
 0x441   : > { %3737 = vst [vmem:[#allocation6 + $0x8] sm:$0xff] %v3735_v1  ;;  %v7101_v1 = vpack.c.bf16 %v3794_v58, %v3792_v55  ;;  %v5875_v55 = vld [vmem:[%s10343_s10 + $0x610] sm:$0xff]  ;;  %v7119_v58 = vpack.c.bf16 %v5876_v33, %v5874_v13  ;;  %v5894_v33 = vld [vmem:[%s10343_s10 + $0x6a8] sm:$0xff] }
 0x442   : > { %3736 = vst [vmem:[#allocation6] sm:$0xff] %v3734_v2  ;;  %v7197_v2 = vpack.c.bf16 %v5919_v62, %v5917_v61  ;;  %v5971_v61 = vld [vmem:[%s10343_s10 + $0x710] sm:$0xff]  ;;  %v5878_v62 = vld [vmem:[%s10343_s10 + $0x628] sm:$0xff] }
 0x443   : > { %v5987_v13 = vld [vmem:[%s10343_s10 + $0x790] sm:$0xff] }
 0x448   : > { %v3750_v3 = vld [vmem:[#allocation6 + $0x8] ss:$2 sm:$0x3]  ;;  %v3752_v4 = vld [vmem:[#allocation6 + $0x9] ss:$2 sm:$0x3] }
 0x449   : > { %v3755_v5 = vld [vmem:[#allocation6 + $0xc] ss:$2 sm:$0x3]  ;;  %v3757_v43 = vld [vmem:[#allocation6 + $0xd] ss:$2 sm:$0x3]  ;;  %v3753_v6 = vmax.f32 %v3750_v3, %v3752_v4 }
 0x44a   : > { %v3738_v7 = vld [vmem:[#allocation6] ss:$2 sm:$0x3]  ;;  %v3740_v11 = vld [vmem:[#allocation6 + $0x1] ss:$2 sm:$0x3]  ;;  %v3758_v10 = vmax.f32 %v3755_v5, %v3757_v43  ;;  %v7103_v5 = vpack.c.bf16 %v3799_v53, %v3797_v63  ;;  %v7199_v43 = vpack.c.bf16 %v5924_v0, %v5922_v47 }
 0x44b   : > { %v3743_v57 = vld [vmem:[#allocation6 + $0x4] ss:$2 sm:$0x3]  ;;  %v3745_v46 = vld [vmem:[#allocation6 + $0x5] ss:$2 sm:$0x3]  ;;  %v3741_v12 = vmax.f32 %v3738_v7, %v3740_v11 }
 0x44c   : > { %v3746_v38 = vmax.f32 %v3743_v57, %v3745_v46  ;;  %v3759_v14 = vmax.f32 %v3753_v6, %v3758_v10  ;;  %v3796_v3 = vld [vmem:[%s10343_s10 + $0x80] sm:$0xff]  ;;  %v3798_v4 = vld [vmem:[%s10343_s10 + $0x90] sm:$0xff]  ;;  %v3801_v11 = vld [vmem:[%s10343_s10 + $0xa8] sm:$0xff] }
 0x44d   : > { %v5921_v6 = vld [vmem:[%s10343_s10 + $0x180] sm:$0xff]  ;;  %v5923_v7 = vld [vmem:[%s10343_s10 + $0x190] sm:$0xff]  ;;  %v3803_v10 = vld [vmem:[%s10343_s10 + $0xb8] sm:$0xff] }
 0x44e   : > { %v3747_v15 = vmax.f32 %v3741_v12, %v3746_v38  ;;  %3760 = vst [vmem:[#allocation7 + $0x5] sm:$0x3] %v3759_v14  ;;  %v5926_v57 = vld [vmem:[%s10343_s10 + $0x1a8] sm:$0xff]  ;;  %v5928_v46 = vld [vmem:[%s10343_s10 + $0x1b8] sm:$0xff]  ;;  %v7105_v12 = vpack.c.bf16 %v3798_v4, %v3796_v3  ;;  %v7201_v38 = vpack.c.bf16 %v5923_v7, %v5921_v6  ;;  %v3800_v14 = vld [vmem:[%s10343_s10 + $0xa0] sm:$0xff]  ;;  %v7107_v16 = vpack.c.bf16 %v3803_v10, %v3801_v11 }
 0x44f   : > { %v7203_v17 = vpack.c.bf16 %v5928_v46, %v5926_v57  ;;  %v5880_v63 = vld [vmem:[%s10343_s10 + $0x638] sm:$0xff]  ;;  %v5974_v53 = vld [vmem:[%s10343_s10 + $0x728] sm:$0xff]  ;;  %v5877_v0 = vld [vmem:[%s10343_s10 + $0x620] sm:$0xff] }
 0x450   : > { %3748 = vst [vmem:[#allocation7 + $0x3] sm:$0x3] %v3747_v15  ;;  %v3802_v15 = vld [vmem:[%s10343_s10 + $0xb0] sm:$0xff]  ;;  %v5976_v47 = vld [vmem:[%s10343_s10 + $0x738] sm:$0xff]  ;;  %v5973_v4 = vld [vmem:[%s10343_s10 + $0x720] sm:$0xff] }
 0x451   : > { %v7109_v52 = vpack.c.bf16 %v3802_v15, %v3800_v14  ;;  %v5879_v3 = vld [vmem:[%s10343_s10 + $0x630] sm:$0xff]  ;;  %v7219_v6 = vpack.c.bf16 %v5976_v47, %v5974_v53  ;;  %v5882_v7 = vld [vmem:[%s10343_s10 + $0x648] sm:$0xff]  ;;  %v5884_v11 = vld [vmem:[%s10343_s10 + $0x658] sm:$0xff] }
 0x452   : > { %v5978_v10 = vld [vmem:[%s10343_s10 + $0x748] sm:$0xff]  ;;  %v5881_v15 = vld [vmem:[%s10343_s10 + $0x640] sm:$0xff]  ;;  %v5900_v53 = vld [vmem:[%s10343_s10 + $0x6d8] sm:$0xff] }
 0x453   : > { %v5994_v47 = vld [vmem:[%s10343_s10 + $0x7c8] sm:$0xff] }
 0x457   : > { %v9175_v39 = vld [vmem:[#allocation7 + $0x2] sm:$0xf] }
 0x458   : > { %v4133_v31 = vld [vmem:[#allocation7 + $0x3] sm:$0xf]  ;;  %3911 = vmatmul.mubr.f32.vlgmr.msra.gmra.mrb[42].mxu0 %v9175_v39 }
 0x459   : > { %4232 = vmatmul.mubr.f32.vlgmr.msra.gmra.mrb[20].mxu1 %v4133_v31  ;;  %7090 = vmatpush1.bf16.msra.mxu0 %v7089_v22  ;;  %v7205_v22 = vpack.c.bf16 %v5927_v59, %v5925_v44  ;;  %v5936_v31 = vld [vmem:[%s10343_s10 + $0x1f8] sm:$0xff]  ;;  %v3779_v57 = vld [vmem:[#allocation7] sm:$0xf]  ;;  %v5977_v59 = vld [vmem:[%s10343_s10 + $0x740] sm:$0xff] }
 0x45a   : > { %7186 = vmatpush1.bf16.msra.mxu1 %v7185_v23  ;;  %7092 = vmatprep.subr.bf16.mxu0 %v7091_v27  ;;  %v3804_v23 = vld [vmem:[%s10343_s10 + $0xc0] sm:$0xff]  ;;  %v4099_v46 = vld [vmem:[#allocation7 + $0x1] sm:$0xf] }
 0x45b   : > { %7188 = vmatprep.subr.bf16.mxu1 %v7187_v48  ;;  %3981 = vmatprep.mubr.f32.mxu0 %v8749_v9  ;;  %v5929_v27 = vld [vmem:[%s10343_s10 + $0x1c0] sm:$0xff]  ;;  %v5931_v48 = vld [vmem:[%s10343_s10 + $0x1d0] sm:$0xff]  ;;  %v7113_v32 = vpack.c.bf16 %v3806_v24, %v3804_v23  ;;  %v7225_v23 = vpack.c.bf16 %v5979_v18, %v5977_v59  ;;  %v6034_v18 = vld [vmem:[%s10343_s10 + $0x508] sm:$0xff] }
 0x45c   : > { %4302 = vmatprep.mubr.f32.mxu1 %v8749_v9  ;;  %v5885_v24 = vld [vmem:[%s10343_s10 + $0x660] sm:$0xff]  ;;  %v5999_v59 = vld [vmem:[%s10343_s10 + $0x7f0] sm:$0xff] }
 0x45d   : > { %7094 = vmatpush1.bf16.msra.mxu0 %v7093_v56  ;;  %v7209_v56 = vpack.c.bf16 %v5931_v48, %v5929_v27  ;;  %v5981_v48 = vld [vmem:[%s10343_s10 + $0x760] sm:$0xff] }
 0x45e   : > { %7190 = vmatpush1.bf16.msra.mxu1 %v7189_v34  ;;  %7096 = vmatprep.subr.bf16.mxu0 %v7095_v41  ;;  %v3808_v34 = vld [vmem:[%s10343_s10 + $0xe0] sm:$0xff]  ;;  %v7211_v41 = vpack.c.bf16 %v5936_v31, %v5934_v30  ;;  %v5892_v30 = vld [vmem:[%s10343_s10 + $0x698] sm:$0xff]  ;;  %v5986_v31 = vld [vmem:[%s10343_s10 + $0x788] sm:$0xff] }
 0x45f   : > { %7192 = vmatprep.subr.bf16.mxu1 %v7191_v8  ;;  %v5933_v8 = vld [vmem:[%s10343_s10 + $0x1e0] sm:$0xff]  ;;  %v7117_v51 = vpack.c.bf16 %v3810_v35, %v3808_v34  ;;  %v7229_v34 = vpack.c.bf16 %v5983_v28, %v5981_v48  ;;  %v6039_v28 = vld [vmem:[%s10343_s10 + $0x530] sm:$0xff] }
 0x460   : > { %v5889_v35 = vld [vmem:[%s10343_s10 + $0x680] sm:$0xff] }
 0x461   : > { %7098 = vmatpush1.bf16.msra.mxu0 %v7097_v54  ;;  %v7213_v54 = vpack.c.bf16 %v5935_v42, %v5933_v8  ;;  %v5985_v42 = vld [vmem:[%s10343_s10 + $0x780] sm:$0xff] }
 0x462   : > { %7194 = vmatpush1.bf16.msra.mxu1 %v7193_v45  ;;  %7100 = vmatprep.subr.bf16.mxu0 %v7099_v37  ;;  %v5873_v45 = vld [vmem:[%s10343_s10 + $0x600] sm:$0xff]  ;;  %v7215_v37 = vpack.c.bf16 %v5972_v50, %v5970_v36  ;;  %v5896_v36 = vld [vmem:[%s10343_s10 + $0x6b8] sm:$0xff]  ;;  %v5990_v50 = vld [vmem:[%s10343_s10 + $0x7a8] sm:$0xff] }
 0x463   : > { %7196 = vmatprep.subr.bf16.mxu1 %v7195_v60  ;;  %v5969_v60 = vld [vmem:[%s10343_s10 + $0x700] sm:$0xff] }
 0x464   : > { %v6037_v48 = vld [vmem:[%s10343_s10 + $0x520] sm:$0xff] }
 0x465   : > { %7102 = vmatpush1.bf16.msra.mxu0 %v7101_v1  ;;  %v7121_v1 = vpack.c.bf16 %v5875_v55, %v5873_v45  ;;  %v7233_v45 = vpack.c.bf16 %v5987_v13, %v5985_v42  ;;  %v5893_v55 = vld [vmem:[%s10343_s10 + $0x6a0] sm:$0xff] }
 0x466   : > { %7198 = vmatpush1.bf16.msra.mxu1 %v7197_v2  ;;  %7104 = vmatprep.subr.bf16.mxu0 %v7103_v5  ;;  %v7217_v2 = vpack.c.bf16 %v5971_v61, %v5969_v60  ;;  %v5975_v5 = vld [vmem:[%s10343_s10 + $0x730] sm:$0xff]  ;;  %v5989_v61 = vld [vmem:[%s10343_s10 + $0x7a0] sm:$0xff] }
 0x467   : > { %7200 = vmatprep.subr.bf16.mxu1 %v7199_v43  ;;  %v7123_v43 = vpack.c.bf16 %v5880_v63, %v5878_v62  ;;  %v7221_v14 = vpack.c.bf16 %v5975_v5, %v5973_v4  ;;  %v5991_v62 = vld [vmem:[%s10343_s10 + $0x7b0] sm:$0xff]  ;;  %v5898_v63 = vld [vmem:[%s10343_s10 + $0x6c8] sm:$0xff] }
 0x468   : > { %v5899_v4 = vld [vmem:[%s10343_s10 + $0x6d0] sm:$0xff]  ;;  %v7143_v5 = vpack.c.bf16 %v5900_v53, %v5898_v63  ;;  %v6053_v63 = vld [vmem:[%s10343_s10 + $0x5a0] sm:$0xff] }
 0x469   : > { %7106 = vmatpush1.bf16.msra.mxu0 %v7105_v12  ;;  %v5980_v12 = vld [vmem:[%s10343_s10 + $0x758] sm:$0xff]  ;;  %v6055_v53 = vld [vmem:[%s10343_s10 + $0x5b0] sm:$0xff] }
 0x46a   : > { %7202 = vmatpush1.bf16.msra.mxu1 %v7201_v38  ;;  %7108 = vmatprep.subr.bf16.mxu0 %v7107_v16  ;;  %v7125_v38 = vpack.c.bf16 %v5879_v3, %v5877_v0  ;;  %v5883_v16 = vld [vmem:[%s10343_s10 + $0x650] sm:$0xff]  ;;  %v7223_v44 = vpack.c.bf16 %v5980_v12, %v5978_v10  ;;  %v5996_v0 = vld [vmem:[%s10343_s10 + $0x7d8] sm:$0xff]  ;;  %v5897_v3 = vld [vmem:[%s10343_s10 + $0x6c0] sm:$0xff] }
 0x46b   : > { %7204 = vmatprep.subr.bf16.mxu1 %v7203_v17  ;;  %v7127_v17 = vpack.c.bf16 %v5884_v11, %v5882_v7  ;;  %v5995_v7 = vld [vmem:[%s10343_s10 + $0x7d0] sm:$0xff]  ;;  %v5902_v11 = vld [vmem:[%s10343_s10 + $0x6e8] sm:$0xff]  ;;  %v5904_v10 = vld [vmem:[%s10343_s10 + $0x6f8] sm:$0xff]  ;;  %v7145_v12 = vpack.c.bf16 %v5899_v4, %v5897_v3 }
 0x46c   : > { %v6057_v3 = vld [vmem:[%s10343_s10 + $0x5c0] sm:$0xff]  ;;  %v6059_v4 = vld [vmem:[%s10343_s10 + $0x5d0] sm:$0xff] }
 0x46d   : > { %7110 = vmatpush1.bf16.msra.mxu0 %v7109_v52  ;;  %v5984_v52 = vld [vmem:[%s10343_s10 + $0x778] sm:$0xff] }
 0x46e   : > { %7206 = vmatpush1.bf16.msra.mxu1 %v7205_v22  ;;  %7112 = vmatprep.subr.bf16.mxu0 %v7111_v26  ;;  %v7129_v22 = vpack.c.bf16 %v5883_v16, %v5881_v15  ;;  %v5887_v26 = vld [vmem:[%s10343_s10 + $0x670] sm:$0xff]  ;;  %v7227_v27 = vpack.c.bf16 %v5984_v52, %v5982_v21  ;;  %v7147_v15 = vpack.c.bf16 %v5904_v10, %v5902_v11  ;;  %v6061_v11 = vld [vmem:[%s10343_s10 + $0x5e0] sm:$0xff] }
 0x46f   : > { %7208 = vmatprep.subr.bf16.mxu1 %v7207_v25  ;;  %v7131_v25 = vpack.c.bf16 %v5888_v20, %v5886_v19  ;;  %v6036_v19 = vld [vmem:[%s10343_s10 + $0x518] sm:$0xff]  ;;  %v6063_v10 = vld [vmem:[%s10343_s10 + $0x5f0] sm:$0xff] }
 0x470   : > { %v7247_v52 = vpack.c.bf16 %v6036_v19, %v6034_v18  ;;  %v6005_v18 = vld [vmem:[%s10343_s10 + $0x220] sm:$0xff]  ;;  %v6007_v19 = vld [vmem:[%s10343_s10 + $0x230] sm:$0xff] }
 0x471   : > { %7114 = vmatpush1.bf16.msra.mxu0 %v7113_v32  ;;  %v5988_v32 = vld [vmem:[%s10343_s10 + $0x798] sm:$0xff] }
 0x472   : > { %7210 = vmatpush1.bf16.msra.mxu1 %v7209_v56  ;;  %7116 = vmatprep.subr.bf16.mxu0 %v7115_v40  ;;  %v7133_v56 = vpack.c.bf16 %v5887_v26, %v5885_v24  ;;  %v5891_v40 = vld [vmem:[%s10343_s10 + $0x690] sm:$0xff]  ;;  %v7231_v8 = vpack.c.bf16 %v5988_v32, %v5986_v31  ;;  %v6038_v24 = vld [vmem:[%s10343_s10 + $0x528] sm:$0xff]  ;;  %v6040_v26 = vld [vmem:[%s10343_s10 + $0x538] sm:$0xff] }
 0x473   : > { %7212 = vmatprep.subr.bf16.mxu1 %v7211_v41  ;;  %v7135_v41 = vpack.c.bf16 %v5892_v30, %v5890_v29  ;;  %v6042_v29 = vld [vmem:[%s10343_s10 + $0x548] sm:$0xff]  ;;  %v6044_v32 = vld [vmem:[%s10343_s10 + $0x558] sm:$0xff] }
 0x474   : > { %v9536_v30 = vld [vmem:[#allocation7 + $0x4] sm:$0xf] }
 0x475   : > { %7118 = vmatpush1.bf16.msra.mxu0 %v7117_v51  ;;  %v5992_v51 = vld [vmem:[%s10343_s10 + $0x7b8] sm:$0xff]  ;;  %v4309_v31 = vld [vmem:[#allocation7 + $0x5] sm:$0xf] }
 0x476   : > { %7214 = vmatpush1.bf16.msra.mxu1 %v7213_v54  ;;  %7120 = vmatprep.subr.bf16.mxu0 %v7119_v58  ;;  %v7137_v54 = vpack.c.bf16 %v5891_v40, %v5889_v35  ;;  %v5895_v58 = vld [vmem:[%s10343_s10 + $0x6b0] sm:$0xff]  ;;  %v7235_v60 = vpack.c.bf16 %v5992_v51, %v5990_v50  ;;  %v6041_v35 = vld [vmem:[%s10343_s10 + $0x540] sm:$0xff]  ;;  %v6050_v50 = vld [vmem:[%s10343_s10 + $0x588] sm:$0xff] }
 0x477   : > { %7216 = vmatprep.subr.bf16.mxu1 %v7215_v37  ;;  %v7139_v37 = vpack.c.bf16 %v5896_v36, %v5894_v33  ;;  %v6043_v40 = vld [vmem:[%s10343_s10 + $0x550] sm:$0xff]  ;;  %v6045_v33 = vld [vmem:[%s10343_s10 + $0x560] sm:$0xff]  ;;  %v6052_v51 = vld [vmem:[%s10343_s10 + $0x598] sm:$0xff] }
 0x478   : > { %3982 = vmatmul.mubr.f32.vlgmr.msra.gmra.mrb[42].mxu0 %v3779_v57  ;;  %v5998_v57 = vld [vmem:[%s10343_s10 + $0x7e8] sm:$0xff]  ;;  %v7257_v42 = vpack.c.bf16 %v6043_v40, %v6041_v35  ;;  %v6047_v36 = vld [vmem:[%s10343_s10 + $0x570] sm:$0xff] }
 0x479   : > { %4303 = vmatmul.mubr.f32.vlgmr.msra.gmra.mrb[20].mxu1 %v4099_v46  ;;  %7122 = vmatpush1.bf16.msra.mxu0 %v7121_v1  ;;  %v7141_v1 = vpack.c.bf16 %v5895_v58, %v5893_v55  ;;  %v6000_v46 = vld [vmem:[%s10343_s10 + $0x7f8] sm:$0xff]  ;;  %v6049_v55 = vld [vmem:[%s10343_s10 + $0x580] sm:$0xff]  ;;  %v6051_v58 = vld [vmem:[%s10343_s10 + $0x590] sm:$0xff] }
 0x47a   : > { %7218 = vmatpush1.bf16.msra.mxu1 %v7217_v2  ;;  %7124 = vmatprep.subr.bf16.mxu0 %v7123_v43  ;;  %v7237_v2 = vpack.c.bf16 %v5991_v62, %v5989_v61  ;;  %v7239_v43 = vpack.c.bf16 %v5996_v0, %v5994_v47  ;;  %v7243_v16 = vpack.c.bf16 %v6000_v46, %v5998_v57  ;;  %v6058_v47 = vld [vmem:[%s10343_s10 + $0x5c8] sm:$0xff]  ;;  %v6060_v0 = vld [vmem:[%s10343_s10 + $0x5d8] sm:$0xff]  ;;  %v6019_v35 = vld [vmem:[%s10343_s10 + $0x290] sm:$0xff] }
 0x47b   : > { %7220 = vmatprep.subr.bf16.mxu1 %v7219_v6  ;;  %4086 = vmatprep.mubr.f32.mxu0 %v8749_v9  ;;  %v5993_v6 = vld [vmem:[%s10343_s10 + $0x7c0] sm:$0xff]  ;;  %v7265_v61 = vpack.c.bf16 %v6051_v58, %v6049_v55  ;;  %v6002_v57 = vld [vmem:[%s10343_s10 + $0x208] sm:$0xff]  ;;  %v6004_v46 = vld [vmem:[%s10343_s10 + $0x218] sm:$0xff] }
 0x47c   : > { %4407 = vmatprep.mubr.f32.mxu1 %v8749_v9  ;;  %v6022_v40 = vld [vmem:[%s10343_s10 + $0x2a8] sm:$0xff]  ;;  %v6027_v55 = vld [vmem:[%s10343_s10 + $0x2d0] sm:$0xff] }
 0x47d   : > { %7126 = vmatpush1.bf16.msra.mxu0 %v7125_v38  ;;  %v7241_v38 = vpack.c.bf16 %v5995_v7, %v5993_v6  ;;  %v7273_v6 = vpack.c.bf16 %v6059_v4, %v6057_v3  ;;  %v6030_v58 = vld [vmem:[%s10343_s10 + $0x2e8] sm:$0xff]  ;;  %v6067_v3 = vld [vmem:[%s10343_s10 + $0x810] sm:$0xff] }
 0x47e   : > { %7222 = vmatpush1.bf16.msra.mxu1 %v7221_v14  ;;  %7128 = vmatprep.subr.bf16.mxu0 %v7127_v17  ;;  %v5901_v14 = vld [vmem:[%s10343_s10 + $0x6e0] sm:$0xff]  ;;  %v5903_v17 = vld [vmem:[%s10343_s10 + $0x6f0] sm:$0xff]  ;;  %v6070_v4 = vld [vmem:[%s10343_s10 + $0x828] sm:$0xff] }
 0x47f   : > { %7224 = vmatprep.subr.bf16.mxu1 %v7223_v44  ;;  %v5997_v44 = vld [vmem:[%s10343_s10 + $0x7e0] sm:$0xff]  ;;  %v7149_v20 = vpack.c.bf16 %v5903_v17, %v5901_v14  ;;  %v6008_v17 = vld [vmem:[%s10343_s10 + $0x238] sm:$0xff] }
 0x480   : > { %v7245_v21 = vpack.c.bf16 %v5999_v59, %v5997_v44  ;;  %v6001_v14 = vld [vmem:[%s10343_s10 + $0x200] sm:$0xff] }
 0x481   : > { %7130 = vmatpush1.bf16.msra.mxu0 %v7129_v22  ;;  %v6033_v22 = vld [vmem:[%s10343_s10 + $0x500] sm:$0xff] }
 0x482   : > { %7226 = vmatpush1.bf16.msra.mxu1 %v7225_v23  ;;  %7132 = vmatprep.subr.bf16.mxu0 %v7131_v25  ;;  %v6035_v23 = vld [vmem:[%s10343_s10 + $0x510] sm:$0xff] }
 0x483   : > { %7228 = vmatprep.subr.bf16.mxu1 %v7227_v27  ;;  %v7249_v25 = vpack.c.bf16 %v6035_v23, %v6033_v22  ;;  %v7251_v27 = vpack.c.bf16 %v6040_v26, %v6038_v24  ;;  %v6009_v23 = vld [vmem:[%s10343_s10 + $0x240] sm:$0xff]  ;;  %v6011_v24 = vld [vmem:[%s10343_s10 + $0x250] sm:$0xff]  ;;  %v6014_v26 = vld [vmem:[%s10343_s10 + $0x268] sm:$0xff] }
 0x485   : > { %7134 = vmatpush1.bf16.msra.mxu0 %v7133_v56  ;;  %v7253_v56 = vpack.c.bf16 %v6039_v28, %v6037_v48  ;;  %v6013_v28 = vld [vmem:[%s10343_s10 + $0x260] sm:$0xff] }
 0x486   : > { %7230 = vmatpush1.bf16.msra.mxu1 %v7229_v34  ;;  %7136 = vmatprep.subr.bf16.mxu0 %v7135_v41  ;;  %v7255_v34 = vpack.c.bf16 %v6044_v32, %v6042_v29  ;;  %v6046_v41 = vld [vmem:[%s10343_s10 + $0x568] sm:$0xff]  ;;  %v6015_v29 = vld [vmem:[%s10343_s10 + $0x270] sm:$0xff] }
 0x487   : > { %7232 = vmatprep.subr.bf16.mxu1 %v7231_v8  ;;  %v6048_v8 = vld [vmem:[%s10343_s10 + $0x578] sm:$0xff]  ;;  %v7293_v32 = vpack.c.bf16 %v6015_v29, %v6013_v28  ;;  %v6090_v28 = vld [vmem:[%s10343_s10 + $0x8c8] sm:$0xff] }
 0x488   : > { %v7259_v13 = vpack.c.bf16 %v6048_v8, %v6046_v41  ;;  %v6024_v41 = vld [vmem:[%s10343_s10 + $0x2b8] sm:$0xff] }
 0x489   : > { %7138 = vmatpush1.bf16.msra.mxu0 %v7137_v54  ;;  %v7261_v54 = vpack.c.bf16 %v6047_v36, %v6045_v33  ;;  %v6023_v33 = vld [vmem:[%s10343_s10 + $0x2b0] sm:$0xff]  ;;  %v6026_v36 = vld [vmem:[%s10343_s10 + $0x2c8] sm:$0xff]  ;;  %v6092_v29 = vld [vmem:[%s10343_s10 + $0x8d8] sm:$0xff] }
 0x48a   : > { %7234 = vmatpush1.bf16.msra.mxu1 %v7233_v45  ;;  %7140 = vmatprep.subr.bf16.mxu0 %v7139_v37  ;;  %v7263_v45 = vpack.c.bf16 %v6052_v51, %v6050_v50  ;;  %v6054_v37 = vld [vmem:[%s10343_s10 + $0x5a8] sm:$0xff]  ;;  %v6028_v50 = vld [vmem:[%s10343_s10 + $0x2d8] sm:$0xff] }
 0x48b   : > { %7236 = vmatprep.subr.bf16.mxu1 %v7235_v60  ;;  %v6056_v60 = vld [vmem:[%s10343_s10 + $0x5b8] sm:$0xff] }
 0x48c   : > { %v7267_v62 = vpack.c.bf16 %v6056_v60, %v6054_v37  ;;  %v6032_v37 = vld [vmem:[%s10343_s10 + $0x2f8] sm:$0xff] }
 0x48d   : > { %7142 = vmatpush1.bf16.msra.mxu0 %v7141_v1  ;;  %v7269_v1 = vpack.c.bf16 %v6055_v53, %v6053_v63  ;;  %v6031_v63 = vld [vmem:[%s10343_s10 + $0x2f0] sm:$0xff]  ;;  %v6066_v53 = vld [vmem:[%s10343_s10 + $0x808] sm:$0xff] }
 0x48e   : > { %7238 = vmatpush1.bf16.msra.mxu1 %v7237_v2  ;;  %7144 = vmatprep.subr.bf16.mxu0 %v7143_v5  ;;  %v7271_v2 = vpack.c.bf16 %v6060_v0, %v6058_v47  ;;  %v6062_v5 = vld [vmem:[%s10343_s10 + $0x5e8] sm:$0xff]  ;;  %v6068_v47 = vld [vmem:[%s10343_s10 + $0x818] sm:$0xff] }
 0x48f   : > { %7240 = vmatprep.subr.bf16.mxu1 %v7239_v43  ;;  %v6064_v43 = vld [vmem:[%s10343_s10 + $0x5f8] sm:$0xff] }
 0x490   : > { %v7275_v7 = vpack.c.bf16 %v6064_v43, %v6062_v5  ;;  %v6072_v5 = vld [vmem:[%s10343_s10 + $0x838] sm:$0xff] }
 0x491   : > { %7146 = vmatpush1.bf16.msra.mxu0 %v7145_v12  ;;  %v7277_v12 = vpack.c.bf16 %v6063_v10, %v6061_v11  ;;  %v6071_v11 = vld [vmem:[%s10343_s10 + $0x830] sm:$0xff]  ;;  %v6074_v10 = vld [vmem:[%s10343_s10 + $0x848] sm:$0xff] }
 0x492   : > { %7242 = vmatpush1.bf16.msra.mxu1 %v7241_v38  ;;  %7148 = vmatprep.subr.bf16.mxu0 %v7147_v15  ;;  %v7279_v38 = vpack.c.bf16 %v6004_v46, %v6002_v57  ;;  %v6003_v15 = vld [vmem:[%s10343_s10 + $0x210] sm:$0xff]  ;;  %v6076_v57 = vld [vmem:[%s10343_s10 + $0x858] sm:$0xff] }
 0x493   : > { %7244 = vmatprep.subr.bf16.mxu1 %v7243_v16  ;;  %v6006_v16 = vld [vmem:[%s10343_s10 + $0x228] sm:$0xff]  ;;  %v7281_v44 = vpack.c.bf16 %v6003_v15, %v6001_v14  ;;  %v6075_v14 = vld [vmem:[%s10343_s10 + $0x850] sm:$0xff] }
 0x494   : > { %v7283_v59 = vpack.c.bf16 %v6008_v17, %v6006_v16  ;;  %v6078_v15 = vld [vmem:[%s10343_s10 + $0x868] sm:$0xff] }
 0x495   : > { %7150 = vmatpush1.bf16.msra.mxu0 %v7149_v20  ;;  %v6010_v20 = vld [vmem:[%s10343_s10 + $0x248] sm:$0xff] }
 0x496   : > { %7246 = vmatpush1.bf16.msra.mxu1 %v7245_v21  ;;  %7248 = vmatprep.subr.bf16.mxu0 %v7247_v52  ;;  %v6012_v21 = vld [vmem:[%s10343_s10 + $0x258] sm:$0xff]  ;;  %v7285_v52 = vpack.c.bf16 %v6007_v19, %v6005_v18  ;;  %v6082_v18 = vld [vmem:[%s10343_s10 + $0x888] sm:$0xff] }
 0x497   : > { %v7287_v22 = vpack.c.bf16 %v6012_v21, %v6010_v20  ;;  %v6084_v19 = vld [vmem:[%s10343_s10 + $0x898] sm:$0xff] }
 0x498   : > { %4087 = vmatmul.mubr.f32.vlgmr.msra.gmra.mrb[42].mxu0 %v9536_v30  ;;  %v7327_v21 = vpack.c.bf16 %v6084_v19, %v6082_v18  ;;  %v4816_v19 = vld [vmem:[%s10346_s13 + $0x108] sm:$0xff] }
 0x499   : > { %4408 = vmatmul.mubr.f32.vlgmr.msra.gmra.mrb[20].mxu1 %v4309_v31  ;;  %7250 = vmatpush1.bf16.msra.mxu0 %v7249_v25  ;;  %v6016_v25 = vld [vmem:[%s10343_s10 + $0x278] sm:$0xff] }
 0x49a   : > { %4548 = vmatprep.mubr.f32.mxu0 %v8749_v9  ;;  %7252 = vmatprep.subr.bf16.mxu0 %v7251_v27  ;;  %v7289_v27 = vpack.c.bf16 %v6011_v24, %v6009_v23  ;;  %v7291_v48 = vpack.c.bf16 %v6016_v25, %v6014_v26  ;;  %v6020_v31 = vld [vmem:[%s10343_s10 + $0x298] sm:$0xff]  ;;  %v6086_v23 = vld [vmem:[%s10343_s10 + $0x8a8] sm:$0xff] }
 0x49b   : > { %v6088_v24 = vld [vmem:[%s10343_s10 + $0x8b8] sm:$0xff] }
 0x49c   : > { %v7331_v25 = vpack.c.bf16 %v6088_v24, %v6086_v23  ;;  %v4810_v23 = vld [vmem:[%s10346_s13 + $0xd8] sm:$0xff] }
 0x49d   : > { %7254 = vmatpush1.bf16.msra.mxu0 %v7253_v56  ;;  %v4814_v24 = vld [vmem:[%s10346_s13 + $0xf8] sm:$0xff] }
 0x49e   : > { %7256 = vmatprep.subr.bf16.mxu0 %v7255_v34  ;;  %v6017_v34 = vld [vmem:[%s10343_s10 + $0x280] sm:$0xff] }
 0x49f   : > { %v7297_v8 = vpack.c.bf16 %v6019_v35, %v6017_v34  ;;  %v6094_v34 = vld [vmem:[%s10343_s10 + $0x8e8] sm:$0xff]  ;;  %v6096_v35 = vld [vmem:[%s10343_s10 + $0x8f8] sm:$0xff] }
 0x4a1   : > { %7258 = vmatpush1.bf16.msra.mxu0 %v7257_v42  ;;  %v7299_v42 = vpack.c.bf16 %v6024_v41, %v6022_v40  ;;  %v7339_v41 = vpack.c.bf16 %v6096_v35, %v6094_v34  ;;  %v4818_v34 = vld [vmem:[%s10346_s13 + $0x118] sm:$0xff] }
 0x4a2   : > { %7260 = vmatprep.subr.bf16.mxu0 %v7259_v13  ;;  %v6021_v13 = vld [vmem:[%s10343_s10 + $0x2a0] sm:$0xff]  ;;  %v4822_v35 = vld [vmem:[%s10346_s13 + $0x138] sm:$0xff] }
 0x4a3   : > { %v7301_v51 = vpack.c.bf16 %v6023_v33, %v6021_v13  ;;  %v4784_v13 = vld [vmem:[%s10346_s13 + $0x8] sm:$0xff] }
 0x4a4   : > { %v4788_v33 = vld [vmem:[%s10346_s13 + $0x28] sm:$0xff] }
 0x4a5   : > { %7262 = vmatpush1.bf16.msra.mxu0 %v7261_v54  ;;  %v7303_v54 = vpack.c.bf16 %v6028_v50, %v6026_v36  ;;  %v4786_v36 = vld [vmem:[%s10346_s13 + $0x18] sm:$0xff]  ;;  %v7343_v50 = vpack.c.bf16 %v4788_v33, %v4784_v13  ;;  %v4832_v33 = vld [vmem:[%s10346_s13 + $0x188] sm:$0xff] }
 0x4a6   : > { %7264 = vmatprep.subr.bf16.mxu0 %v7263_v45  ;;  %v6025_v45 = vld [vmem:[%s10343_s10 + $0x2c0] sm:$0xff] }
 0x4a7   : > { %v7305_v60 = vpack.c.bf16 %v6027_v55, %v6025_v45  ;;  %v4787_v45 = vld [vmem:[%s10346_s13 + $0x20] sm:$0xff]  ;;  %7344 = vmatprep.subr.bf16.mxu1 %v7343_v50  ;;  %v7423_v50 = vpack.c.bf16 %v4822_v35, %v4818_v34  ;;  %v4857_v35 = vld [vmem:[%s10346_s13 + $0x250] sm:$0xff] }
 0x4a9   : > { %7266 = vmatpush1.bf16.msra.mxu0 %v7265_v61  ;;  %v7307_v61 = vpack.c.bf16 %v6032_v37, %v6030_v58  ;;  %v4785_v37 = vld [vmem:[%s10346_s13 + $0x10] sm:$0xff] }
 0x4aa   : > { %7268 = vmatprep.subr.bf16.mxu0 %v7267_v62  ;;  %v6029_v62 = vld [vmem:[%s10343_s10 + $0x2e0] sm:$0xff] }
 0x4ab   : > { %v7309_v0 = vpack.c.bf16 %v6031_v63, %v6029_v62  ;;  %v4789_v62 = vld [vmem:[%s10346_s13 + $0x30] sm:$0xff]  ;;  %v4796_v63 = vld [vmem:[%s10346_s13 + $0x68] sm:$0xff] }
 0x4ad   : > { %7270 = vmatpush1.bf16.msra.mxu0 %v7269_v1  ;;  %v7311_v1 = vpack.c.bf16 %v6068_v47, %v6066_v53  ;;  %v4794_v53 = vld [vmem:[%s10346_s13 + $0x58] sm:$0xff] }
 0x4ae   : > { %7272 = vmatprep.subr.bf16.mxu0 %v7271_v2  ;;  %v6065_v2 = vld [vmem:[%s10343_s10 + $0x800] sm:$0xff] }
 0x4af   : > { %v7313_v43 = vpack.c.bf16 %v6067_v3, %v6065_v2  ;;  %v4795_v2 = vld [vmem:[%s10346_s13 + $0x60] sm:$0xff] }
 0x4b1   : > { %7274 = vmatpush1.bf16.msra.mxu0 %v7273_v6  ;;  %v7315_v6 = vpack.c.bf16 %v6072_v5, %v6070_v4  ;;  %v4800_v4 = vld [vmem:[%s10346_s13 + $0x88] sm:$0xff] }
 0x4b2   : > { %7276 = vmatprep.subr.bf16.mxu0 %v7275_v7  ;;  %v6069_v7 = vld [vmem:[%s10343_s10 + $0x820] sm:$0xff]  ;;  %v4804_v5 = vld [vmem:[%s10346_s13 + $0xa8] sm:$0xff] }
 0x4b3   : > { %v7317_v46 = vpack.c.bf16 %v6071_v11, %v6069_v7  ;;  %v4793_v7 = vld [vmem:[%s10346_s13 + $0x50] sm:$0xff]  ;;  %v7351_v11 = vpack.c.bf16 %v4804_v5, %v4800_v4 }
 0x4b5   : > { %7278 = vmatpush1.bf16.msra.mxu0 %v7277_v12  ;;  %v7319_v12 = vpack.c.bf16 %v6076_v57, %v6074_v10  ;;  %v4799_v10 = vld [vmem:[%s10346_s13 + $0x80] sm:$0xff] }
 0x4b6   : > { %7280 = vmatprep.subr.bf16.mxu0 %v7279_v38  ;;  %v6073_v38 = vld [vmem:[%s10343_s10 + $0x840] sm:$0xff] }
 0x4b7   : > { %v7321_v16 = vpack.c.bf16 %v6075_v14, %v6073_v38  ;;  %v4803_v38 = vld [vmem:[%s10346_s13 + $0xa0] sm:$0xff]  ;;  %v4806_v14 = vld [vmem:[%s10346_s13 + $0xb8] sm:$0xff] }
 0x4b8   : > { %4549 = vmatmul.mubr.f32.vlgmr.msra.gmra.mrb[44].mxu0 %v9536_v30  ;;  %v6018_v30 = vld [vmem:[%s10343_s10 + $0x288] sm:$0xff] }
 0x4b9   : > { %7282 = vmatpush1.bf16.msra.mxu0 %v7281_v44  ;;  %4619 = vmatprep.mubr.f32.mxu0 %v8749_v9  ;;  %v7295_v56 = vpack.c.bf16 %v6020_v31, %v6018_v30  ;;  %v6077_v44 = vld [vmem:[%s10343_s10 + $0x860] sm:$0xff]  ;;  %v7335_v31 = vpack.c.bf16 %v6092_v29, %v6090_v28  ;;  %v4824_v29 = vld [vmem:[%s10346_s13 + $0x148] sm:$0xff] }
 0x4ba   : > { %7284 = vmatprep.subr.bf16.mxu0 %v7283_v59  ;;  %v6079_v59 = vld [vmem:[%s10343_s10 + $0x870] sm:$0xff] }
 0x4bb   : > { %v7325_v20 = vpack.c.bf16 %v6079_v59, %v6077_v44  ;;  %v4807_v44 = vld [vmem:[%s10346_s13 + $0xc0] sm:$0xff] }
 0x4bc   : > { %v4811_v59 = vld [vmem:[%s10346_s13 + $0xe0] sm:$0xff] }
 0x4bd   : > { %7286 = vmatpush1.bf16.msra.mxu0 %v7285_v52  ;;  %v6081_v52 = vld [vmem:[%s10343_s10 + $0x880] sm:$0xff] }
 0x4be   : > { %7288 = vmatprep.subr.bf16.mxu0 %v7287_v22  ;;  %v6083_v22 = vld [vmem:[%s10343_s10 + $0x890] sm:$0xff] }
 0x4bf   : > { %v7329_v26 = vpack.c.bf16 %v6083_v22, %v6081_v52  ;;  %v4805_v52 = vld [vmem:[%s10346_s13 + $0xb0] sm:$0xff]  ;;  %v4820_v22 = vld [vmem:[%s10346_s13 + $0x128] sm:$0xff] }
 0x4c1   : > { %7290 = vmatpush1.bf16.msra.mxu0 %v7289_v27  ;;  %v6085_v27 = vld [vmem:[%s10343_s10 + $0x8a0] sm:$0xff] }
 0x4c2   : > { %7292 = vmatprep.subr.bf16.mxu0 %v7291_v48  ;;  %v6087_v48 = vld [vmem:[%s10343_s10 + $0x8b0] sm:$0xff] }
 0x4c3   : > { %v7333_v30 = vpack.c.bf16 %v6087_v48, %v6085_v27  ;;  %v4815_v27 = vld [vmem:[%s10346_s13 + $0x100] sm:$0xff] }
 0x4c4   : > { %v4819_v48 = vld [vmem:[%s10346_s13 + $0x120] sm:$0xff] }
 0x4c5   : > { %7294 = vmatpush1.bf16.msra.mxu0 %v7293_v32  ;;  %v6089_v32 = vld [vmem:[%s10343_s10 + $0x8c0] sm:$0xff] }
 0x4c6   : > { %7296 = vmatprep.subr.bf16.mxu0 %v7295_v56  ;;  %v6091_v56 = vld [vmem:[%s10343_s10 + $0x8d0] sm:$0xff] }
 0x4c7   : > { %v7337_v40 = vpack.c.bf16 %v6091_v56, %v6089_v32  ;;  %v4809_v32 = vld [vmem:[%s10346_s13 + $0xd0] sm:$0xff] }
 0x4c8   : > { %v4813_v56 = vld [vmem:[%s10346_s13 + $0xf0] sm:$0xff] }
 0x4c9   : > { %7298 = vmatpush1.bf16.msra.mxu0 %v7297_v8  ;;  %v6093_v8 = vld [vmem:[%s10343_s10 + $0x8e0] sm:$0xff]  ;;  %v7421_v13 = vpack.c.bf16 %v4813_v56, %v4809_v32 }
 0x4ca   : > { %7300 = vmatprep.subr.bf16.mxu0 %v7299_v42  ;;  %v6095_v42 = vld [vmem:[%s10343_s10 + $0x8f0] sm:$0xff]  ;;  %v4859_v32 = vld [vmem:[%s10346_s13 + $0x260] sm:$0xff] }
 0x4cb   : > { %v7341_v55 = vpack.c.bf16 %v6095_v42, %v6093_v8  ;;  %v4823_v8 = vld [vmem:[%s10346_s13 + $0x140] sm:$0xff] }
 0x4cc   : > { %v4827_v42 = vld [vmem:[%s10346_s13 + $0x160] sm:$0xff] }
 0x4cd   : > { %7302 = vmatpush1.bf16.msra.mxu0 %v7301_v51  ;;  %v4790_v51 = vld [vmem:[%s10346_s13 + $0x38] sm:$0xff] }
 0x4ce   : > { %7304 = vmatprep.subr.bf16.mxu0 %v7303_v54  ;;  %v4783_v54 = vld [vmem:[%s10346_s13] sm:$0xff] }
 0x4cf   : > { %v7345_v58 = vpack.c.bf16 %v4787_v45, %v4783_v54  ;;  %v4821_v54 = vld [vmem:[%s10346_s13 + $0x130] sm:$0xff]  ;;  %v4826_v45 = vld [vmem:[%s10346_s13 + $0x158] sm:$0xff] }
 0x4d1   : > { %7306 = vmatpush1.bf16.msra.mxu0 %v7305_v60  ;;  %v4792_v60 = vld [vmem:[%s10346_s13 + $0x48] sm:$0xff]  ;;  %7346 = vmatpush1.bf16.msra.mxu1 %v7345_v58  ;;  %v7365_v58 = vpack.c.bf16 %v4827_v42, %v4823_v8 }
 0x4d2   : > { %7308 = vmatprep.subr.bf16.mxu0 %v7307_v61  ;;  %v7407_v61 = vpack.c.bf16 %v4790_v51, %v4786_v36  ;;  %v7347_v47 = vpack.c.bf16 %v4796_v63, %v4792_v60  ;;  %v4836_v36 = vld [vmem:[%s10346_s13 + $0x1a8] sm:$0xff]  ;;  %v4817_v51 = vld [vmem:[%s10346_s13 + $0x110] sm:$0xff]  ;;  %v4831_v60 = vld [vmem:[%s10346_s13 + $0x180] sm:$0xff] }
 0x4d3   : > { %v4840_v63 = vld [vmem:[%s10346_s13 + $0x1c8] sm:$0xff] }
 0x4d4   : > { %7348 = vmatprep.subr.bf16.mxu1 %v7347_v47  ;;  %v4864_v8 = vld [vmem:[%s10346_s13 + $0x288] sm:$0xff] }
 0x4d5   : > { %7310 = vmatpush1.bf16.msra.mxu0 %v7309_v0  ;;  %v4798_v0 = vld [vmem:[%s10346_s13 + $0x78] sm:$0xff]  ;;  %v4868_v42 = vld [vmem:[%s10346_s13 + $0x2a8] sm:$0xff] }
 0x4d6   : > { %7312 = vmatprep.subr.bf16.mxu0 %v7311_v1  ;;  %v4791_v1 = vld [vmem:[%s10346_s13 + $0x40] sm:$0xff]  ;;  %v7411_v57 = vpack.c.bf16 %v4798_v0, %v4794_v53  ;;  %v4844_v53 = vld [vmem:[%s10346_s13 + $0x1e8] sm:$0xff]  ;;  %v4825_v0 = vld [vmem:[%s10346_s13 + $0x150] sm:$0xff] }
 0x4d7   : > { %v7349_v3 = vpack.c.bf16 %v4795_v2, %v4791_v1  ;;  %v4829_v1 = vld [vmem:[%s10346_s13 + $0x170] sm:$0xff]  ;;  %v4834_v2 = vld [vmem:[%s10346_s13 + $0x198] sm:$0xff]  ;;  %v7371_v5 = vpack.c.bf16 %v4844_v53, %v4840_v63 }
 0x4d8   : > { %4620 = vmatmul.mubr.f32.vlgmr.msra.gmra.mrb[44].mxu0 %v9175_v39  ;;  %v6080_v39 = vld [vmem:[%s10343_s10 + $0x878] sm:$0xff] }
 0x4d9   : > { %7314 = vmatpush1.bf16.msra.mxu0 %v7313_v43  ;;  %4724 = vmatprep.mubr.f32.mxu0 %v8749_v9  ;;  %v7323_v17 = vpack.c.bf16 %v6080_v39, %v6078_v15  ;;  %v4626_v43 = vld [vmem:[#allocation7 + $0x6] sm:$0xf]  ;;  %v7353_v15 = vpack.c.bf16 %v4803_v38, %v4799_v10  ;;  %v4842_v38 = vld [vmem:[%s10346_s13 + $0x1d8] sm:$0xff] }
 0x4da   : > { %7316 = vmatprep.subr.bf16.mxu0 %v7315_v6  ;;  %v7409_v6 = vpack.c.bf16 %v4789_v62, %v4785_v37  ;;  %7350 = vmatpush1.bf16.msra.mxu1 %v7349_v3  ;;  %v4808_v39 = vld [vmem:[%s10346_s13 + $0xc8] sm:$0xff]  ;;  %v7367_v37 = vpack.c.bf16 %v4836_v36, %v4832_v33  ;;  %v7425_v62 = vpack.c.bf16 %v4821_v54, %v4817_v51  ;;  %v4838_v3 = vld [vmem:[%s10346_s13 + $0x1b8] sm:$0xff]  ;;  %v4867_v54 = vld [vmem:[%s10346_s13 + $0x2a0] sm:$0xff] }
 0x4db   : > { %7352 = vmatprep.subr.bf16.mxu1 %v7351_v11  ;;  %v4848_v11 = vld [vmem:[%s10346_s13 + $0x208] sm:$0xff]  ;;  %v4866_v33 = vld [vmem:[%s10346_s13 + $0x298] sm:$0xff] }
 0x4dc   : > { %v4852_v10 = vld [vmem:[%s10346_s13 + $0x228] sm:$0xff]  ;;  %v4870_v36 = vld [vmem:[%s10346_s13 + $0x2b8] sm:$0xff] }
 0x4dd   : > { %7318 = vmatpush1.bf16.msra.mxu0 %v7317_v46  ;;  %v4797_v46 = vld [vmem:[%s10346_s13 + $0x70] sm:$0xff]  ;;  %v7447_v51 = vpack.c.bf16 %v4870_v36, %v4866_v33  ;;  %v4878_v53 = vld [vmem:[%s10346_s13 + $0x2f8] sm:$0xff]  ;;  %v4903_v33 = vld [vmem:[%s10346_s13 + $0x3c0] sm:$0xff] }
 0x4de   : > { %7320 = vmatprep.subr.bf16.mxu0 %v7319_v12  ;;  %v4802_v12 = vld [vmem:[%s10346_s13 + $0x98] sm:$0xff]  ;;  %v7413_v18 = vpack.c.bf16 %v4797_v46, %v4793_v7  ;;  %7354 = vmatpush1.bf16.msra.mxu1 %v7353_v15  ;;  %v7429_v7 = vpack.c.bf16 %v4829_v1, %v4825_v0  ;;  %v4833_v46 = vld [vmem:[%s10346_s13 + $0x190] sm:$0xff]  ;;  %v4875_v0 = vld [vmem:[%s10346_s13 + $0x2e0] sm:$0xff] }
 0x4e1   : > { %7322 = vmatpush1.bf16.msra.mxu0 %v7321_v16  ;;  %v4812_v16 = vld [vmem:[%s10346_s13 + $0xe8] sm:$0xff] }
 0x4e2   : > { %7324 = vmatprep.subr.bf16.mxu0 %v7323_v17  ;;  %v7355_v17 = vpack.c.bf16 %v4812_v16, %v4808_v39  ;;  %v7375_v39 = vpack.c.bf16 %v4852_v10, %v4848_v11  ;;  %v4847_v16 = vld [vmem:[%s10346_s13 + $0x200] sm:$0xff]  ;;  %v4886_v10 = vld [vmem:[%s10346_s13 + $0x338] sm:$0xff] }
 0x4e4   : > { %7356 = vmatprep.subr.bf16.mxu1 %v7355_v17  ;;  %v4851_v17 = vld [vmem:[%s10346_s13 + $0x220] sm:$0xff] }
 0x4e5   : > { %7326 = vmatpush1.bf16.msra.mxu0 %v7325_v20  ;;  %v7415_v20 = vpack.c.bf16 %v4806_v14, %v4802_v12  ;;  %v4837_v12 = vld [vmem:[%s10346_s13 + $0x1b0] sm:$0xff]  ;;  %v4846_v14 = vld [vmem:[%s10346_s13 + $0x1f8] sm:$0xff] }
 0x4e6   : > { %7328 = vmatprep.subr.bf16.mxu0 %v7327_v21  ;;  %v4801_v21 = vld [vmem:[%s10346_s13 + $0x90] sm:$0xff] }
 0x4e7   : > { %v7417_v28 = vpack.c.bf16 %v4805_v52, %v4801_v21  ;;  %v4854_v21 = vld [vmem:[%s10346_s13 + $0x238] sm:$0xff]  ;;  %v7377_v52 = vpack.c.bf16 %v4851_v17, %v4847_v16  ;;  %v4888_v16 = vld [vmem:[%s10346_s13 + $0x348] sm:$0xff] }
 0x4e8   : > { %v4892_v17 = vld [vmem:[%s10346_s13 + $0x368] sm:$0xff] }
 0x4e9   : > { %7330 = vmatpush1.bf16.msra.mxu0 %v7329_v26  ;;  %v7357_v26 = vpack.c.bf16 %v4811_v59, %v4807_v44  ;;  %v7433_v44 = vpack.c.bf16 %v4837_v12, %v4833_v46  ;;  %v7435_v59 = vpack.c.bf16 %v4846_v14, %v4842_v38  ;;  %v4883_v46 = vld [vmem:[%s10346_s13 + $0x320] sm:$0xff]  ;;  %v4881_v14 = vld [vmem:[%s10346_s13 + $0x310] sm:$0xff] }
 0x4ea   : > { %7332 = vmatprep.subr.bf16.mxu0 %v7331_v25  ;;  %v7359_v25 = vpack.c.bf16 %v4820_v22, %v4816_v19  ;;  %v4845_v19 = vld [vmem:[%s10346_s13 + $0x1f0] sm:$0xff] }
 0x4eb   : > { %7358 = vmatpush1.bf16.msra.mxu1 %v7357_v26  ;;  %v4853_v26 = vld [vmem:[%s10346_s13 + $0x230] sm:$0xff] }
 0x4ec   : > { %7360 = vmatprep.subr.bf16.mxu1 %v7359_v25 }
 0x4ed   : > { %7334 = vmatpush1.bf16.msra.mxu0 %v7333_v30  ;;  %v4828_v30 = vld [vmem:[%s10346_s13 + $0x168] sm:$0xff] }
 0x4ee   : > { %7336 = vmatprep.subr.bf16.mxu0 %v7335_v31  ;;  %v7419_v31 = vpack.c.bf16 %v4814_v24, %v4810_v23  ;;  %v4849_v24 = vld [vmem:[%s10346_s13 + $0x210] sm:$0xff] }
 0x4ef   : > { %v7441_v25 = vpack.c.bf16 %v4853_v26, %v4849_v24  ;;  %v4896_v24 = vld [vmem:[%s10346_s13 + $0x388] sm:$0xff] }
 0x4f1   : > { %7338 = vmatpush1.bf16.msra.mxu0 %v7337_v40  ;;  %v7361_v40 = vpack.c.bf16 %v4819_v48, %v4815_v27  ;;  %v4856_v27 = vld [vmem:[%s10346_s13 + $0x248] sm:$0xff] }
 0x4f2   : > { %7340 = vmatprep.subr.bf16.mxu0 %v7339_v41  ;;  %v7363_v41 = vpack.c.bf16 %v4828_v30, %v4824_v29  ;;  %v4860_v48 = vld [vmem:[%s10346_s13 + $0x268] sm:$0xff]  ;;  %v4862_v30 = vld [vmem:[%s10346_s13 + $0x278] sm:$0xff] }
 0x4f3   : > { %7362 = vmatpush1.bf16.msra.mxu1 %v7361_v40  ;;  %v7379_v29 = vpack.c.bf16 %v4860_v48, %v4856_v27  ;;  %v4861_v40 = vld [vmem:[%s10346_s13 + $0x270] sm:$0xff]  ;;  %v4898_v27 = vld [vmem:[%s10346_s13 + $0x398] sm:$0xff] }
 0x4f4   : > { %7364 = vmatprep.subr.bf16.mxu1 %v7363_v41  ;;  %v7445_v41 = vpack.c.bf16 %v4861_v40, %v4857_v35  ;;  %v4902_v48 = vld [vmem:[%s10346_s13 + $0x3b8] sm:$0xff]  ;;  %v4904_v35 = vld [vmem:[%s10346_s13 + $0x3c8] sm:$0xff] }
 0x4f5   : > { %7342 = vmatpush1.bf16.msra.mxu0 %v7341_v55  ;;  %v4830_v55 = vld [vmem:[%s10346_s13 + $0x178] sm:$0xff]  ;;  %v4908_v40 = vld [vmem:[%s10346_s13 + $0x3e8] sm:$0xff] }
 0x4f6   : > { %7408 = vmatprep.subr.bf16.mxu0 %v7407_v61  ;;  %v4835_v61 = vld [vmem:[%s10346_s13 + $0x1a0] sm:$0xff]  ;;  %v7427_v47 = vpack.c.bf16 %v4830_v55, %v4826_v45  ;;  %v4865_v45 = vld [vmem:[%s10346_s13 + $0x290] sm:$0xff] }
 0x4f7   : > { %7366 = vmatpush1.bf16.msra.mxu1 %v7365_v58  ;;  %v7369_v4 = vpack.c.bf16 %v4835_v61, %v4831_v60  ;;  %v4869_v58 = vld [vmem:[%s10346_s13 + $0x2b0] sm:$0xff]  ;;  %v4872_v60 = vld [vmem:[%s10346_s13 + $0x2c8] sm:$0xff] }
 0x4f8   : > { %4725 = vmatmul.mubr.f32.vlgmr.msra.gmra.mrb[44].mxu0 %v4626_v43  ;;  %7368 = vmatprep.subr.bf16.mxu1 %v7367_v37  ;;  %v4839_v43 = vld [vmem:[%s10346_s13 + $0x1c0] sm:$0xff]  ;;  %v7449_v37 = vpack.c.bf16 %v4869_v58, %v4865_v45  ;;  %v4876_v61 = vld [vmem:[%s10346_s13 + $0x2e8] sm:$0xff]  ;;  %v3765_v45 = vand.u32 1, %v8716_v49 }
 0x4f9   : > { %7410 = vmatpush1.bf16.msra.mxu0 %v7409_v6  ;;  %v4843_v6 = vld [vmem:[%s10346_s13 + $0x1e0] sm:$0xff]  ;;  %v7387_v63 = vpack.c.bf16 %v4876_v61, %v4872_v60  ;;  %v5091_v60 = vld [vmem:[#allocation14 + $0x8] sm:$0xff]  ;;  %v5093_v61 = vld [vmem:[#allocation14 + $0x18] sm:$0xff] }
 0x4fa   : > { %7412 = vmatprep.subr.bf16.mxu0 %v7411_v57  ;;  %v7431_v57 = vpack.c.bf16 %v4838_v3, %v4834_v2  ;;  %v7373_v15 = vpack.c.bf16 %v4843_v6, %v4839_v43  ;;  %v4873_v3 = vld [vmem:[%s10346_s13 + $0x2d0] sm:$0xff]  ;;  %v4880_v43 = vld [vmem:[%s10346_s13 + $0x308] sm:$0xff]  ;;  %vm3773_vm13 = vcmp.ne.s32.totalorder %v3765_v45, 0  ;;  %vm3776_vm14 = vcmp.ne.s32.totalorder %v3765_v45, 1 }
 0x4fb   : > { %7370 = vmatpush1.bf16.msra.mxu1 %v7369_v4  ;;  %v4877_v4 = vld [vmem:[%s10346_s13 + $0x2f0] sm:$0xff]  ;;  %v4884_v6 = vld [vmem:[%s10346_s13 + $0x328] sm:$0xff] }
 0x4fc   : > { %7372 = vmatprep.subr.bf16.mxu1 %v7371_v5  ;;  %v7453_v5 = vpack.c.bf16 %v4877_v4, %v4873_v3  ;;  %v7391_v11 = vpack.c.bf16 %v4884_v6, %v4880_v43  ;;  %v5840_v43 = vsel %vm3776_vm14, 1.0, %v8749_v9  ;;  %v4737_v6 = vld [vmem:[%s10344_s11] sm:$0x3] }
 0x4fd   : > { %7414 = vmatpush1.bf16.msra.mxu0 %v7413_v18  ;;  %v4841_v18 = vld [vmem:[%s10346_s13 + $0x1d0] sm:$0xff] }
 0x4fe   : > { %7416 = vmatprep.subr.bf16.mxu0 %v7415_v20  ;;  %v4850_v20 = vld [vmem:[%s10346_s13 + $0x218] sm:$0xff]  ;;  %v7437_v22 = vpack.c.bf16 %v4845_v19, %v4841_v18  ;;  %v4887_v19 = vld [vmem:[%s10346_s13 + $0x340] sm:$0xff] }
 0x4ff   : > { %7374 = vmatpush1.bf16.msra.mxu1 %v7373_v15  ;;  %v7439_v23 = vpack.c.bf16 %v4854_v21, %v4850_v20  ;;  %v4885_v15 = vld [vmem:[%s10346_s13 + $0x330] sm:$0xff]  ;;  %v4894_v18 = vld [vmem:[%s10346_s13 + $0x378] sm:$0xff]  ;;  %v4891_v20 = vld [vmem:[%s10346_s13 + $0x360] sm:$0xff] }
 0x500   : > { %7376 = vmatprep.subr.bf16.mxu1 %v7375_v39  ;;  %v7457_v39 = vpack.c.bf16 %v4885_v15, %v4881_v14 }
 0x501   : > { %7418 = vmatpush1.bf16.msra.mxu0 %v7417_v28  ;;  %v4858_v28 = vld [vmem:[%s10346_s13 + $0x258] sm:$0xff] }
 0x502   : > { %7420 = vmatprep.subr.bf16.mxu0 %v7419_v31  ;;  %v4855_v31 = vld [vmem:[%s10346_s13 + $0x240] sm:$0xff]  ;;  %v7443_v56 = vpack.c.bf16 %v4862_v30, %v4858_v28 }
 0x503   : > { %7378 = vmatpush1.bf16.msra.mxu1 %v7377_v52  ;;  %v7381_v34 = vpack.c.bf16 %v4859_v32, %v4855_v31  ;;  %v7397_v52 = vpack.c.bf16 %v4891_v20, %v4887_v19  ;;  %v4895_v30 = vld [vmem:[%s10346_s13 + $0x380] sm:$0xff]  ;;  %v4897_v32 = vld [vmem:[%s10346_s13 + $0x390] sm:$0xff] }
 0x504   : > { %7380 = vmatprep.subr.bf16.mxu1 %v7379_v29  ;;  %v7463_v29 = vpack.c.bf16 %v4902_v48, %v4898_v27  ;;  %v4899_v31 = vld [vmem:[%s10346_s13 + $0x3a0] sm:$0xff] }
 0x505   : > { %7422 = vmatpush1.bf16.msra.mxu0 %v7421_v13  ;;  %v7383_v13 = vpack.c.bf16 %v4868_v42, %v4864_v8  ;;  %v7403_v8 = vpack.c.bf16 %v4908_v40, %v4904_v35  ;;  %v4906_v42 = vld [vmem:[%s10346_s13 + $0x3d8] sm:$0xff]  ;;  %v5090_v48 = vld [vmem:[#allocation14] sm:$0xff] }
 0x506   : > { %7424 = vmatprep.subr.bf16.mxu0 %v7423_v50  ;;  %v4863_v50 = vld [vmem:[%s10346_s13 + $0x280] sm:$0xff] }
 0x507   : > { %7382 = vmatpush1.bf16.msra.mxu1 %v7381_v34  ;;  %v7385_v55 = vpack.c.bf16 %v4867_v54, %v4863_v50  ;;  %v4901_v34 = vld [vmem:[%s10346_s13 + $0x3b0] sm:$0xff]  ;;  %v4907_v50 = vld [vmem:[%s10346_s13 + $0x3e0] sm:$0xff] }
 0x508   : > { %7384 = vmatprep.subr.bf16.mxu1 %v7383_v13  ;;  %v4910_v13 = vld [vmem:[%s10346_s13 + $0x3f8] sm:$0xff]  ;;  %v4909_v54 = vld [vmem:[%s10346_s13 + $0x3f0] sm:$0xff]  ;;  %v5094_v40 = vld [vmem:[#allocation14 + $0x20] sm:$0xff] }
 0x509   : > { %7426 = vmatpush1.bf16.msra.mxu0 %v7425_v62  ;;  %v4874_v62 = vld [vmem:[%s10346_s13 + $0x2d8] sm:$0xff]  ;;  %v7467_v36 = vpack.c.bf16 %v4910_v13, %v4906_v42 }
 0x50a   : > { %7428 = vmatprep.subr.bf16.mxu0 %v7427_v47  ;;  %v4871_v47 = vld [vmem:[%s10346_s13 + $0x2c0] sm:$0xff]  ;;  %v7451_v1 = vpack.c.bf16 %v4878_v53, %v4874_v62  ;;  %v7471_v62 = vpack.c.bf16 %v5093_v61, %v5091_v60  ;;  %v5101_v42 = vld [vmem:[#allocation14 + $0x58] sm:$0xff]  ;;  %v5107_v60 = vld [vmem:[#allocation14 + $0x88] sm:$0xff] }
 0x50b   : > { %7386 = vmatpush1.bf16.msra.mxu1 %v7385_v55  ;;  %v7389_v2 = vpack.c.bf16 %v4875_v0, %v4871_v47  ;;  %v7405_v55 = vpack.c.bf16 %v4907_v50, %v4903_v33  ;;  %v5100_v50 = vld [vmem:[#allocation14 + $0x50] sm:$0xff]  ;;  %v5109_v61 = vld [vmem:[#allocation14 + $0x98] sm:$0xff] }
 0x50c   : > { %7388 = vmatprep.subr.bf16.mxu1 %v7387_v63 }
 0x50d   : > { %7430 = vmatpush1.bf16.msra.mxu0 %v7429_v7  ;;  %v4882_v7 = vld [vmem:[%s10346_s13 + $0x318] sm:$0xff] }
 0x50e   : > { %7432 = vmatprep.subr.bf16.mxu0 %v7431_v57  ;;  %v4879_v57 = vld [vmem:[%s10346_s13 + $0x300] sm:$0xff]  ;;  %v7455_v12 = vpack.c.bf16 %v4886_v10, %v4882_v7  ;;  %v10199_v7 = vsub.s32 1, %v8716_v49 }
 0x50f   : > { %7390 = vmatpush1.bf16.msra.mxu1 %v7389_v2  ;;  %v7393_v38 = vpack.c.bf16 %v4883_v46, %v4879_v57  ;;  %v4751_v10 = vld [vmem:[%s10345_s12] sm:$0x3] }
 0x510   : > { %7392 = vmatprep.subr.bf16.mxu1 %v7391_v11  ;;  %v4746_v14 = vrot.slane %v4737_v6, %v10199_v7 }
 0x511   : > { %7434 = vmatpush1.bf16.msra.mxu0 %v7433_v44  ;;  %v4890_v44 = vld [vmem:[%s10346_s13 + $0x358] sm:$0xff] }
 0x512   : > { %7436 = vmatprep.subr.bf16.mxu0 %v7435_v59  ;;  %v7395_v59 = vpack.c.bf16 %v4892_v17, %v4888_v16  ;;  %v7459_v21 = vpack.c.bf16 %v4894_v18, %v4890_v44  ;;  %v4760_v17 = vrot.slane %v4751_v10, %v10199_v7 }
 0x513   : > { %7394 = vmatpush1.bf16.msra.mxu1 %v7393_v38 }
 0x514   : > { %7396 = vmatprep.subr.bf16.mxu1 %v7395_v59 }
 0x515   : > { %7438 = vmatpush1.bf16.msra.mxu0 %v7437_v22  ;;  %v4889_v22 = vld [vmem:[%s10346_s13 + $0x350] sm:$0xff] }
 0x516   : > { %7440 = vmatprep.subr.bf16.mxu0 %v7439_v23  ;;  %v4893_v23 = vld [vmem:[%s10346_s13 + $0x370] sm:$0xff] }
 0x517   : > { %v7461_v26 = vpack.c.bf16 %v4893_v23, %v4889_v22  ;;  %7398 = vmatpush1.bf16.msra.mxu1 %v7397_v52 }
 0x519   : > { %7442 = vmatpush1.bf16.msra.mxu0 %v7441_v25  ;;  %v4900_v25 = vld [vmem:[%s10346_s13 + $0x3a8] sm:$0xff] }
 0x51a   : > { %7444 = vmatprep.subr.bf16.mxu0 %v7443_v56  ;;  %v7399_v28 = vpack.c.bf16 %v4900_v25, %v4896_v24  ;;  %v7401_v56 = vpack.c.bf16 %v4899_v31, %v4895_v30  ;;  %v5095_v30 = vld [vmem:[#allocation14 + $0x28] sm:$0xff]  ;;  %v5097_v31 = vld [vmem:[#allocation14 + $0x38] sm:$0xff] }
 0x51b   : > { %v7475_v35 = vpack.c.bf16 %v5097_v31, %v5095_v30  ;;  %v5130_v30 = vld [vmem:[#allocation14 + $0x140] sm:$0xff]  ;;  %v5132_v31 = vld [vmem:[#allocation14 + $0x150] sm:$0xff] }
 0x51c   : > { %7400 = vmatprep.subr.bf16.mxu1 %v7399_v28  ;;  %v5092_v28 = vld [vmem:[#allocation14 + $0x10] sm:$0xff] }
 0x51d   : > { %7446 = vmatpush1.bf16.msra.mxu0 %v7445_v41  ;;  %v7465_v41 = vpack.c.bf16 %v4901_v34, %v4897_v32  ;;  %7402 = vmatpush1.bf16.msra.mxu1 %v7401_v56  ;;  %v7473_v34 = vpack.c.bf16 %v5092_v28, %v5090_v48  ;;  %v5133_v48 = vld [vmem:[#allocation14 + $0x158] sm:$0xff] }
 0x51e   : > { %7448 = vmatprep.subr.bf16.mxu0 %v7447_v51  ;;  %v4905_v51 = vld [vmem:[%s10346_s13 + $0x3d0] sm:$0xff]  ;;  %7404 = vmatprep.subr.bf16.mxu1 %v7403_v8  ;;  %v5099_v8 = vld [vmem:[#allocation14 + $0x48] sm:$0xff] }
 0x51f   : > { %v7469_v58 = vpack.c.bf16 %v4909_v54, %v4905_v51  ;;  %v7479_v33 = vpack.c.bf16 %v5101_v42, %v5099_v8  ;;  %v5103_v51 = vld [vmem:[#allocation14 + $0x68] sm:$0xff]  ;;  %v5105_v54 = vld [vmem:[#allocation14 + $0x78] sm:$0xff] }
 0x520   : > { %v5139_v8 = vld [vmem:[#allocation14 + $0x188] sm:$0xff]  ;;  %v5141_v42 = vld [vmem:[#allocation14 + $0x198] sm:$0xff] }
 0x521   : > { %7450 = vmatpush1.bf16.msra.mxu0 %v7449_v37  ;;  %7406 = vmatpush1.bf16.msra.mxu1 %v7405_v55  ;;  %v5839_v37 = vsel %vm3773_vm13, 1.0, %v8749_v9  ;;  %v7483_v55 = vpack.c.bf16 %v5105_v54, %v5103_v51  ;;  %v5143_v51 = vld [vmem:[#allocation14 + $0x1a8] sm:$0xff]  ;;  %v5145_v54 = vld [vmem:[#allocation14 + $0x1b8] sm:$0xff] }
 0x522   : > { %7452 = vmatprep.subr.bf16.mxu0 %v7451_v1  ;;  %7472 = vmatprep.subr.bf16.mxu1 %v7471_v62 }
 0x525   : > { %7454 = vmatpush1.bf16.msra.mxu0 %v7453_v5  ;;  %v10192_v5 = vsub.s32 0, %v8716_v49 }
 0x526   : > { %7456 = vmatprep.subr.bf16.mxu0 %v7455_v12 }
 0x527   : > { %v4742_v46 = vrot.slane %v4737_v6, %v10192_v5  ;;  %v5115_v6 = vld [vmem:[#allocation14 + $0xc8] sm:$0xff] }
 0x529   : > { %7458 = vmatpush1.bf16.msra.mxu0 %v7457_v39  ;;  %v4756_v39 = vrot.slane %v4751_v10, %v10192_v5 }
 0x52a   : > { %7460 = vmatprep.subr.bf16.mxu0 %v7459_v21 }
 0x52d   : > { %7462 = vmatpush1.bf16.msra.mxu0 %v7461_v26 }
 0x52e   : > { %7464 = vmatprep.subr.bf16.mxu0 %v7463_v29 }
 0x531   : > { %7466 = vmatpush1.bf16.msra.mxu0 %v7465_v41  ;;  %v5096_v41 = vld [vmem:[#allocation14 + $0x30] sm:$0xff] }
 0x532   : > { %7468 = vmatprep.subr.bf16.mxu0 %v7467_v36  ;;  %v7477_v13 = vpack.c.bf16 %v5096_v41, %v5094_v40  ;;  %v5098_v36 = vld [vmem:[#allocation14 + $0x40] sm:$0xff]  ;;  %v5136_v41 = vld [vmem:[#allocation14 + $0x170] sm:$0xff] }
 0x533   : > { %v7481_v45 = vpack.c.bf16 %v5100_v50, %v5098_v36  ;;  %v5134_v40 = vld [vmem:[#allocation14 + $0x160] sm:$0xff]  ;;  %v5140_v50 = vld [vmem:[#allocation14 + $0x190] sm:$0xff] }
 0x534   : > { %v5138_v36 = vld [vmem:[#allocation14 + $0x180] sm:$0xff] }
 0x535   : > { %7470 = vmatpush1.bf16.msra.mxu0 %v7469_v58  ;;  %v5102_v58 = vld [vmem:[#allocation14 + $0x60] sm:$0xff] }
 0x56b   : > { %v4088_v63 = vpop.f32.mrb[42].mxu0 }
 0x56c   : > { %v4409_v53 = vpop.f32.mrb[20].mxu1  ;;  %v4095_v47 = vmul.f32 %v5839_v37, %v4088_v63  ;;  %v4090_v0 = vpop.f32.mrb[43].mxu0  ;;  %v7487_v63 = vpack.c.bf16 %v5109_v61, %v5107_v60  ;;  %v5147_v60 = vld [vmem:[#allocation14 + $0x1c8] sm:$0xff]  ;;  %v5149_v61 = vld [vmem:[#allocation14 + $0x1d8] sm:$0xff] }
 0x56d   : > { %v4411_v1 = vpop.f32.mrb[21].mxu1  ;;  %v4096_v2 = vmul.f32 %v5839_v37, %v4090_v0  ;;  %v5104_v37 = vld [vmem:[#allocation14 + $0x70] sm:$0xff]  ;;  %v5111_v0 = vld [vmem:[#allocation14 + $0xa8] sm:$0xff] }
 0x56e   : > { %v4416_v3 = vadd.f32 %v4409_v53, %v4095_v47  ;;  %v7485_v62 = vpack.c.bf16 %v5104_v37, %v5102_v58  ;;  %v5106_v53 = vld [vmem:[#allocation14 + $0x80] sm:$0xff]  ;;  %v5108_v47 = vld [vmem:[#allocation14 + $0x90] sm:$0xff] }
 0x56f   : > { %v4417_v4 = vadd.f32 %v4411_v1, %v4096_v2  ;;  %v5113_v1 = vld [vmem:[#allocation14 + $0xb8] sm:$0xff]  ;;  %v7489_v2 = vpack.c.bf16 %v5108_v47, %v5106_v53  ;;  %v5142_v58 = vld [vmem:[#allocation14 + $0x1a0] sm:$0xff]  ;;  %v5144_v37 = vld [vmem:[#allocation14 + $0x1b0] sm:$0xff] }
 0x570   : > { %v5146_v53 = vld [vmem:[#allocation14 + $0x1c0] sm:$0xff]  ;;  %v5148_v47 = vld [vmem:[#allocation14 + $0x1d0] sm:$0xff] }
 0x5cb   : > { %v4726_v11 = vpop.f32.mrb[44].mxu0 }
 0x5cc   : > { %v4733_v57 = vmul.f32 %v5840_v43, %v4726_v11  ;;  %v4728_v12 = vpop.f32.mrb[45].mxu0  ;;  %v5117_v11 = vld [vmem:[#allocation14 + $0xd8] sm:$0xff] }
 0x5cd   : > { %v4734_v38 = vmul.f32 %v5840_v43, %v4728_v12  ;;  %v5112_v43 = vld [vmem:[#allocation14 + $0xb0] sm:$0xff] }
 0x5ce   : > { %v4735_v15 = vadd.f32 %v4733_v57, %v4416_v3  ;;  %v7491_v3 = vpack.c.bf16 %v5113_v1, %v5111_v0  ;;  %v7495_v57 = vpack.c.bf16 %v5117_v11, %v5115_v6  ;;  %v5116_v12 = vld [vmem:[#allocation14 + $0xd0] sm:$0xff]  ;;  %v7529_v0 = vpack.c.bf16 %v5148_v47, %v5146_v53  ;;  %v5151_v1 = vld [vmem:[#allocation14 + $0x1e8] sm:$0xff]  ;;  %v5154_v47 = vld [vmem:[#allocation14 + $0x200] sm:$0xff] }
 0x5cf   : > { %v4736_v16 = vadd.f32 %v4734_v38, %v4417_v4  ;;  %v5110_v4 = vld [vmem:[#allocation14 + $0xa0] sm:$0xff]  ;;  %v5119_v38 = vld [vmem:[#allocation14 + $0xe8] sm:$0xff] }
 0x5d0   : > { %v4749_v44 = vmul.f32 %v4742_v46, %v4735_v15  ;;  %v7493_v10 = vpack.c.bf16 %v5112_v43, %v5110_v4  ;;  %v5114_v46 = vld [vmem:[#allocation14 + $0xc0] sm:$0xff]  ;;  %v5152_v43 = vld [vmem:[#allocation14 + $0x1f0] sm:$0xff]  ;;  %v5155_v11 = vld [vmem:[#allocation14 + $0x208] sm:$0xff] }
 0x5d1   : > { %v4750_v59 = vmul.f32 %v4746_v14, %v4736_v16  ;;  %v5121_v14 = vld [vmem:[#allocation14 + $0xf8] sm:$0xff]  ;;  %v7497_v15 = vpack.c.bf16 %v5116_v12, %v5114_v46  ;;  %v5118_v16 = vld [vmem:[#allocation14 + $0xe0] sm:$0xff]  ;;  %v5391_v12 = vld [vmem:[#allocation15 + $0x88] sm:$0xff] }
 0x5d2   : > { %v4763_v18 = vadd.f32 %v4756_v39, %v4749_v44  ;;  %v7499_v39 = vpack.c.bf16 %v5121_v14, %v5119_v38  ;;  %v5123_v44 = vld [vmem:[#allocation14 + $0x108] sm:$0xff]  ;;  %v5150_v4 = vld [vmem:[#allocation14 + $0x1e0] sm:$0xff] }
 0x5d3   : > { %v4764_v19 = vadd.f32 %v4760_v17, %v4750_v59  ;;  %v5120_v17 = vld [vmem:[#allocation14 + $0xf0] sm:$0xff]  ;;  %v5125_v59 = vld [vmem:[#allocation14 + $0x118] sm:$0xff]  ;;  %v7533_v6 = vpack.c.bf16 %v5152_v43, %v5150_v4  ;;  %v5390_v46 = vld [vmem:[#allocation15 + $0x80] sm:$0xff] }
 0x5d4   : > { %v4765_v20 = vmax.f32 %v4763_v18, 0.0  ;;  %v7501_v18 = vpack.c.bf16 %v5120_v17, %v5118_v16  ;;  %v5374_v38 = vld [vmem:[#allocation15] sm:$0xff]  ;;  %v7599_v14 = vpack.c.bf16 %v5391_v12, %v5390_v46  ;;  %v5393_v16 = vld [vmem:[#allocation15 + $0x98] sm:$0xff]  ;;  %v5160_v46 = vld [vmem:[#allocation14 + $0x230] sm:$0xff] }
 0x5d5   : > { %v4766_v21 = vmax.f32 %v4764_v19, 0.0  ;;  %v7503_v19 = vpack.c.bf16 %v5125_v59, %v5123_v44  ;;  %v5376_v59 = vld [vmem:[#allocation15 + $0x10] sm:$0xff]  ;;  %v5161_v4 = vld [vmem:[#allocation14 + $0x238] sm:$0xff] }
 0x5d6   : > { %7600 = vmatprep.subr.bf16.mxu0 %v7599_v14  ;;  %v5165_v14 = vld [vmem:[#allocation14 + $0x258] sm:$0xff] }
 0x5d7   : > { %v4769_v52 = vcombine.low %v4765_v20, %v4766_v21  ;;  %v5122_v20 = vld [vmem:[#allocation14 + $0x100] sm:$0xff]  ;;  %v5124_v21 = vld [vmem:[#allocation14 + $0x110] sm:$0xff] }
 0x5d9   : > { %4771 = vst [vmem:[#allocation8] sm:$0xff] %v4769_v52  ;;  %v5127_v52 = vld [vmem:[#allocation14 + $0x128] sm:$0xff] }
 0x5e0   : > { %v4772_v22 = vld [vmem:[#allocation8] ss:$4 sm:$0x3]  ;;  %v4774_v23 = vld [vmem:[#allocation8 + $0x1] ss:$4 sm:$0x3] }
 0x5e1   : > { %v4775_v24 = vmax.f32 %v4772_v22, %v4774_v23  ;;  %v4777_v26 = vld [vmem:[#allocation8 + $0x2] ss:$4 sm:$0x3]  ;;  %v4779_v25 = vld [vmem:[#allocation8 + $0x3] ss:$4 sm:$0x3]  ;;  %v7505_v23 = vpack.c.bf16 %v5124_v21, %v5122_v20 }
 0x5e2   : > { %v4780_v27 = vmax.f32 %v4777_v26, %v4779_v25  ;;  %v5129_v22 = vld [vmem:[#allocation14 + $0x138] sm:$0xff]  ;;  %v5126_v26 = vld [vmem:[#allocation14 + $0x120] sm:$0xff]  ;;  %v5128_v25 = vld [vmem:[#allocation14 + $0x130] sm:$0xff] }
 0x5e3   : > { %v7509_v28 = vpack.c.bf16 %v5128_v25, %v5126_v26  ;;  %v5395_v20 = vld [vmem:[#allocation15 + $0xa8] sm:$0xff]  ;;  %v5397_v26 = vld [vmem:[#allocation15 + $0xb8] sm:$0xff] }
 0x5e4   : > { %v4781_v29 = vmax.f32 %v4775_v24, %v4780_v27  ;;  %v7507_v24 = vpack.c.bf16 %v5129_v22, %v5127_v52  ;;  %v5131_v27 = vld [vmem:[#allocation14 + $0x148] sm:$0xff]  ;;  %v5378_v22 = vld [vmem:[#allocation15 + $0x20] sm:$0xff] }
 0x5e6   : > { %v4920_v32 = vrot.slane %v4781_v29, %v10199_v7  ;;  %v4916_v56 = vrot.slane %v4781_v29, %v10192_v5  ;;  %v7511_v29 = vpack.c.bf16 %v5133_v48, %v5131_v27  ;;  %v5380_v48 = vld [vmem:[#allocation15 + $0x30] sm:$0xff] }
 0x5e8   : > { %5008 = vmatprep.mubr.f32.mxu1 %v4920_v32  ;;  %5079 = vmatprep.mubr.f32.mxu0 %v4920_v32  ;;  %v5135_v32 = vld [vmem:[#allocation14 + $0x168] sm:$0xff] }
 0x5e9   : > { %5009 = vmatmul.mubr.f32.vlgmr.msra.gmra.mrb[22].mxu1 %v4916_v56  ;;  %5080 = vmatmul.mubr.f32.vlgmr.msra.gmra.mrb[46].mxu0 %v4916_v56  ;;  %v5137_v56 = vld [vmem:[#allocation14 + $0x178] sm:$0xff] }
 0x5ea   : > { %7474 = vmatpush1.bf16.msra.mxu1 %v7473_v34  ;;  %v7513_v34 = vpack.c.bf16 %v5132_v31, %v5130_v30  ;;  %v5399_v30 = vld [vmem:[#allocation15 + $0xc8] sm:$0xff] }
 0x5eb   : > { %7476 = vmatprep.subr.bf16.mxu1 %v7475_v35  ;;  %v7515_v35 = vpack.c.bf16 %v5137_v56, %v5135_v32  ;;  %v5382_v56 = vld [vmem:[#allocation15 + $0x40] sm:$0xff] }
 0x5ee   : > { %7478 = vmatpush1.bf16.msra.mxu1 %v7477_v13  ;;  %v7517_v13 = vpack.c.bf16 %v5136_v41, %v5134_v40  ;;  %v5401_v40 = vld [vmem:[#allocation15 + $0xd8] sm:$0xff] }
 0x5ef   : > { %7480 = vmatprep.subr.bf16.mxu1 %v7479_v33  ;;  %v7519_v33 = vpack.c.bf16 %v5141_v42, %v5139_v8  ;;  %v5384_v42 = vld [vmem:[#allocation15 + $0x50] sm:$0xff] }
 0x5f2   : > { %7482 = vmatpush1.bf16.msra.mxu1 %v7481_v45  ;;  %v7521_v45 = vpack.c.bf16 %v5140_v50, %v5138_v36  ;;  %v5403_v36 = vld [vmem:[#allocation15 + $0xe8] sm:$0xff] }
 0x5f3   : > { %7484 = vmatprep.subr.bf16.mxu1 %v7483_v55  ;;  %v7523_v55 = vpack.c.bf16 %v5145_v54, %v5143_v51  ;;  %v10213_v54 = vld [vmem:[%s10347_s14] sm:$0xf] }
 0x5f6   : > { %7486 = vmatpush1.bf16.msra.mxu1 %v7485_v62  ;;  %v7525_v62 = vpack.c.bf16 %v5144_v37, %v5142_v58  ;;  %v4931_v58 = vrot.slane %v10213_v54, %v10199_v7 }
 0x5f7   : > { %7488 = vmatprep.subr.bf16.mxu1 %v7487_v63  ;;  %v7527_v63 = vpack.c.bf16 %v5149_v61, %v5147_v60 }
 0x5fa   : > { %7490 = vmatpush1.bf16.msra.mxu1 %v7489_v2  ;;  %v5153_v2 = vld [vmem:[#allocation14 + $0x1f8] sm:$0xff] }
 0x5fb   : > { %7492 = vmatprep.subr.bf16.mxu1 %v7491_v3  ;;  %v7531_v3 = vpack.c.bf16 %v5153_v2, %v5151_v1 }
 0x5fe   : > { %7494 = vmatpush1.bf16.msra.mxu1 %v7493_v10  ;;  %v5157_v10 = vld [vmem:[#allocation14 + $0x218] sm:$0xff] }
 0x5ff   : > { %7496 = vmatprep.subr.bf16.mxu1 %v7495_v57  ;;  %v7535_v57 = vpack.c.bf16 %v5157_v10, %v5155_v11 }
 0x602   : > { %7498 = vmatpush1.bf16.msra.mxu1 %v7497_v15  ;;  %v5375_v15 = vld [vmem:[#allocation15 + $0x8] sm:$0xff] }
 0x603   : > { %7500 = vmatprep.subr.bf16.mxu1 %v7499_v39  ;;  %v5392_v39 = vld [vmem:[#allocation15 + $0x90] sm:$0xff]  ;;  %v7601_v17 = vpack.c.bf16 %v5375_v15, %v5374_v38  ;;  %v5163_v38 = vld [vmem:[#allocation14 + $0x248] sm:$0xff] }
 0x604   : > { %v7603_v44 = vpack.c.bf16 %v5393_v16, %v5392_v39  ;;  %v7543_v39 = vpack.c.bf16 %v5165_v14, %v5163_v38  ;;  %v5162_v16 = vld [vmem:[#allocation14 + $0x240] sm:$0xff]  ;;  %v5200_v14 = vld [vmem:[#allocation14 + $0x370] sm:$0xff] }
 0x605   : > { %7602 = vmatpush3.bf16.msra.mxu0 %v7601_v17  ;;  %v5164_v17 = vld [vmem:[#allocation14 + $0x250] sm:$0xff]  ;;  %v5198_v38 = vld [vmem:[#allocation14 + $0x360] sm:$0xff] }
 0x606   : > { %7502 = vmatpush1.bf16.msra.mxu1 %v7501_v18  ;;  %v5377_v18 = vld [vmem:[#allocation15 + $0x18] sm:$0xff]  ;;  %7604 = vmatprep.subr.bf16.mxu0 %v7603_v44  ;;  %v5167_v44 = vld [vmem:[#allocation14 + $0x268] sm:$0xff] }
 0x607   : > { %7504 = vmatprep.subr.bf16.mxu1 %v7503_v19  ;;  %v5394_v19 = vld [vmem:[#allocation15 + $0xa0] sm:$0xff]  ;;  %v7605_v21 = vpack.c.bf16 %v5377_v18, %v5376_v59  ;;  %v5169_v59 = vld [vmem:[#allocation14 + $0x278] sm:$0xff]  ;;  %v7545_v18 = vpack.c.bf16 %v5164_v17, %v5162_v16  ;;  %v7581_v16 = vpack.c.bf16 %v5200_v14, %v5198_v38  ;;  %v5487_v38 = vld [vmem:[%s10443_s1 + $0x48] sm:$0xff] }
 0x608   : > { %v7607_v52 = vpack.c.bf16 %v5395_v20, %v5394_v19  ;;  %v7547_v19 = vpack.c.bf16 %v5169_v59, %v5167_v44  ;;  %v5166_v20 = vld [vmem:[#allocation14 + $0x260] sm:$0xff]  ;;  %v5204_v59 = vld [vmem:[#allocation14 + $0x390] sm:$0xff] }
 0x609   : > { %7606 = vmatpush3.bf16.msra.mxu0 %v7605_v21  ;;  %v5168_v21 = vld [vmem:[#allocation14 + $0x270] sm:$0xff]  ;;  %v5202_v44 = vld [vmem:[#allocation14 + $0x380] sm:$0xff] }
 0x60a   : > { %7506 = vmatpush1.bf16.msra.mxu1 %v7505_v23  ;;  %v5379_v23 = vld [vmem:[#allocation15 + $0x28] sm:$0xff]  ;;  %7608 = vmatprep.subr.bf16.mxu0 %v7607_v52 }
 0x60b   : > { %7508 = vmatprep.subr.bf16.mxu1 %v7507_v24  ;;  %v5396_v24 = vld [vmem:[#allocation15 + $0xb0] sm:$0xff]  ;;  %v7609_v25 = vpack.c.bf16 %v5379_v23, %v5378_v22  ;;  %v5171_v52 = vld [vmem:[#allocation14 + $0x288] sm:$0xff]  ;;  %v5173_v22 = vld [vmem:[#allocation14 + $0x298] sm:$0xff]  ;;  %v7549_v23 = vpack.c.bf16 %v5168_v21, %v5166_v20  ;;  %v7585_v20 = vpack.c.bf16 %v5204_v59, %v5202_v44 }
 0x60c   : > { %v7611_v27 = vpack.c.bf16 %v5397_v26, %v5396_v24  ;;  %v7551_v24 = vpack.c.bf16 %v5173_v22, %v5171_v52  ;;  %v5170_v26 = vld [vmem:[#allocation14 + $0x280] sm:$0xff]  ;;  %v5208_v22 = vld [vmem:[#allocation14 + $0x3b0] sm:$0xff]  ;;  %v5491_v44 = vld [vmem:[%s10443_s1 + $0x68] sm:$0xff] }
 0x60d   : > { %7610 = vmatpush3.bf16.msra.mxu0 %v7609_v25  ;;  %v5172_v25 = vld [vmem:[#allocation14 + $0x290] sm:$0xff]  ;;  %v5206_v52 = vld [vmem:[#allocation14 + $0x3a0] sm:$0xff] }
 0x60e   : > { %7510 = vmatpush1.bf16.msra.mxu1 %v7509_v28  ;;  %v5381_v28 = vld [vmem:[#allocation15 + $0x38] sm:$0xff]  ;;  %7612 = vmatprep.subr.bf16.mxu0 %v7611_v27  ;;  %v5175_v27 = vld [vmem:[#allocation14 + $0x2a8] sm:$0xff] }
 0x60f   : > { %7512 = vmatprep.subr.bf16.mxu1 %v7511_v29  ;;  %v5398_v29 = vld [vmem:[#allocation15 + $0xc0] sm:$0xff]  ;;  %v7613_v31 = vpack.c.bf16 %v5381_v28, %v5380_v48  ;;  %v5177_v48 = vld [vmem:[#allocation14 + $0x2b8] sm:$0xff]  ;;  %v7553_v28 = vpack.c.bf16 %v5172_v25, %v5170_v26  ;;  %v7589_v26 = vpack.c.bf16 %v5208_v22, %v5206_v52  ;;  %v4934_v25 = vsub.s32 2, %v8716_v49 }
 0x610   : > { %v7615_v32 = vpack.c.bf16 %v5399_v30, %v5398_v29  ;;  %v7555_v29 = vpack.c.bf16 %v5177_v48, %v5175_v27  ;;  %v5174_v30 = vld [vmem:[#allocation14 + $0x2a0] sm:$0xff] }
 0x611   : > { %7614 = vmatpush3.bf16.msra.mxu0 %v7613_v31  ;;  %v5176_v31 = vld [vmem:[#allocation14 + $0x2b0] sm:$0xff]  ;;  %v5210_v48 = vld [vmem:[#allocation14 + $0x3c0] sm:$0xff] }
 0x612   : > { %7514 = vmatpush1.bf16.msra.mxu1 %v7513_v34  ;;  %v5383_v34 = vld [vmem:[#allocation15 + $0x48] sm:$0xff]  ;;  %7616 = vmatprep.subr.bf16.mxu0 %v7615_v32  ;;  %v5406_v52 = vld [vmem:[%s10445_s26] sm:$0x1]  ;;  %s7936_s26 = sshll.u32 %s8020_s3, 4  ;;  %s7937_s26 = int_to_ptr.vmem [resolvable:$false] %s7936_s26 }
 0x613   : > { %7516 = vmatprep.subr.bf16.mxu1 %v7515_v35  ;;  %v5400_v35 = vld [vmem:[#allocation15 + $0xd0] sm:$0xff]  ;;  %v7617_v41 = vpack.c.bf16 %v5383_v34, %v5382_v56  ;;  %v5179_v32 = vld [vmem:[#allocation14 + $0x2c8] sm:$0xff]  ;;  %v5181_v56 = vld [vmem:[#allocation14 + $0x2d8] sm:$0xff]  ;;  %v7557_v34 = vpack.c.bf16 %v5176_v31, %v5174_v30  ;;  %s7938_s29 = scalar_lea.vmem %s7937_s26, 32  ;;  %p7939_p6 = scmp.lt.s32.totalorder %s10293_s25, %s7937_s26 }
 0x614   : > { %v7619_v8 = vpack.c.bf16 %v5401_v40, %v5400_v35  ;;  %v7559_v35 = vpack.c.bf16 %v5181_v56, %v5179_v32  ;;  %v5178_v40 = vld [vmem:[#allocation14 + $0x2c0] sm:$0xff]  ;;  %v5217_v30 = vld [vmem:[#allocation14 + $0x3f8] sm:$0xff]  ;;  %v4935_v32 = vrot.slane %v10213_v54, %v4934_v25  ;;  %p7940_p9 = scmp.lt.s32.totalorder %s7938_s29, %s7932_s24 }
 0x615   : > { %7618 = vmatpush3.bf16.msra.mxu0 %v7617_v41  ;;  %v5180_v41 = vld [vmem:[#allocation14 + $0x2d0] sm:$0xff]  ;;  %v5494_v25 = vld [vmem:[%s10447_s21] sm:$0x1] }
 0x616   : > { %7518 = vmatpush1.bf16.msra.mxu1 %v7517_v13  ;;  %v5385_v13 = vld [vmem:[#allocation15 + $0x58] sm:$0xff]  ;;  %7620 = vmatprep.subr.bf16.mxu0 %v7619_v8  ;;  %v5183_v8 = vld [vmem:[#allocation14 + $0x2e8] sm:$0xff]  ;;  %p7941_p5 = por %p7940_p9, %p7939_p6 }
 0x617   : > { %7520 = vmatprep.subr.bf16.mxu1 %v7519_v33  ;;  %v5402_v33 = vld [vmem:[#allocation15 + $0xe0] sm:$0xff]  ;;  %v7621_v50 = vpack.c.bf16 %v5385_v13, %v5384_v42  ;;  %v5185_v42 = vld [vmem:[#allocation14 + $0x2f8] sm:$0xff]  ;;  %v7561_v13 = vpack.c.bf16 %v5180_v41, %v5178_v40 }
 0x618   : > { %v7623_v51 = vpack.c.bf16 %v5403_v36, %v5402_v33  ;;  %v7563_v33 = vpack.c.bf16 %v5185_v42, %v5183_v8  ;;  %v5182_v36 = vld [vmem:[#allocation14 + $0x2e0] sm:$0xff]  ;;  %v5387_v42 = vld [vmem:[#allocation15 + $0x68] sm:$0xff]  ;;  %p7942_p0 = pnand %p7941_p5, %p7935_p1 }
 0x619   : > { %7622 = vmatpush3.bf16.msra.mxu0 %v7621_v50  ;;  %v5184_v50 = vld [vmem:[#allocation14 + $0x2f0] sm:$0xff]  ;;  %v5386_v8 = vld [vmem:[#allocation15 + $0x60] sm:$0xff] }
 0x61a   : > { %7522 = vmatpush1.bf16.msra.mxu1 %v7521_v45  ;;  %7624 = vmatprep.subr.bf16.mxu0 %v7623_v51  ;;  %v4938_v45 = vsub.s32 3, %v8716_v49  ;;  %v5187_v51 = vld [vmem:[#allocation14 + $0x308] sm:$0xff] }
 0x61b   : > { %7524 = vmatprep.subr.bf16.mxu1 %v7523_v55  ;;  %v4927_v55 = vrot.slane %v10213_v54, %v10192_v5 }
 0x61c   : > { %v4939_v37 = vrot.slane %v10213_v54, %v4938_v45  ;;  %v5189_v45 = vld [vmem:[#allocation14 + $0x318] sm:$0xff]  ;;  %v5388_v54 = vld [vmem:[#allocation15 + $0x70] sm:$0xff] }
 0x61e   : > { %7526 = vmatpush1.bf16.msra.mxu1 %v7525_v62 }
 0x61f   : > { %7528 = vmatprep.subr.bf16.mxu1 %v7527_v63 }
 0x622   : > { %7530 = vmatpush1.bf16.msra.mxu1 %v7529_v0  ;;  %v5156_v0 = vld [vmem:[#allocation14 + $0x210] sm:$0xff] }
 0x623   : > { %7532 = vmatprep.subr.bf16.mxu1 %v7531_v3  ;;  %v5159_v3 = vld [vmem:[#allocation14 + $0x228] sm:$0xff] }
 0x624   : > { %v7539_v10 = vpack.c.bf16 %v5161_v4, %v5159_v3  ;;  %v5197_v3 = vld [vmem:[#allocation14 + $0x358] sm:$0xff] }
 0x626   : > { %7534 = vmatpush1.bf16.msra.mxu1 %v7533_v6  ;;  %v7537_v6 = vpack.c.bf16 %v5156_v0, %v5154_v47  ;;  %v5190_v0 = vld [vmem:[#allocation14 + $0x320] sm:$0xff] }
 0x627   : > { %7536 = vmatprep.subr.bf16.mxu1 %v7535_v57  ;;  %v5158_v57 = vld [vmem:[#allocation14 + $0x220] sm:$0xff] }
 0x628   : > { %v7541_v15 = vpack.c.bf16 %v5160_v46, %v5158_v57  ;;  %v5201_v57 = vld [vmem:[#allocation14 + $0x378] sm:$0xff] }
 0x6bc   : > { %v5010_v60 = vpop.f32.mrb[22].mxu1  ;;  %v10221_v61 = vpop.f32.mrb[46].mxu0 }
 0x6bd   : > { %v5011_v62 = vadd.f32 %v5010_v60, %v4927_v55  ;;  %v5012_v63 = vpop.f32.mrb[23].mxu1  ;;  %v5083_v53 = vpop.f32.mrb[47].mxu0  ;;  %v7565_v55 = vpack.c.bf16 %v5184_v50, %v5182_v36  ;;  %v5188_v60 = vld [vmem:[#allocation14 + $0x310] sm:$0xff]  ;;  %v5082_v41 = vadd.f32 %v10221_v61, %v4935_v32  ;;  %v5405_v36 = vld [vmem:[#allocation15 + $0xf8] sm:$0xff]  ;;  %v5218_v61 = vld [vmem:[%s10349_s16] sm:$0x3] }
 0x6be   : > { %v5013_v1 = vadd.f32 %v5012_v63, %v4931_v58  ;;  %v5084_v2 = vadd.f32 %v5083_v53, %v4939_v37  ;;  %v7567_v58 = vpack.c.bf16 %v5189_v45, %v5187_v51  ;;  %v5186_v37 = vld [vmem:[#allocation14 + $0x300] sm:$0xff]  ;;  %v5193_v63 = vld [vmem:[#allocation14 + $0x338] sm:$0xff] }
 0x6bf   : > { %v5086_v11 = vmax.f32 %v5011_v62, 0.0  ;;  %v5191_v62 = vld [vmem:[#allocation14 + $0x328] sm:$0xff]  ;;  %v7569_v53 = vpack.c.bf16 %v5188_v60, %v5186_v37  ;;  %v5088_v49 = vmax.f32 %v5082_v41, 0.0  ;;  %v5389_v51 = vld [vmem:[#allocation15 + $0x78] sm:$0xff]  ;;  %v5227_v37 = vrot.slane %v5218_v61, %v10199_v7 }
 0x6c0   : > { %v5087_v43 = vmax.f32 %v5013_v1, 0.0  ;;  %v5089_v12 = vmax.f32 %v5084_v2, 0.0  ;;  %v7571_v47 = vpack.c.bf16 %v5193_v63, %v5191_v62  ;;  %v5192_v1 = vld [vmem:[#allocation14 + $0x330] sm:$0xff]  ;;  %v5195_v2 = vld [vmem:[#allocation14 + $0x348] sm:$0xff]  ;;  %v7629_v45 = vpack.c.bf16 %v5389_v51, %v5388_v54  ;;  %v5481_v7 = vld [vmem:[%s10443_s1 + $0x18] sm:$0xff] }
 0x6c1   : > { %v7573_v4 = vpack.c.bf16 %v5192_v1, %v5190_v0 }
 0x6c2   : > { %5294 = vmatprep.mubr.f32.mxu1 %v5087_v43  ;;  %v7575_v43 = vpack.c.bf16 %v5197_v3, %v5195_v2 }
 0x6c3   : > { %5295 = vmatmul.mubr.f32.vlgmr.msra.gmra.mrb[24].mxu1 %v5086_v11  ;;  %v5196_v11 = vld [vmem:[#allocation14 + $0x350] sm:$0xff] }
 0x6c4   : > { %7538 = vmatpush1.bf16.msra.mxu1 %v7537_v6  ;;  %5365 = vmatprep.mubr.f32.mxu1 %v5089_v12  ;;  %v5194_v6 = vld [vmem:[#allocation14 + $0x340] sm:$0xff] }
 0x6c5   : > { %7540 = vmatprep.subr.bf16.mxu1 %v7539_v10  ;;  %v5199_v10 = vld [vmem:[#allocation14 + $0x368] sm:$0xff]  ;;  %v7577_v46 = vpack.c.bf16 %v5196_v11, %v5194_v6 }
 0x6c6   : > { %v7579_v12 = vpack.c.bf16 %v5201_v57, %v5199_v10  ;;  %v5483_v6 = vld [vmem:[%s10443_s1 + $0x28] sm:$0xff]  ;;  %v5484_v10 = vld [vmem:[%s10443_s1 + $0x30] sm:$0xff]  ;;  %v5485_v57 = vld [vmem:[%s10443_s1 + $0x38] sm:$0xff] }
 0x6c8   : > { %7542 = vmatpush1.bf16.msra.mxu1 %v7541_v15  ;;  %v5203_v15 = vld [vmem:[#allocation14 + $0x388] sm:$0xff] }
 0x6c9   : > { %7544 = vmatprep.subr.bf16.mxu1 %v7543_v39  ;;  %v5205_v39 = vld [vmem:[#allocation14 + $0x398] sm:$0xff] }
 0x6ca   : > { %v7583_v17 = vpack.c.bf16 %v5205_v39, %v5203_v15  ;;  %v5488_v15 = vld [vmem:[%s10443_s1 + $0x50] sm:$0xff]  ;;  %v5489_v39 = vld [vmem:[%s10443_s1 + $0x58] sm:$0xff] }
 0x6cc   : > { %7546 = vmatpush1.bf16.msra.mxu1 %v7545_v18  ;;  %v5207_v18 = vld [vmem:[#allocation14 + $0x3a8] sm:$0xff] }
 0x6cd   : > { %7548 = vmatprep.subr.bf16.mxu1 %v7547_v19  ;;  %v5209_v19 = vld [vmem:[#allocation14 + $0x3b8] sm:$0xff] }
 0x6ce   : > { %v7587_v21 = vpack.c.bf16 %v5209_v19, %v5207_v18  ;;  %v5492_v18 = vld [vmem:[%s10443_s1 + $0x70] sm:$0xff]  ;;  %v5493_v19 = vld [vmem:[%s10443_s1 + $0x78] sm:$0xff] }
 0x6d0   : > { %7550 = vmatpush1.bf16.msra.mxu1 %v7549_v23  ;;  %v5211_v23 = vld [vmem:[#allocation14 + $0x3c8] sm:$0xff] }
 0x6d1   : > { %7552 = vmatprep.subr.bf16.mxu1 %v7551_v24  ;;  %v5213_v24 = vld [vmem:[#allocation14 + $0x3d8] sm:$0xff] }
 0x6d2   : > { %v7591_v27 = vpack.c.bf16 %v5213_v24, %v5211_v23 }
 0x6d4   : > { %7554 = vmatpush1.bf16.msra.mxu1 %v7553_v28  ;;  %v5212_v28 = vld [vmem:[#allocation14 + $0x3d0] sm:$0xff] }
 0x6d5   : > { %7556 = vmatprep.subr.bf16.mxu1 %v7555_v29  ;;  %v5215_v29 = vld [vmem:[#allocation14 + $0x3e8] sm:$0xff]  ;;  %v7593_v31 = vpack.c.bf16 %v5212_v28, %v5210_v48 }
 0x6d6   : > { %v7595_v56 = vpack.c.bf16 %v5217_v30, %v5215_v29 }
 0x6d8   : > { %7558 = vmatpush1.bf16.msra.mxu1 %v7557_v34  ;;  %v5214_v34 = vld [vmem:[#allocation14 + $0x3e0] sm:$0xff] }
 0x6d9   : > { %7560 = vmatprep.subr.bf16.mxu1 %v7559_v35  ;;  %v5216_v35 = vld [vmem:[#allocation14 + $0x3f0] sm:$0xff] }
 0x6da   : > { %v7597_v40 = vpack.c.bf16 %v5216_v35, %v5214_v34 }
 0x6dc   : > { %7562 = vmatpush1.bf16.msra.mxu1 %v7561_v13  ;;  %v7625_v13 = vpack.c.bf16 %v5387_v42, %v5386_v8 }
 0x6dd   : > { %7564 = vmatprep.subr.bf16.mxu1 %v7563_v33  ;;  %v5404_v33 = vld [vmem:[#allocation15 + $0xf0] sm:$0xff] }
 0x6de   : > { %7626 = vmatpush3.bf16.msra.mxu0 %v7625_v13  ;;  %v7627_v50 = vpack.c.bf16 %v5405_v36, %v5404_v33 }
 0x6e0   : > { %7566 = vmatpush1.bf16.msra.mxu1 %v7565_v55  ;;  %7628 = vmatprep.subr.bf16.mxu0 %v7627_v50  ;;  %v8018_v55 = vmov 0.0|0.0  }
 0x6e1   : > { %7568 = vmatprep.subr.bf16.mxu1 %v7567_v58  ;;  %v5223_v58 = vrot.slane %v5218_v61, %v10192_v5  ;;  %v5480_v5 = vld [vmem:[%s10443_s1 + $0x10] sm:$0xff] }
 0x6e2   : > { %7630 = vmatpush3.bf16.msra.mxu0 %v7629_v45 }
 0x6e3   : > { %7631 = vmatprep.subr.bf16.mxu0 %v8018_v55 }
 0x6e4   : > { %7570 = vmatpush1.bf16.msra.mxu1 %v7569_v53  ;;  %v5478_v53 = vld [vmem:[%s10443_s1] sm:$0xff] }
 0x6e5   : > { %7572 = vmatprep.subr.bf16.mxu1 %v7571_v47  ;;  %v5479_v47 = vld [vmem:[%s10443_s1 + $0x8] sm:$0xff] }
 0x6e6   : > { %v7632_v2 = vpack.c.bf16 %v5479_v47, %v5478_v53 }
 0x6e8   : > { %7574 = vmatpush1.bf16.msra.mxu1 %v7573_v4  ;;  %v7635_v4 = vpack.c.bf16 %v5481_v7, %v5480_v5 }
 0x6e9   : > { %7576 = vmatprep.subr.bf16.mxu1 %v7575_v43  ;;  %v5482_v43 = vld [vmem:[%s10443_s1 + $0x20] sm:$0xff] }
 0x6ea   : > { %v7638_v11 = vpack.c.bf16 %v5483_v6, %v5482_v43 }
 0x6ec   : > { %7578 = vmatpush1.bf16.msra.mxu1 %v7577_v46  ;;  %v7641_v46 = vpack.c.bf16 %v5485_v57, %v5484_v10 }
 0x6ed   : > { %7580 = vmatprep.subr.bf16.mxu1 %v7579_v12  ;;  %v5486_v12 = vld [vmem:[%s10443_s1 + $0x40] sm:$0xff] }
 0x6ee   : > { %v7644_v14 = vpack.c.bf16 %v5487_v38, %v5486_v12 }
 0x6f0   : > { %7582 = vmatpush1.bf16.msra.mxu1 %v7581_v16  ;;  %v7647_v16 = vpack.c.bf16 %v5489_v39, %v5488_v15 }
 0x6f1   : > { %7584 = vmatprep.subr.bf16.mxu1 %v7583_v17  ;;  %v5490_v17 = vld [vmem:[%s10443_s1 + $0x60] sm:$0xff] }
 0x6f2   : > { %v7650_v59 = vpack.c.bf16 %v5491_v44, %v5490_v17 }
 0x6f4   : > { %7586 = vmatpush1.bf16.msra.mxu1 %v7585_v20  ;;  %v7653_v20 = vpack.c.bf16 %v5493_v19, %v5492_v18 }
 0x6f5   : > { %7588 = vmatprep.subr.bf16.mxu1 %v7587_v21 }
 0x6f8   : > { %7590 = vmatpush1.bf16.msra.mxu1 %v7589_v26 }
 0x6f9   : > { %7592 = vmatprep.subr.bf16.mxu1 %v7591_v27 }
 0x6fc   : > { %7594 = vmatpush1.bf16.msra.mxu1 %v7593_v31 }
 0x6fd   : > { %7596 = vmatprep.subr.bf16.mxu1 %v7595_v56 }
 0x700   : > { %7598 = vmatpush1.bf16.msra.mxu1 %v7597_v40 }
 0x703   : > { %5366 = vmatmul.mubr.f32.vlgmr.msra.gmra.mrb[24].mxu1 %v5088_v49 }
 0x7d6   : > { %v5367_v60 = vpop.f32.mrb[24].mxu1 }
 0x7d7   : > { %v7655_v62 = vadd.f32 %v5367_v60, %v5223_v58  ;;  %v5369_v63 = vpop.f32.mrb[25].mxu1 }
 0x7d8   : > { %v7656_v0 = vadd.f32 %v5369_v63, %v5227_v37 }
 0x7d9   : > { %v5372_v3 = vmax.f32 %v7655_v62, 0.0 }
 0x7da   : > { %v5373_v1 = vmax.f32 %v7656_v0, 0.0 }
 0x7dc   : > { %5471 = vmatprep.mubr.f32.mxu0 %v5373_v1 }
 0x7dd   : > { %5472 = vmatmul.mubr.f32.vlgmr.msra.gmra.mrb[48].mxu0 %v5372_v3 }
 0x7de   : > { %7633 = vmatpush3.bf16.msra.mxu0 %v7632_v2  ;;  %6826 = vmatprep.mubr.msk.f32.mxu0 %vm8019_vm15, %v8749_v9 }
 0x7df   : > { %7634 = vmatprep.subr.bf16.mxu0 %v8018_v55 }
 0x7e2   : > { %7636 = vmatpush3.bf16.msra.mxu0 %v7635_v4 }
 0x7e3   : > { %7637 = vmatprep.subr.bf16.mxu0 %v8018_v55 }
 0x7e6   : > { %7639 = vmatpush3.bf16.msra.mxu0 %v7638_v11 }
 0x7e7   : > { %7640 = vmatprep.subr.bf16.mxu0 %v8018_v55 }
 0x7ea   : > { %7642 = vmatpush3.bf16.msra.mxu0 %v7641_v46 }
 0x7eb   : > { %7643 = vmatprep.subr.bf16.mxu0 %v8018_v55 }
 0x7ee   : > { %7645 = vmatpush3.bf16.msra.mxu0 %v7644_v14 }
 0x7ef   : > { %7646 = vmatprep.subr.bf16.mxu0 %v8018_v55 }
 0x7f2   : > { %7648 = vmatpush3.bf16.msra.mxu0 %v7647_v16 }
 0x7f3   : > { %7649 = vmatprep.subr.bf16.mxu0 %v8018_v55 }
 0x7f6   : > { %7651 = vmatpush3.bf16.msra.mxu0 %v7650_v59 }
 0x7f7   : > { %7652 = vmatprep.subr.bf16.mxu0 %v8018_v55 }
 0x7fa   : > { %7654 = vmatpush3.bf16.msra.mxu0 %v7653_v20 }
 0x8b0   : > { %v6367_v21 = vpop.f32.mrb[48].mxu0 }
 0x8b1   : > { %v6368_v22 = vpop.f32.mrb[49].mxu0 }
 0x8b2   : > { %v6369_v23 = vadd.f32 %v6368_v22, %v6367_v21 }
 0x8b4   : > { %v5474_v24 = vadd.f32 %v6369_v23, %v5406_v52 }
 0x8b6   : > { %v5477_v26 = vmax.f32 %v5474_v24, 0.0 }
 0x8b8   : > { %6827 = vmatmul.mubr.f32.vlgmr.msra.gmra.mrb[50].mxu0 %v5477_v26 }
 0x98b   : > { %v5561_v9 = vpop.f32.mrb[50].mxu0 }
 0x98c   : > { %v5562_v27 = vadd.f32 %v5561_v9, %v5494_v25  ;;  %v6828_v48 = vpop.f32.mrb[51].mxu0 }
 0x98e   : > { %5566 = vst.msk [vmem:[%s707_s28] sm:$0x1] %vm5565_vm0, %v5562_v27 }
 0x98f   : > { %7945 = shalt.err (!%p7942_p0)
}
 0x990   : > { %s7946_s18 = scalar_lea.hbm %s10291_s27, 16  ;;  %s7950_s23 = scalar_lea.hbm %s10448_s30, 32 }
 0x991   : > { %p7947_p10 = scmp.ne.s32.totalorder %s10291_s27, %s7946_s18  ;;  %p7951_p4 = scmp.lt.u32.totalorder %s10291_s27, %s10448_s30 }
 0x992   : > { %p7952_p12 = scmp.lt.u32.totalorder %s7950_s23, %s7946_s18  ;;  %p7954_p8 = scmp.lt.u32.totalorder %s7946_s18, %s10291_s27 }
 0x993   : > { %p7948_p2 = pnand %p7947_p10, %p10449_p11 }
 0x994   : > { %p7953_p7 = por %p7952_p12, %p7951_p4 }
 0x995   : > { %p7949_p3 = pneg %p7948_p2 }
 0x996   : > { %p7955_p13 = por %p7954_p8, %p7953_p7 }
 0x998   : > { %p7956_p1 = pnand %p7955_p13, %p7949_p3 }
 0x99a   : > { %7959 = shalt.err (!%p7956_p1)
}
 0x99b   : > { %7747 = dma.vmem_to_hbm [thread:$0]  (%p10449_p11), %s10293_s25, 16, %s10291_s27, %s5568_s19  }
 0x99c PF: > { %s10450_s22 = sld [smem:[#allocation25_spill]]  ;;  %s10451_s24 = sld [smem:[#allocation22_spill]] }
 0x99d   : > { %s10452_s3 = sld [smem:[#allocation29_spill]] }
 0x9a2   : > { %p7774_p6 = scmp.ge.s32.totalorder %s10450_s22, 2  ;;  %s5592_s26 = sand.u32 1, %s10451_s24  }
 0x9a3   : > { %p10453_p9 = scmp.ne.s32.totalorder %s10452_s3, 0  ;;  %s5593_s29 = scalar_lea.sflag [#allocation11], %s5592_s26 }
 0x9a5   : > { %p7763_p5 = pnand %p7774_p6, %p10453_p9 }
 0x9a7   : > { %7989 = dma.done.wait (!%p7763_p5), %s5593_s29, 16  }
 0x9a8   : > { %7991 = vsyncadd (!%p7763_p5), %s5593_s29, 4294967280  ;;  %s10454_s27 = sld [smem:[#allocation26_spill]]  ;;  %s10455_s2 = sld [smem:[#allocation23_spill]] }
 0x9a9   : > { %s10456_s25 = sld [smem:[#allocation24_spill]]  ;;  %s10457_s26 = sld [smem:[#allocation27_spill]] }
 0x9ae   : > { %p34_p0 = scmp.ge.s32.totalorder %s10454_s27, 4  }
 0x9b0   :  { %36 = sbr.rel (!%p34_p0) target bundleno = 17 (0x11), region = 236 }
 0x9b7   :  { %5597 = vsyncpa [#allocation10], 1 }
 0x9b8   :  { %5599 = vsyncpa [#allocation10 + $0x1], 1 }
 0x9b9   :  { %5600 = vsyncpa [#allocation13], 1 }
 0x9ba   :  { %5601 = vsyncpa [#allocation16], 1 }
 0x9bb   :  { %5602 = vsyncpa [#allocation11], 1 }
 0x9bc   :  { %5604 = vsyncpa [#allocation11 + $0x1], 1 }

</bundles_post_ra>
